<compile_context>
chip_gen: v6e
topology: v6e:2x2x1
jax: 0.10.0
libtpu: 0.0.40
codegen_flags: <defaults>
</compile_context>

<pallas_src>
import jax
import jax.numpy as jnp
from jax.experimental import pallas as pl
from jax.experimental.pallas import tpu as pltpu

LN_EPS = 1e-5
BN_EPS = 1e-5
NEG_SLOPE = 0.1


# ------------------------------- kernel -----------------------------------

def _row(vec_ref, r, w):
    """Static (1, w) slice of the packed row-vector table (f32)."""
    return vec_ref[r:r + 1, 0:w]


def _ln_leaky(z, g, bt):
    """LayerNorm (last dim, biased var) + LeakyReLU(0.1), f32.

    Variance computed as E[z^2] - mu^2 so both cross-lane reductions come
    straight off z (overlap on the XLUs); clamped at 0 against cancellation.
    """
    mu = jnp.mean(z, axis=-1, keepdims=True)
    var = jnp.maximum(jnp.mean(z * z, axis=-1, keepdims=True) - mu * mu, 0.0)
    z = (z - mu) * jax.lax.rsqrt(var + LN_EPS) * g + bt
    return jnp.where(z >= 0, z, NEG_SLOPE * z)   # dropout = identity in eval


def _make_kernel(layout):
    blocks = layout["blocks"]
    out_rows = layout["out_rows"]
    d_pad = layout["d_pad"]
    n_w = len(blocks) + 1                      # block weights + output weight

    def kernel(x_ref, *refs):
        w_refs = refs[:n_w]
        vec_ref = refs[n_w]
        o_ref = refs[n_w + 1]

        h = x_ref[...]                         # f32; BN folded into block 0
        for blk, w_ref in zip(blocks, w_refs[:-1]):
            d, fused = blk["d"], blk["fused"]
            rb, rg, rbt = blk["rows"]
            wdt = 2 * d if fused else d
            # One MXU push per block: fused [main | shortcut] weight.
            zf = jnp.dot(h.astype(jnp.bfloat16), w_ref[...],
                         preferred_element_type=jnp.float32)
            zf = zf + _row(vec_ref, rb, wdt)
            if fused:
                z, res = zf[:, :d], zf[:, d:]  # static lane-aligned split
            else:
                z, res = zf, h                 # Identity shortcut
            h = _ln_leaky(z, _row(vec_ref, rg, d), _row(vec_ref, rbt, d)) + res

        rb, rmn, rmx, rrg, ras = out_rows
        y = jnp.dot(h.astype(jnp.bfloat16), w_refs[-1][...],
                    preferred_element_type=jnp.float32)
        y = y + _row(vec_ref, rb, d_pad)

        # Bounded-output transform (RobustOPFNetwork.forward, bounds branch).
        mn = _row(vec_ref, rmn, d_pad)
        mx = _row(vec_ref, rmx, d_pad)
        rng = _row(vec_ref, rrg, d_pad)
        asc = _row(vec_ref, ras, d_pad)        # = rng * 0.1 * 5 / max_range
        active = rng > 0.01
        y_bounded = mn + rng * jax.nn.sigmoid(y)
        # Numerically stable softplus (torch's log(1+exp(y)) overflows for
        # y >~ 88 only, where it is clamped anyway).
        sp = jnp.maximum(y, 0.0) + jnp.log(1.0 + jnp.exp(-jnp.abs(y)))
        y_active = mn + sp * asc
        y = jnp.where(active, y_active, y_bounded)
        o_ref[...] = jnp.maximum(jnp.minimum(y, mx), mn)

    return kernel


# ------------------------------- wrapper -----------------------------------

def robust_warmstart_forward(x, params, out_dim, *, tb=None):
    weights, vecs, layout = params["weights"], params["vecs"], params["layout"]
    B, d_in = x.shape
    d_pad = layout["d_pad"]

    if tb is None:
        # Overhead/latency-bound kernel: biggest tile that still leaves >=4
        # grid steps (so v7x's 2 TCs each get >=2 pipelined steps); floor 128.
        tb = 128
        for cand in (1024, 512, 256):
            if B >= 4 * cand:
                tb = cand
                break

    Bp = ((B + tb - 1) // tb) * tb
    if Bp != B:
        x = jnp.pad(x, ((0, Bp - B), (0, 0)))
    grid = (Bp // tb,)

    x_spec = pl.BlockSpec((tb, d_in), lambda i: (i, 0))
    # Constant-index full-extent blocks: each parameter slab is DMA'd once.
    param_specs = [pl.BlockSpec(p.shape, lambda i: (0, 0))
                   for p in (*weights, vecs)]
    out_spec = pl.BlockSpec((tb, d_pad), lambda i: (i, 0))

    out = pl.pallas_call(
        _make_kernel(layout),
        out_shape=jax.ShapeDtypeStruct((Bp, d_pad), jnp.float32),
        grid_spec=pltpu.PrefetchScalarGridSpec(
            num_scalar_prefetch=0,
            grid=grid,
            in_specs=[x_spec] + param_specs,
            out_specs=out_spec,
        ),
        compiler_params=pltpu.CompilerParams(
            dimension_semantics=("parallel",)),
    )(x, *weights, vecs)
    return out[:B, :out_dim]


# ------------------------- parameter construction --------------------------

def _kaiming_normal(key, fan_in, fan_out):
    # kaiming_normal_(mode='fan_in', nonlinearity='leaky_relu') -> a=0.01
    gain = jnp.sqrt(2.0 / (1.0 + 0.01 ** 2))
    std = gain / jnp.sqrt(float(fan_in))
    # stored [in, out] (transpose of torch's [out, in])
    return std * jax.random.normal(key, (fan_in, fan_out), dtype=jnp.float32)


def build_params(key, input_dim, output_dim, hidden_dims, min_bounds, max_bounds):
    keys = jax.random.split(key, 2 * len(hidden_dims) + 1)
    ki = iter(keys)

    # eval-mode BatchNorm1d affine (default running stats rm=0, rv=1):
    # scale = gamma/sqrt(rv+eps), shift = beta - rm*scale.  Real checkpoints
    # must supply the actual running_mean/var here.
    gamma = jnp.ones((input_dim,), jnp.float32)
    beta = jnp.zeros((input_dim,), jnp.float32)
    rm = jnp.zeros((input_dim,), jnp.float32)
    rv = jnp.ones((input_dim,), jnp.float32)
    bn_scale = gamma / jnp.sqrt(rv + BN_EPS)
    bn_shift = beta - rm * bn_scale

    rows = []                          # 1-D f32 rows of the packed vec table

    def add_row(v):
        rows.append(jnp.asarray(v, jnp.float32).reshape(-1))
        return len(rows) - 1

    weights, blocks = [], []
    prev, first = input_dim, True
    for dim in hidden_dims:
        w = _kaiming_normal(next(ki), prev, dim)
        b = jnp.zeros((dim,), jnp.float32)
        if first:   # exact fold: (x*s + t) @ W + b = x @ (diag(s) W) + (t@W + b)
            b = b + bn_shift @ w
            w = bn_scale[:, None] * w
        fused = prev != dim
        if fused:
            ws = _kaiming_normal(next(ki), prev, dim)
            bs = jnp.zeros((dim,), jnp.float32)
            if first:
                bs = bs + bn_shift @ ws
                ws = bn_scale[:, None] * ws
            # Fuse main + shortcut along N: one MXU push per block.
            w = jnp.concatenate([w, ws], axis=1)
            b = jnp.concatenate([b, bs])
        weights.append(w.astype(jnp.bfloat16))
        rb = add_row(b)
        rg = add_row(jnp.ones((dim,), jnp.float32))     # LayerNorm weight
        rbt = add_row(jnp.zeros((dim,), jnp.float32))   # LayerNorm bias
        blocks.append(dict(d=dim, fused=fused, rows=(rb, rg, rbt)))
        first = False
        prev = dim

    wo = _kaiming_normal(next(ki), prev, output_dim)
    bo = jnp.zeros((output_dim,), jnp.float32)

    # Lane-dense output head: pad to a multiple of 128; padded lanes have
    # min=max=rng=0 -> they clamp to 0 and are sliced off in the wrapper.
    d_pad = max(128, ((output_dim + 127) // 128) * 128)
    pad = d_pad - output_dim
    minb = jnp.pad(jnp.asarray(min_bounds, jnp.float32), (0, pad))
    maxb = jnp.pad(jnp.asarray(max_bounds, jnp.float32), (0, pad))
    rng = maxb - minb
    max_range = jnp.max(jnp.asarray(max_bounds, jnp.float32)
                        - jnp.asarray(min_bounds, jnp.float32))
    ascale = rng * 0.5 / max_range     # folds the softplus *0.1 and *5 factors

    weights.append(jnp.pad(wo, ((0, 0), (0, pad))).astype(jnp.bfloat16))
    out_rows = (add_row(jnp.pad(bo, (0, pad))), add_row(minb), add_row(maxb),
                add_row(rng), add_row(ascale))

    vw = max(int(r.shape[0]) for r in rows)
    vw = ((vw + 127) // 128) * 128
    vecs = jnp.stack([jnp.pad(r, (0, vw - int(r.shape[0]))) for r in rows])

    layout = dict(blocks=blocks, out_rows=out_rows, d_pad=d_pad)
    return dict(weights=weights, vecs=vecs, layout=layout)


# ------------------------------ pure-JAX ref --------------------------------

def reference_forward(x, params, out_dim):
    weights, vecs, layout = params["weights"], params["vecs"], params["layout"]

    def mm(h, w):
        # Mirror the kernel: bf16 operands, f32 accumulation.
        return jnp.dot(h.astype(jnp.bfloat16).astype(jnp.float32),
                       jnp.asarray(w, jnp.float32))

    def row(r, w):
        return vecs[r, :w]

    h = x
    for blk, w in zip(layout["blocks"], weights[:-1]):
        d, fused = blk["d"], blk["fused"]
        rb, rg, rbt = blk["rows"]
        wdt = 2 * d if fused else d
        zf = mm(h, w) + row(rb, wdt)
        z, res = (zf[:, :d], zf[:, d:]) if fused else (zf, h)
        mu = z.mean(-1, keepdims=True)
        var = jnp.maximum((z * z).mean(-1, keepdims=True) - mu * mu, 0.0)
        z = (z - mu) / jnp.sqrt(var + LN_EPS) * row(rg, d) + row(rbt, d)
        z = jnp.where(z >= 0, z, NEG_SLOPE * z)
        h = z + res

    d_pad = layout["d_pad"]
    rb, rmn, rmx, rrg, ras = layout["out_rows"]
    y = mm(h, weights[-1]) + row(rb, d_pad)
    mn, mx = row(rmn, d_pad), row(rmx, d_pad)
    rng, asc = row(rrg, d_pad), row(ras, d_pad)
    active = rng > 0.01
    y_bounded = mn + rng * jax.nn.sigmoid(y)
    sp = jnp.maximum(y, 0.0) + jnp.log(1.0 + jnp.exp(-jnp.abs(y)))
    y = jnp.where(active, mn + sp * asc, y_bounded)
    y = jnp.maximum(jnp.minimum(y, mx), mn)
    return y[:, :out_dim]


# --------------------------------- main -------------------------------------

if __name__ == "__main__":
    input_dim, output_dim = 16, 8
    hidden_dims = [128, 256, 256, 128]       # module default
    batch = 512                              # -> tb=128, 4 grid steps

    key = jax.random.PRNGKey(0)
    kx, kp = jax.random.split(key)
    x = jax.random.normal(kx, (batch, input_dim), dtype=jnp.float32)

    min_bounds = jnp.arange(output_dim, dtype=jnp.float32) * 0.1
    ranges = jnp.array([0.005, 0.5, 1.0, 0.005, 2.0, 0.3, 0.001, 1.5],
                       dtype=jnp.float32)
    max_bounds = min_bounds + ranges

    params = build_params(kp, input_dim, output_dim, hidden_dims,
                          min_bounds, max_bounds)

    out = robust_warmstart_forward(x, params, output_dim)
    out = jax.block_until_ready(out)

    ref = reference_forward(x, params, output_dim)
    assert out.shape == (batch, output_dim)
    err = jnp.max(jnp.abs(out - ref))
    assert jnp.allclose(out, ref, atol=2e-3, rtol=2e-3), f"max abs err {err}"
    print("KERNEL_OK")
</pallas_src>

<mosaic_0001>
module attributes {stable_mosaic.version = 11 : i64} {
  func.func @kernel(%arg0: i32, %arg1: memref<128x16xf32, #tpu.memory_space<vmem>>, %arg2: memref<16x256xbf16, #tpu.memory_space<vmem>>, %arg3: memref<128x512xbf16, #tpu.memory_space<vmem>>, %arg4: memref<256x256xbf16, #tpu.memory_space<vmem>>, %arg5: memref<256x256xbf16, #tpu.memory_space<vmem>>, %arg6: memref<128x128xbf16, #tpu.memory_space<vmem>>, %arg7: memref<17x512xf32, #tpu.memory_space<vmem>>, %arg8: memref<128x128xf32, #tpu.memory_space<vmem>>) attributes {dimension_semantics = [#tpu.dimension_semantics<parallel>], iteration_bounds = array<i64: 4>, scalar_prefetch = 0 : i64, scratch_operands = 0 : i64, tpu.core_type = #tpu.core_type<tc>, window_params = [{transform_indices = @transform_0, window_bounds = array<i64: 128, 16>}, {pipeline_mode = #tpu.pipeline_mode<synchronous>, transform_indices = @transform_1, window_bounds = array<i64: 16, 256>}, {pipeline_mode = #tpu.pipeline_mode<synchronous>, transform_indices = @transform_2, window_bounds = array<i64: 128, 512>}, {pipeline_mode = #tpu.pipeline_mode<synchronous>, transform_indices = @transform_3, window_bounds = array<i64: 256, 256>}, {pipeline_mode = #tpu.pipeline_mode<synchronous>, transform_indices = @transform_4, window_bounds = array<i64: 256, 256>}, {pipeline_mode = #tpu.pipeline_mode<synchronous>, transform_indices = @transform_5, window_bounds = array<i64: 128, 128>}, {pipeline_mode = #tpu.pipeline_mode<synchronous>, transform_indices = @transform_6, window_bounds = array<i64: 17, 512>}, {transform_indices = @transform_7, window_bounds = array<i64: 128, 128>}]} {
    %c0 = arith.constant 0 : index
    %c0_0 = arith.constant 0 : index
    %0 = vector.load %arg1[%c0, %c0_0] : memref<128x16xf32, #tpu.memory_space<vmem>>, vector<128x16xf32>
    %1 = arith.truncf %0 : vector<128x16xf32> to vector<128x16xbf16>
    %c0_1 = arith.constant 0 : index
    %c0_2 = arith.constant 0 : index
    %2 = vector.load %arg2[%c0_1, %c0_2] : memref<16x256xbf16, #tpu.memory_space<vmem>>, vector<16x256xbf16>
    %cst = arith.constant dense<0.000000e+00> : vector<128x256xf32>
    %3 = tpu.matmul %1, %2, %cst {dimension_numbers = #tpu.dot_dimension_numbers<[1], [0], [0], [1], [0, 0, 1, 1], [], []>} : vector<128x16xbf16>, vector<16x256xbf16>, vector<128x256xf32> -> vector<128x256xf32>
    %c0_3 = arith.constant 0 : index
    %c0_4 = arith.constant 0 : index
    %4 = vector.load %arg7[%c0_3, %c0_4] : memref<17x512xf32, #tpu.memory_space<vmem>>, vector<1x256xf32>
    %5 = vector.broadcast %4 : vector<1x256xf32> to vector<128x256xf32>
    %6 = arith.addf %3, %5 : vector<128x256xf32>
    %7 = vector.extract_strided_slice %6 {offsets = [0, 0], sizes = [128, 128], strides = [1, 1]} : vector<128x256xf32> to vector<128x128xf32>
    %8 = vector.extract_strided_slice %6 {offsets = [0, 128], sizes = [128, 128], strides = [1, 1]} : vector<128x256xf32> to vector<128x128xf32>
    %c1 = arith.constant 1 : index
    %c0_5 = arith.constant 0 : index
    %9 = vector.load %arg7[%c1, %c0_5] : memref<17x512xf32, #tpu.memory_space<vmem>>, vector<1x128xf32>
    %c2 = arith.constant 2 : index
    %c0_6 = arith.constant 0 : index
    %10 = vector.load %arg7[%c2, %c0_6] : memref<17x512xf32, #tpu.memory_space<vmem>>, vector<1x128xf32>
    %cst_7 = arith.constant dense<0.000000e+00> : vector<128xf32>
    %11 = vector.multi_reduction <add>, %7, %cst_7 [1] : vector<128x128xf32> to vector<128xf32>
    %12 = vector.shape_cast %11 : vector<128xf32> to vector<128x1xf32>
    %cst_8 = arith.constant 1.280000e+02 : f32
    %13 = vector.broadcast %cst_8 : f32 to vector<128x1xf32>
    %14 = arith.divf %12, %13 : vector<128x1xf32>
    %15 = arith.mulf %7, %7 : vector<128x128xf32>
    %cst_9 = arith.constant dense<0.000000e+00> : vector<128xf32>
    %16 = vector.multi_reduction <add>, %15, %cst_9 [1] : vector<128x128xf32> to vector<128xf32>
    %17 = vector.shape_cast %16 : vector<128xf32> to vector<128x1xf32>
    %cst_10 = arith.constant 1.280000e+02 : f32
    %18 = vector.broadcast %cst_10 : f32 to vector<128x1xf32>
    %19 = arith.divf %17, %18 : vector<128x1xf32>
    %20 = arith.mulf %14, %14 : vector<128x1xf32>
    %21 = arith.subf %19, %20 : vector<128x1xf32>
    %cst_11 = arith.constant 0.000000e+00 : f32
    %22 = vector.broadcast %cst_11 : f32 to vector<128x1xf32>
    %23 = arith.maximumf %21, %22 : vector<128x1xf32>
    %24 = vector.broadcast %14 : vector<128x1xf32> to vector<128x128xf32>
    %25 = arith.subf %7, %24 : vector<128x128xf32>
    %cst_12 = arith.constant 9.99999974E-6 : f32
    %26 = vector.broadcast %cst_12 : f32 to vector<128x1xf32>
    %27 = arith.addf %23, %26 : vector<128x1xf32>
    %28 = math.rsqrt %27 : vector<128x1xf32>
    %29 = vector.broadcast %28 : vector<128x1xf32> to vector<128x128xf32>
    %30 = arith.mulf %25, %29 : vector<128x128xf32>
    %31 = vector.broadcast %9 : vector<1x128xf32> to vector<128x128xf32>
    %32 = arith.mulf %30, %31 : vector<128x128xf32>
    %33 = vector.broadcast %10 : vector<1x128xf32> to vector<128x128xf32>
    %34 = arith.addf %32, %33 : vector<128x128xf32>
    %cst_13 = arith.constant 0.000000e+00 : f32
    %35 = vector.broadcast %cst_13 : f32 to vector<128x128xf32>
    %36 = arith.cmpf oge, %34, %35 : vector<128x128xf32>
    %cst_14 = arith.constant 1.000000e-01 : f32
    %37 = vector.broadcast %cst_14 : f32 to vector<128x128xf32>
    %38 = arith.mulf %37, %34 : vector<128x128xf32>
    %39 = arith.select %36, %34, %38 : vector<128x128xi1>, vector<128x128xf32>
    %40 = arith.addf %39, %8 : vector<128x128xf32>
    %41 = arith.truncf %40 : vector<128x128xf32> to vector<128x128xbf16>
    %c0_15 = arith.constant 0 : index
    %c0_16 = arith.constant 0 : index
    %42 = vector.load %arg3[%c0_15, %c0_16] : memref<128x512xbf16, #tpu.memory_space<vmem>>, vector<128x512xbf16>
    %cst_17 = arith.constant dense<0.000000e+00> : vector<128x512xf32>
    %43 = tpu.matmul %41, %42, %cst_17 {dimension_numbers = #tpu.dot_dimension_numbers<[1], [0], [0], [1], [0, 0, 1, 1], [], []>} : vector<128x128xbf16>, vector<128x512xbf16>, vector<128x512xf32> -> vector<128x512xf32>
    %c3 = arith.constant 3 : index
    %c0_18 = arith.constant 0 : index
    %44 = vector.load %arg7[%c3, %c0_18] : memref<17x512xf32, #tpu.memory_space<vmem>>, vector<1x512xf32>
    %45 = vector.broadcast %44 : vector<1x512xf32> to vector<128x512xf32>
    %46 = arith.addf %43, %45 : vector<128x512xf32>
    %47 = vector.extract_strided_slice %46 {offsets = [0, 0], sizes = [128, 256], strides = [1, 1]} : vector<128x512xf32> to vector<128x256xf32>
    %48 = vector.extract_strided_slice %46 {offsets = [0, 256], sizes = [128, 256], strides = [1, 1]} : vector<128x512xf32> to vector<128x256xf32>
    %c4 = arith.constant 4 : index
    %c0_19 = arith.constant 0 : index
    %49 = vector.load %arg7[%c4, %c0_19] : memref<17x512xf32, #tpu.memory_space<vmem>>, vector<1x256xf32>
    %c5 = arith.constant 5 : index
    %c0_20 = arith.constant 0 : index
    %50 = vector.load %arg7[%c5, %c0_20] : memref<17x512xf32, #tpu.memory_space<vmem>>, vector<1x256xf32>
    %cst_21 = arith.constant dense<0.000000e+00> : vector<128xf32>
    %51 = vector.multi_reduction <add>, %47, %cst_21 [1] : vector<128x256xf32> to vector<128xf32>
    %52 = vector.shape_cast %51 : vector<128xf32> to vector<128x1xf32>
    %cst_22 = arith.constant 2.560000e+02 : f32
    %53 = vector.broadcast %cst_22 : f32 to vector<128x1xf32>
    %54 = arith.divf %52, %53 : vector<128x1xf32>
    %55 = arith.mulf %47, %47 : vector<128x256xf32>
    %cst_23 = arith.constant dense<0.000000e+00> : vector<128xf32>
    %56 = vector.multi_reduction <add>, %55, %cst_23 [1] : vector<128x256xf32> to vector<128xf32>
    %57 = vector.shape_cast %56 : vector<128xf32> to vector<128x1xf32>
    %cst_24 = arith.constant 2.560000e+02 : f32
    %58 = vector.broadcast %cst_24 : f32 to vector<128x1xf32>
    %59 = arith.divf %57, %58 : vector<128x1xf32>
    %60 = arith.mulf %54, %54 : vector<128x1xf32>
    %61 = arith.subf %59, %60 : vector<128x1xf32>
    %cst_25 = arith.constant 0.000000e+00 : f32
    %62 = vector.broadcast %cst_25 : f32 to vector<128x1xf32>
    %63 = arith.maximumf %61, %62 : vector<128x1xf32>
    %64 = vector.broadcast %54 : vector<128x1xf32> to vector<128x256xf32>
    %65 = arith.subf %47, %64 : vector<128x256xf32>
    %cst_26 = arith.constant 9.99999974E-6 : f32
    %66 = vector.broadcast %cst_26 : f32 to vector<128x1xf32>
    %67 = arith.addf %63, %66 : vector<128x1xf32>
    %68 = math.rsqrt %67 : vector<128x1xf32>
    %69 = vector.broadcast %68 : vector<128x1xf32> to vector<128x256xf32>
    %70 = arith.mulf %65, %69 : vector<128x256xf32>
    %71 = vector.broadcast %49 : vector<1x256xf32> to vector<128x256xf32>
    %72 = arith.mulf %70, %71 : vector<128x256xf32>
    %73 = vector.broadcast %50 : vector<1x256xf32> to vector<128x256xf32>
    %74 = arith.addf %72, %73 : vector<128x256xf32>
    %cst_27 = arith.constant 0.000000e+00 : f32
    %75 = vector.broadcast %cst_27 : f32 to vector<128x256xf32>
    %76 = arith.cmpf oge, %74, %75 : vector<128x256xf32>
    %cst_28 = arith.constant 1.000000e-01 : f32
    %77 = vector.broadcast %cst_28 : f32 to vector<128x256xf32>
    %78 = arith.mulf %77, %74 : vector<128x256xf32>
    %79 = arith.select %76, %74, %78 : vector<128x256xi1>, vector<128x256xf32>
    %80 = arith.addf %79, %48 : vector<128x256xf32>
    %81 = arith.truncf %80 : vector<128x256xf32> to vector<128x256xbf16>
    %c0_29 = arith.constant 0 : index
    %c0_30 = arith.constant 0 : index
    %82 = vector.load %arg4[%c0_29, %c0_30] : memref<256x256xbf16, #tpu.memory_space<vmem>>, vector<256x256xbf16>
    %cst_31 = arith.constant dense<0.000000e+00> : vector<128x256xf32>
    %83 = tpu.matmul %81, %82, %cst_31 {dimension_numbers = #tpu.dot_dimension_numbers<[1], [0], [0], [1], [0, 0, 1, 1], [], []>} : vector<128x256xbf16>, vector<256x256xbf16>, vector<128x256xf32> -> vector<128x256xf32>
    %c6 = arith.constant 6 : index
    %c0_32 = arith.constant 0 : index
    %84 = vector.load %arg7[%c6, %c0_32] : memref<17x512xf32, #tpu.memory_space<vmem>>, vector<1x256xf32>
    %85 = vector.broadcast %84 : vector<1x256xf32> to vector<128x256xf32>
    %86 = arith.addf %83, %85 : vector<128x256xf32>
    %c7 = arith.constant 7 : index
    %c0_33 = arith.constant 0 : index
    %87 = vector.load %arg7[%c7, %c0_33] : memref<17x512xf32, #tpu.memory_space<vmem>>, vector<1x256xf32>
    %c8 = arith.constant 8 : index
    %c0_34 = arith.constant 0 : index
    %88 = vector.load %arg7[%c8, %c0_34] : memref<17x512xf32, #tpu.memory_space<vmem>>, vector<1x256xf32>
    %cst_35 = arith.constant dense<0.000000e+00> : vector<128xf32>
    %89 = vector.multi_reduction <add>, %86, %cst_35 [1] : vector<128x256xf32> to vector<128xf32>
    %90 = vector.shape_cast %89 : vector<128xf32> to vector<128x1xf32>
    %cst_36 = arith.constant 2.560000e+02 : f32
    %91 = vector.broadcast %cst_36 : f32 to vector<128x1xf32>
    %92 = arith.divf %90, %91 : vector<128x1xf32>
    %93 = arith.mulf %86, %86 : vector<128x256xf32>
    %cst_37 = arith.constant dense<0.000000e+00> : vector<128xf32>
    %94 = vector.multi_reduction <add>, %93, %cst_37 [1] : vector<128x256xf32> to vector<128xf32>
    %95 = vector.shape_cast %94 : vector<128xf32> to vector<128x1xf32>
    %cst_38 = arith.constant 2.560000e+02 : f32
    %96 = vector.broadcast %cst_38 : f32 to vector<128x1xf32>
    %97 = arith.divf %95, %96 : vector<128x1xf32>
    %98 = arith.mulf %92, %92 : vector<128x1xf32>
    %99 = arith.subf %97, %98 : vector<128x1xf32>
    %cst_39 = arith.constant 0.000000e+00 : f32
    %100 = vector.broadcast %cst_39 : f32 to vector<128x1xf32>
    %101 = arith.maximumf %99, %100 : vector<128x1xf32>
    %102 = vector.broadcast %92 : vector<128x1xf32> to vector<128x256xf32>
    %103 = arith.subf %86, %102 : vector<128x256xf32>
    %cst_40 = arith.constant 9.99999974E-6 : f32
    %104 = vector.broadcast %cst_40 : f32 to vector<128x1xf32>
    %105 = arith.addf %101, %104 : vector<128x1xf32>
    %106 = math.rsqrt %105 : vector<128x1xf32>
    %107 = vector.broadcast %106 : vector<128x1xf32> to vector<128x256xf32>
    %108 = arith.mulf %103, %107 : vector<128x256xf32>
    %109 = vector.broadcast %87 : vector<1x256xf32> to vector<128x256xf32>
    %110 = arith.mulf %108, %109 : vector<128x256xf32>
    %111 = vector.broadcast %88 : vector<1x256xf32> to vector<128x256xf32>
    %112 = arith.addf %110, %111 : vector<128x256xf32>
    %cst_41 = arith.constant 0.000000e+00 : f32
    %113 = vector.broadcast %cst_41 : f32 to vector<128x256xf32>
    %114 = arith.cmpf oge, %112, %113 : vector<128x256xf32>
    %cst_42 = arith.constant 1.000000e-01 : f32
    %115 = vector.broadcast %cst_42 : f32 to vector<128x256xf32>
    %116 = arith.mulf %115, %112 : vector<128x256xf32>
    %117 = arith.select %114, %112, %116 : vector<128x256xi1>, vector<128x256xf32>
    %118 = arith.addf %117, %80 : vector<128x256xf32>
    %119 = arith.truncf %118 : vector<128x256xf32> to vector<128x256xbf16>
    %c0_43 = arith.constant 0 : index
    %c0_44 = arith.constant 0 : index
    %120 = vector.load %arg5[%c0_43, %c0_44] : memref<256x256xbf16, #tpu.memory_space<vmem>>, vector<256x256xbf16>
    %cst_45 = arith.constant dense<0.000000e+00> : vector<128x256xf32>
    %121 = tpu.matmul %119, %120, %cst_45 {dimension_numbers = #tpu.dot_dimension_numbers<[1], [0], [0], [1], [0, 0, 1, 1], [], []>} : vector<128x256xbf16>, vector<256x256xbf16>, vector<128x256xf32> -> vector<128x256xf32>
    %c9 = arith.constant 9 : index
    %c0_46 = arith.constant 0 : index
    %122 = vector.load %arg7[%c9, %c0_46] : memref<17x512xf32, #tpu.memory_space<vmem>>, vector<1x256xf32>
    %123 = vector.broadcast %122 : vector<1x256xf32> to vector<128x256xf32>
    %124 = arith.addf %121, %123 : vector<128x256xf32>
    %125 = vector.extract_strided_slice %124 {offsets = [0, 0], sizes = [128, 128], strides = [1, 1]} : vector<128x256xf32> to vector<128x128xf32>
    %126 = vector.extract_strided_slice %124 {offsets = [0, 128], sizes = [128, 128], strides = [1, 1]} : vector<128x256xf32> to vector<128x128xf32>
    %c10 = arith.constant 10 : index
    %c0_47 = arith.constant 0 : index
    %127 = vector.load %arg7[%c10, %c0_47] : memref<17x512xf32, #tpu.memory_space<vmem>>, vector<1x128xf32>
    %c11 = arith.constant 11 : index
    %c0_48 = arith.constant 0 : index
    %128 = vector.load %arg7[%c11, %c0_48] : memref<17x512xf32, #tpu.memory_space<vmem>>, vector<1x128xf32>
    %cst_49 = arith.constant dense<0.000000e+00> : vector<128xf32>
    %129 = vector.multi_reduction <add>, %125, %cst_49 [1] : vector<128x128xf32> to vector<128xf32>
    %130 = vector.shape_cast %129 : vector<128xf32> to vector<128x1xf32>
    %cst_50 = arith.constant 1.280000e+02 : f32
    %131 = vector.broadcast %cst_50 : f32 to vector<128x1xf32>
    %132 = arith.divf %130, %131 : vector<128x1xf32>
    %133 = arith.mulf %125, %125 : vector<128x128xf32>
    %cst_51 = arith.constant dense<0.000000e+00> : vector<128xf32>
    %134 = vector.multi_reduction <add>, %133, %cst_51 [1] : vector<128x128xf32> to vector<128xf32>
    %135 = vector.shape_cast %134 : vector<128xf32> to vector<128x1xf32>
    %cst_52 = arith.constant 1.280000e+02 : f32
    %136 = vector.broadcast %cst_52 : f32 to vector<128x1xf32>
    %137 = arith.divf %135, %136 : vector<128x1xf32>
    %138 = arith.mulf %132, %132 : vector<128x1xf32>
    %139 = arith.subf %137, %138 : vector<128x1xf32>
    %cst_53 = arith.constant 0.000000e+00 : f32
    %140 = vector.broadcast %cst_53 : f32 to vector<128x1xf32>
    %141 = arith.maximumf %139, %140 : vector<128x1xf32>
    %142 = vector.broadcast %132 : vector<128x1xf32> to vector<128x128xf32>
    %143 = arith.subf %125, %142 : vector<128x128xf32>
    %cst_54 = arith.constant 9.99999974E-6 : f32
    %144 = vector.broadcast %cst_54 : f32 to vector<128x1xf32>
    %145 = arith.addf %141, %144 : vector<128x1xf32>
    %146 = math.rsqrt %145 : vector<128x1xf32>
    %147 = vector.broadcast %146 : vector<128x1xf32> to vector<128x128xf32>
    %148 = arith.mulf %143, %147 : vector<128x128xf32>
    %149 = vector.broadcast %127 : vector<1x128xf32> to vector<128x128xf32>
    %150 = arith.mulf %148, %149 : vector<128x128xf32>
    %151 = vector.broadcast %128 : vector<1x128xf32> to vector<128x128xf32>
    %152 = arith.addf %150, %151 : vector<128x128xf32>
    %cst_55 = arith.constant 0.000000e+00 : f32
    %153 = vector.broadcast %cst_55 : f32 to vector<128x128xf32>
    %154 = arith.cmpf oge, %152, %153 : vector<128x128xf32>
    %cst_56 = arith.constant 1.000000e-01 : f32
    %155 = vector.broadcast %cst_56 : f32 to vector<128x128xf32>
    %156 = arith.mulf %155, %152 : vector<128x128xf32>
    %157 = arith.select %154, %152, %156 : vector<128x128xi1>, vector<128x128xf32>
    %158 = arith.addf %157, %126 : vector<128x128xf32>
    %159 = arith.truncf %158 : vector<128x128xf32> to vector<128x128xbf16>
    %c0_57 = arith.constant 0 : index
    %c0_58 = arith.constant 0 : index
    %160 = vector.load %arg6[%c0_57, %c0_58] : memref<128x128xbf16, #tpu.memory_space<vmem>>, vector<128x128xbf16>
    %cst_59 = arith.constant dense<0.000000e+00> : vector<128x128xf32>
    %161 = tpu.matmul %159, %160, %cst_59 {dimension_numbers = #tpu.dot_dimension_numbers<[1], [0], [0], [1], [0, 0, 1, 1], [], []>} : vector<128x128xbf16>, vector<128x128xbf16>, vector<128x128xf32> -> vector<128x128xf32>
    %c12 = arith.constant 12 : index
    %c0_60 = arith.constant 0 : index
    %162 = vector.load %arg7[%c12, %c0_60] : memref<17x512xf32, #tpu.memory_space<vmem>>, vector<1x128xf32>
    %163 = vector.broadcast %162 : vector<1x128xf32> to vector<128x128xf32>
    %164 = arith.addf %161, %163 : vector<128x128xf32>
    %c13 = arith.constant 13 : index
    %c0_61 = arith.constant 0 : index
    %165 = vector.load %arg7[%c13, %c0_61] : memref<17x512xf32, #tpu.memory_space<vmem>>, vector<1x128xf32>
    %c14 = arith.constant 14 : index
    %c0_62 = arith.constant 0 : index
    %166 = vector.load %arg7[%c14, %c0_62] : memref<17x512xf32, #tpu.memory_space<vmem>>, vector<1x128xf32>
    %c15 = arith.constant 15 : index
    %c0_63 = arith.constant 0 : index
    %167 = vector.load %arg7[%c15, %c0_63] : memref<17x512xf32, #tpu.memory_space<vmem>>, vector<1x128xf32>
    %c16 = arith.constant 16 : index
    %c0_64 = arith.constant 0 : index
    %168 = vector.load %arg7[%c16, %c0_64] : memref<17x512xf32, #tpu.memory_space<vmem>>, vector<1x128xf32>
    %cst_65 = arith.constant 0.00999999977 : f32
    %169 = vector.broadcast %cst_65 : f32 to vector<1x128xf32>
    %170 = arith.cmpf ogt, %167, %169 : vector<1x128xf32>
    %171 = arith.negf %164 : vector<128x128xf32>
    %172 = math.exp %171 : vector<128x128xf32>
    %cst_66 = arith.constant 1.000000e+00 : f32
    %173 = vector.broadcast %cst_66 : f32 to vector<128x128xf32>
    %174 = arith.addf %173, %172 : vector<128x128xf32>
    %175 = arith.divf %173, %174 : vector<128x128xf32>
    %176 = vector.broadcast %167 : vector<1x128xf32> to vector<128x128xf32>
    %177 = arith.mulf %176, %175 : vector<128x128xf32>
    %178 = vector.broadcast %165 : vector<1x128xf32> to vector<128x128xf32>
    %179 = arith.addf %178, %177 : vector<128x128xf32>
    %cst_67 = arith.constant 0.000000e+00 : f32
    %180 = vector.broadcast %cst_67 : f32 to vector<128x128xf32>
    %181 = arith.maximumf %164, %180 : vector<128x128xf32>
    %182 = math.absf %164 : vector<128x128xf32>
    %cst_68 = arith.constant 0.000000e+00 : f32
    %183 = vector.broadcast %cst_68 : f32 to vector<128x128xf32>
    %184 = arith.subf %183, %182 : vector<128x128xf32>
    %185 = math.exp %184 : vector<128x128xf32>
    %cst_69 = arith.constant 1.000000e+00 : f32
    %186 = vector.broadcast %cst_69 : f32 to vector<128x128xf32>
    %187 = arith.addf %186, %185 : vector<128x128xf32>
    %188 = math.log %187 : vector<128x128xf32>
    %189 = arith.addf %181, %188 : vector<128x128xf32>
    %190 = vector.broadcast %168 : vector<1x128xf32> to vector<128x128xf32>
    %191 = arith.mulf %189, %190 : vector<128x128xf32>
    %192 = vector.broadcast %165 : vector<1x128xf32> to vector<128x128xf32>
    %193 = arith.addf %192, %191 : vector<128x128xf32>
    %194 = vector.shape_cast %170 : vector<1x128xi1> to vector<1x128xi1>
    %195 = vector.broadcast %194 : vector<1x128xi1> to vector<128x128xi1>
    %196 = arith.select %195, %193, %179 : vector<128x128xi1>, vector<128x128xf32>
    %197 = vector.broadcast %166 : vector<1x128xf32> to vector<128x128xf32>
    %198 = arith.minimumf %196, %197 : vector<128x128xf32>
    %199 = vector.broadcast %165 : vector<1x128xf32> to vector<128x128xf32>
    %200 = arith.maximumf %198, %199 : vector<128x128xf32>
    %c0_70 = arith.constant 0 : index
    %c0_71 = arith.constant 0 : index
    %201 = vector.load %arg8[%c0_70, %c0_71] : memref<128x128xf32, #tpu.memory_space<vmem>>, vector<128x128xf32>
    tpu.vector_store %arg8[%c0_70, %c0_71], %200 {strides = array<i32>} : memref<128x128xf32, #tpu.memory_space<vmem>>, vector<128x128xf32>,
    return
  }
  func.func @transform_0(%arg0: i32) -> (i32, i32) {
    %c0_i32 = arith.constant 0 : i32
    %c0_i32_0 = arith.constant 0 : i32
    return %arg0, %c0_i32 : i32, i32
  }
  func.func @transform_1(%arg0: i32) -> (i32, i32) {
    %c0_i32 = arith.constant 0 : i32
    %c0_i32_0 = arith.constant 0 : i32
    %c0_i32_1 = arith.constant 0 : i32
    return %c0_i32, %c0_i32_0 : i32, i32
  }
  func.func @transform_2(%arg0: i32) -> (i32, i32) {
    %c0_i32 = arith.constant 0 : i32
    %c0_i32_0 = arith.constant 0 : i32
    %c0_i32_1 = arith.constant 0 : i32
    return %c0_i32, %c0_i32_0 : i32, i32
  }
  func.func @transform_3(%arg0: i32) -> (i32, i32) {
    %c0_i32 = arith.constant 0 : i32
    %c0_i32_0 = arith.constant 0 : i32
    %c0_i32_1 = arith.constant 0 : i32
    return %c0_i32, %c0_i32_0 : i32, i32
  }
  func.func @transform_4(%arg0: i32) -> (i32, i32) {
    %c0_i32 = arith.constant 0 : i32
    %c0_i32_0 = arith.constant 0 : i32
    %c0_i32_1 = arith.constant 0 : i32
    return %c0_i32, %c0_i32_0 : i32, i32
  }
  func.func @transform_5(%arg0: i32) -> (i32, i32) {
    %c0_i32 = arith.constant 0 : i32
    %c0_i32_0 = arith.constant 0 : i32
    %c0_i32_1 = arith.constant 0 : i32
    return %c0_i32, %c0_i32_0 : i32, i32
  }
  func.func @transform_6(%arg0: i32) -> (i32, i32) {
    %c0_i32 = arith.constant 0 : i32
    %c0_i32_0 = arith.constant 0 : i32
    %c0_i32_1 = arith.constant 0 : i32
    return %c0_i32, %c0_i32_0 : i32, i32
  }
  func.func @transform_7(%arg0: i32) -> (i32, i32) {
    %c0_i32 = arith.constant 0 : i32
    %c0_i32_0 = arith.constant 0 : i32
    return %arg0, %c0_i32 : i32, i32
  }
}

</mosaic_0001>

<bundles_post_ra>
// kernel: tpu_custom_call.1
= control target key start
LH: loop header
LB: loop body
LE: loop exit
PB: predicated region body
PF: predicated region fallthrough
CT: control target
= control target key end

     0   :  { %12 = vsyncpa [#allocation3], 0  ;;  %s7416_s0 = inlined_call_operand.vmem [shape: f32[512,16], index: 0, kind: input, shape index: {}]   ;;  %s7417_s1 = inlined_call_operand.hbm [shape: bf16[16,256], index: 1, kind: input, shape index: {}]   ;;  %s7418_s2 = inlined_call_operand.vmem [shape: bf16[128,512], index: 2, kind: input, shape index: {}]   ;;  %s7419_s3 = inlined_call_operand.vmem [shape: bf16[256,256], index: 3, kind: input, shape index: {}]   ;;  %s7420_s4 = inlined_call_operand.hbm [shape: bf16[256,256], index: 4, kind: input, shape index: {}]   ;;  %s7421_s5 = inlined_call_operand.vmem [shape: bf16[128,128], index: 5, kind: input, shape index: {}]   ;;  %s7422_s6 = inlined_call_operand.hbm [shape: f32[17,512], index: 6, kind: input, shape index: {}]   ;;  %s7423_s7 = inlined_call_operand.hbm [shape: f32[512,128], index: 7, kind: output, shape index: {}]  }
   0x1   :  { %13 = vsyncpa [#allocation6], 0 }
   0x2   :  { %14 = vsyncpa [#allocation4], 0 }
   0x3   :  { %16 = vsyncpa [#allocation4 + $0x1], 0  ;;  %s4854_s24 = smov 0   ;;  %s4856_s25 = smov 0  }
   0x4   :  { %s4858_s26 = smov 0   ;;  %s4860_s27 = smov 0  }
   0x5 LB: > { %s4875_s28 = sadd.s32 4294967295, %s4801_s27   ;;  %s3970_s29 = sadd.s32 4294967294, %s4801_s27   ;;  %s4801_s27 = sphi %s4860_s27, %s7675_s27   ;;  %s4797_s26 = sphi %s4858_s26, %s7674_s26   ;;  %s4793_s25 = sphi %s4856_s25, %s7673_s25   ;;  %s4789_s24 = sphi %s4854_s24, %s7672_s24  }
   0x6   : > { %s4879_s30 = sadd.s32 1, %s4801_s27   ;;  %s181_s8 = sadd.s32 1, %s4797_s26 }
   0x7   : > { %s178_s9 = ssub.s32 %s4801_s27, %s4879_s30  ;;  %p191_p0 = scmp.ne.s32.totalorder %s4797_s26, %s4793_s25 }
   0x8   : > { %p179_p1 = scmp.eq.s32.totalorder %s178_s9, 0  ;;  %p192_p2 = scmp.eq.s32.totalorder %s4875_s28, 3 }
   0x9   : > { %p197_p3 = scmp.ne.s32.totalorder %s4793_s25, %s4789_s24  ;;  %p198_p4 = scmp.eq.s32.totalorder %s3970_s29, 3 }
   0xa   : > { %s4890_s10 = scalar_select %p179_p1, %s4797_s26, %s181_s8  }
   0xb   : > { %p4892_p5 = por %p192_p2, %p191_p0  ;;  %p4896_p6 = por %p198_p4, %p197_p3 }
   0xc   : > { %p3971_p7 = scmp.ge.s32.totalorder %s4801_s27, 1  ;;  %p205_p8 = scmp.lt.s32.totalorder %s4801_s27, 5 }
   0xd   : > { %s7494_s11 = scalar_select %p4892_p5, 1, 0 }
   0xe   : > { %s7495_s12 = scalar_select %p4896_p6, 1, 0 }
   0xf   : > { %p7424_p9 = scmp.eq.s32.totalorder %s4875_s28, 0  ;;  %p4903_p10 = pnand %p3971_p7, %p205_p8 }
  0x10   : > { %s4803_s14 = smov [#allocation5]   ;;  %s4804_s17 = smov [#allocation2]  }
  0x11   : > { %p4181_p11 = pneg %p4903_p10  ;;  %s236_s15 = sshll.u32 %s4803_s14, 4  ;;  %s237_s15 = int_to_ptr.vmem [resolvable:$true] %s236_s15 }
  0x12   : > { %s217_s18 = sshll.u32 %s4804_s17, 4  ;;  %s4805_s19 = smov [#allocation7]   ;;  %s218_s18 = int_to_ptr.vmem [resolvable:$true] %s217_s18 }
  0x13   : > { %p4911_p12 = pnand %p7424_p9, %p4181_p11  ;;  %s252_s20 = sshll.u32 %s4805_s19, 4  ;;  %s253_s20 = int_to_ptr.vmem [resolvable:$true] %s252_s20 }
  0x14   : > { %s4666_s21 = scalar_lea.vmem %s237_s15, 4096  ;;  %p4674_p3 = scmp.lt.s32.totalorder %s237_s15, %s237_s15 }
  0x15   : > { %p4657_p13 = pneg %p4911_p12  ;;  %p4667_p0 = scmp.ne.s32.totalorder %s237_s15, %s4666_s21 }
  0x16   : > { %p4675_p4 = scmp.lt.s32.totalorder %s4666_s21, %s4666_s21 }
  0x17   : > { %p4669_p1 = pnand %p4667_p0, %p4657_p13 }
  0x18   : > { %p4676_p7 = por %p4675_p4, %p4674_p3 }
  0x19   : > { %p4670_p2 = pneg %p4669_p1 }
  0x1b   : > { %p4677_p8 = pnand %p4676_p7, %p4670_p2 }
  0x1d   : > { %4680 = shalt.err (!%p4677_p8)
}
  0x1e   : > { %s4806_s22 = smov 128   ;;  %s4807_s23 = smov 8  }
  0x1f   : > { %4187 = dma.hbm_to_vmem [thread:$0]  (!%p4911_p12), %s7420_s4, 4096, %s237_s15, [#allocation6], %s4806_s22, %s4806_s22, %s4807_s23  }
  0x20   : > { %s4692_s9 = scalar_lea.vmem %s218_s18, 256  ;;  %p4700_p9 = scmp.lt.s32.totalorder %s218_s18, %s218_s18 }
  0x21   : > { %p4693_p11 = scmp.ne.s32.totalorder %s218_s18, %s4692_s9  ;;  %p4701_p6 = scmp.lt.s32.totalorder %s4692_s9, %s4692_s9 }
  0x23   : > { %p4695_p0 = pnand %p4693_p11, %p4657_p13  ;;  %p4702_p3 = por %p4701_p6, %p4700_p9 }
  0x25   : > { %p4696_p1 = pneg %p4695_p0 }
  0x27   : > { %p4703_p2 = pnand %p4702_p3, %p4696_p1 }
  0x29   : > { %4706 = shalt.err (!%p4703_p2)
}
  0x2a   : > { %4184 = dma.hbm_to_vmem [thread:$0]  (!%p4911_p12), %s7417_s1, 256, %s218_s18, [#allocation3], %s4806_s22, %s4806_s22, %s4807_s23  }
  0x2b   : > { %s4718_s15 = scalar_lea.vmem %s253_s20, 1536  ;;  %p4726_p11 = scmp.lt.s32.totalorder %s253_s20, %s253_s20 }
  0x2c   : > { %p4719_p4 = scmp.ne.s32.totalorder %s253_s20, %s4718_s15  ;;  %p4727_p0 = scmp.lt.s32.totalorder %s4718_s15, %s4718_s15 }
  0x2e   : > { %p4721_p7 = pnand %p4719_p4, %p4657_p13  ;;  %p4728_p5 = por %p4727_p0, %p4726_p11 }
  0x30   : > { %p4722_p8 = pneg %p4721_p7 }
  0x32   : > { %p4729_p6 = pnand %p4728_p5, %p4722_p8 }
  0x34   : > { %4732 = shalt.err (!%p4729_p6)
}
  0x35   : > { %s4808_s19 = smov 512   ;;  %s4809_s21 = smov 32  }
  0x36   : > { %4190 = dma.hbm_to_vmem [thread:$0]  (!%p4911_p12), %s7422_s6, 1536, %s253_s20, [#allocation6], %s4808_s19, %s4808_s19, %s4809_s21  }
  0x37   : > { %277 = sbr.rel (%p4903_p10) target bundleno = 1956 (0x7a4), region = 48 }
  0x3c   : > { %p7498_p9 = scmp.eq.s32.totalorder %s4875_s28, 0 }
  0x3e   : > { %4776 = dma.done.wait (%p7498_p9), [#allocation3], 256   ;;  %p7499_p13 = pmov %p7498_p9 }
  0x3f   : > { %p7500_p5 = pmov %p7498_p9 }
  0x40   : > { %4778 = vsyncadd (%p7499_p13), [#allocation3], 4294967040 }
  0x41   : > { %4780 = dma.done.wait (%p7500_p5), [#allocation6], 5632   ;;  %p7501_p1 = pmov %p7500_p5 }
  0x42   : > { %s3981_s16 = sshll.u32 %s4875_s28, 4  ;;  %v4810_v0 = vmov 0   ;;  %v4244_v1 = vld [vmem:[#allocation2 + $0x4] ss:$8 sps:$4 sm:$0xff]   ;;  %v4246_v2 = vld [vmem:[#allocation2] ss:$8 sps:$4 sm:$0xff]   ;;  %v353_v27 = vlaneseq }
  0x43   : > { %4782 = vsyncadd (%p7501_p1), [#allocation6], 4294961664  ;;  %430 = vmatprep.mubr.bf16.mxu0 %v4810_v0  ;;  %p318_p12 = scmp.lt.s32.totalorder %s3981_s16, 63  ;;  %1089 = vmatprep.mubr.bf16.mxu1 %v4810_v0  ;;  %vm373_vm0 = vcmask 130048   ;;  %v4247_v59 = vld [vmem:[%s7418_s2 + $0xe4] ss:$16 sps:$4 sm:$0xff]  }
  0x44   : > { %412 = vmatprep.subr.bf16.mxu0 %v4244_v1  ;;  %v4991_v28 = vshrl.u32 %v353_v27, 7  ;;  %v351_v30 = vld [vmem:[#allocation7] ss:$8 sm:$0x3]  ;;  %v4251_v60 = vld [vmem:[%s7418_s2 + $0xec] ss:$16 sps:$4 sm:$0xff]   ;;  %1057 = vmatprep.subr.bf16.mxu1 %v4247_v59 }
  0x45   : > { %s7677_s16 = smov (!%p318_p12, %s3981_s16), 63  ;;  %413 = vmatpush1.bf16.msra.mxu0 %v4246_v2  ;;  %v4249_v63 = vld [vmem:[%s7418_s2 + $0xe8] ss:$16 sps:$4 sm:$0xff]   ;;  %v4252_v1 = vld [vmem:[%s7418_s2 + $0xe0] ss:$16 sps:$4 sm:$0xff]   ;;  %s314_s15 = sand.u32 1, %s4793_s25  }
  0x46   : > { %s3982_s13 = sshll.u32 %s7677_s16, 3  ;;  %v4994_v29 = vsub.s32 0, %v4991_v28  ;;  %v4997_v31 = vsub.s32 1, %v4991_v28  ;;  %1170 = vmatprep.subr.bf16.mxu0 %v4251_v60  ;;  %1058 = vmatpush1.bf16.msra.mxu1 %v4252_v1  ;;  %v4267_v27 = vld [vmem:[%s7418_s2 + $0x88] ss:$16 sps:$4 sm:$0xff]   ;;  %s3980_s19 = sshll.u32 %s314_s15, 7 }
  0x47   : > { %s4957_s22 = scalar_lea.vmem %s7416_s0, %s3982_s13  ;;  %v4279_v60 = vld [vmem:[%s7418_s2 + $0x48] ss:$16 sps:$4 sm:$0xff]   ;;  %s7188_s21 = scalar_lea.vmem [#allocation8], %s3980_s19 }
  0x48   : > { %v325_v3 = vld [vmem:[%s4957_s22] sm:$0xff]  ;;  %v326_v4 = vld [vmem:[%s4957_s22 + $0x8] sm:$0xff]  ;;  %v327_v6 = vld [vmem:[%s4957_s22 + $0x10] sm:$0xff]  ;;  %7502 = vst [vmem:[#allocation12_spill] sm:$0xff] %v4994_v29  ;;  %v5000_v32 = vrot.slane %v351_v30, %v4994_v29  ;;  %v5003_v33 = vrot.slane %v351_v30, %v4997_v31  ;;  %s4118_s29 = sshll.u32 %s4875_s28, 11  ;;  %s3877_s8 = sshll.u32 %s7188_s21, 4  ;;  %s7370_s8 = int_to_ptr.vmem [resolvable:$true] %s3877_s8 }
  0x49   : > { %v341_v5 = vpack.c.bf16 %v326_v4, %v325_v3  ;;  %v328_v7 = vld [vmem:[%s4957_s22 + $0x18] sm:$0xff]  ;;  %v329_v9 = vld [vmem:[%s4957_s22 + $0x20] sm:$0xff]  ;;  %v330_v10 = vld [vmem:[%s4957_s22 + $0x28] sm:$0xff]  ;;  %7503 = vst [vmem:[#allocation13_spill] sm:$0xff] %v4997_v31  ;;  %s7368_s18 = scalar_lea.hbm %s7423_s7, %s4118_s29  ;;  %s7376_s28 = scalar_lea.sflag [#allocation4], %s314_s15 }
  0x4a   : > { %v342_v8 = vpack.c.bf16 %v328_v7, %v327_v6  ;;  %v343_v11 = vpack.c.bf16 %v330_v10, %v329_v9  ;;  %v331_v12 = vld [vmem:[%s4957_s22 + $0x30] sm:$0xff]  ;;  %v332_v13 = vld [vmem:[%s4957_s22 + $0x38] sm:$0xff]  ;;  %v333_v15 = vld [vmem:[%s4957_s22 + $0x40] sm:$0xff]  ;;  %s4733_s20 = scalar_lea.vmem %s7370_s8, 2048  ;;  %p7670_p3 = scmp.ne.s32.totalorder %s7494_s11, 0 }
  0x4b   : > { %3985 = vmatmul.mubr.msk.bf16.vlgmr.msra.gmra.mxu0 %vm373_vm0, %v341_v5  ;;  %v344_v14 = vpack.c.bf16 %v332_v13, %v331_v12  ;;  %v334_v16 = vld [vmem:[%s4957_s22 + $0x48] sm:$0xff]  ;;  %v335_v18 = vld [vmem:[%s4957_s22 + $0x50] sm:$0xff]  ;;  %v336_v19 = vld [vmem:[%s4957_s22 + $0x58] sm:$0xff]  ;;  %p4734_p10 = scmp.ne.s32.totalorder %s7370_s8, %s4733_s20 }
  0x4c   : > { %440 = vmatprep.mubr.bf16.mxu0 %v4810_v0  ;;  %v345_v17 = vpack.c.bf16 %v334_v16, %v333_v15  ;;  %v346_v20 = vpack.c.bf16 %v336_v19, %v335_v18  ;;  %v337_v21 = vld [vmem:[%s4957_s22 + $0x60] sm:$0xff]  ;;  %v338_v22 = vld [vmem:[%s4957_s22 + $0x68] sm:$0xff]  ;;  %v339_v24 = vld [vmem:[%s4957_s22 + $0x70] sm:$0xff]  ;;  %1171 = vmatpush1.bf16.msra.mxu0 %v4249_v63 }
  0x4d   : > { %v347_v23 = vpack.c.bf16 %v338_v22, %v337_v21  ;;  %v340_v25 = vld [vmem:[%s4957_s22 + $0x78] sm:$0xff]  ;;  %v4253_v5 = vld [vmem:[%s7418_s2 + $0xc4] ss:$16 sps:$4 sm:$0xff]   ;;  %v4258_v10 = vld [vmem:[%s7418_s2 + $0xc0] ss:$16 sps:$4 sm:$0xff]   ;;  %p4735_p2 = pnand %p4734_p10, %p7670_p3  ;;  %s4811_s22 = smov [#allocation8]  }
  0x4e   : > { %v348_v26 = vpack.c.bf16 %v340_v25, %v339_v24  ;;  %v4257_v6 = vld [vmem:[%s7418_s2 + $0xcc] ss:$16 sps:$4 sm:$0xff]   ;;  %v4255_v9 = vld [vmem:[%s7418_s2 + $0xc8] ss:$16 sps:$4 sm:$0xff]   ;;  %1059 = vmatprep.subr.bf16.mxu1 %v4253_v5  ;;  %v4264_v19 = vld [vmem:[%s7418_s2 + $0xa0] ss:$16 sps:$4 sm:$0xff]  }
  0x4f   : > { %1172 = vmatprep.subr.bf16.mxu0 %v4257_v6  ;;  %1060 = vmatpush1.bf16.msra.mxu1 %v4258_v10  ;;  %v4263_v15 = vld [vmem:[%s7418_s2 + $0xac] ss:$16 sps:$4 sm:$0xff]   ;;  %v4261_v18 = vld [vmem:[%s7418_s2 + $0xa8] ss:$16 sps:$4 sm:$0xff]   ;;  %v4270_v30 = vld [vmem:[%s7418_s2 + $0x80] ss:$16 sps:$4 sm:$0xff]   ;;  %p4736_p4 = pneg %p4735_p2 }
  0x50   : > { %1173 = vmatpush1.bf16.msra.mxu0 %v4255_v9  ;;  %v4269_v24 = vld [vmem:[%s7418_s2 + $0x8c] ss:$16 sps:$4 sm:$0xff]   ;;  %v4285_v9 = vld [vmem:[%s7418_s2 + $0x28] ss:$16 sps:$4 sm:$0xff]   ;;  %v4288_v10 = vld [vmem:[%s7418_s2 + $0x20] ss:$16 sps:$4 sm:$0xff]  }
  0x51   : > { %1174 = vmatprep.subr.bf16.mxu0 %v4263_v15  ;;  %v4287_v5 = vld [vmem:[%s7418_s2 + $0x2c] ss:$16 sps:$4 sm:$0xff]   ;;  %v4289_v15 = vld [vmem:[%s7418_s2 + $0x4] ss:$16 sps:$4 sm:$0xff]   ;;  %s4737_s23 = sshll.u32 %s4811_s22, 4  ;;  %s4738_s23 = int_to_ptr.vmem [resolvable:$false] %s4737_s23 }
  0x52   : > { %s4739_s9 = scalar_lea.vmem %s4738_s23, 4096  ;;  %p4740_p7 = scmp.lt.s32.totalorder %s7370_s8, %s4738_s23 }
  0x53   : > { %3986 = vmatmul.mubr.msk.bf16.gmra.mxu0 %vm373_vm0, %v342_v8  ;;  %p4741_p8 = scmp.lt.s32.totalorder %s4739_s9, %s4733_s20 }
  0x54   : > { %450 = vmatprep.mubr.bf16.mxu0 %v4810_v0  ;;  %1175 = vmatpush1.bf16.msra.mxu0 %v4261_v18 }
  0x55   : > { %1176 = vmatprep.subr.bf16.mxu0 %v4269_v24  ;;  %p4742_p11 = por %p4741_p8, %p4740_p7 }
  0x57   : > { %p4743_p0 = pnand %p4742_p11, %p4736_p4 }
  0x58   : > { %1177 = vmatpush1.bf16.msra.mxu0 %v4267_v27 }
  0x5b   : > { %3987 = vmatmul.mubr.msk.bf16.gmra.mxu0 %vm373_vm0, %v343_v11 }
  0x5c   : > { %460 = vmatprep.mubr.bf16.mxu0 %v4810_v0 }
  0x63   : > { %3988 = vmatmul.mubr.msk.bf16.gmra.mxu0 %vm373_vm0, %v344_v14  ;;  %v4259_v14 = vld [vmem:[%s7418_s2 + $0xa4] ss:$16 sps:$4 sm:$0xff]  }
  0x64   : > { %470 = vmatprep.mubr.bf16.mxu0 %v4810_v0  ;;  %1061 = vmatprep.subr.bf16.mxu1 %v4259_v14 }
  0x65   : > { %1062 = vmatpush1.bf16.msra.mxu1 %v4264_v19 }
  0x6b   : > { %3989 = vmatmul.mubr.msk.bf16.gmra.mxu0 %vm373_vm0, %v345_v17 }
  0x6c   : > { %480 = vmatprep.mubr.bf16.mxu0 %v4810_v0 }
  0x73   : > { %3990 = vmatmul.mubr.msk.bf16.gmra.mxu0 %vm373_vm0, %v346_v20 }
  0x74   : > { %490 = vmatprep.mubr.bf16.mxu0 %v4810_v0 }
  0x7b   : > { %3991 = vmatmul.mubr.msk.bf16.gmra.mxu0 %vm373_vm0, %v347_v23  ;;  %v4265_v23 = vld [vmem:[%s7418_s2 + $0x84] ss:$16 sps:$4 sm:$0xff]  }
  0x7c   : > { %500 = vmatprep.mubr.bf16.mxu0 %v4810_v0  ;;  %1063 = vmatprep.subr.bf16.mxu1 %v4265_v23 }
  0x7d   : > { %1064 = vmatpush1.bf16.msra.mxu1 %v4270_v30 }
  0x83   : > { %3992 = vmatmul.mubr.msk.bf16.gmra.mxu0 %vm373_vm0, %v348_v26 }
  0x84   : > { %1202 = vmatprep.mubr.bf16.mxu0 %v4810_v0 }
 0x10b   : > { %v432_v34 = vpop.f32.mrf.mxu0 }
 0x10c   : > { %v5006_v35 = vadd.f32 %v432_v34, %v5000_v32 }
 0x10d   : > { %v434_v36 = vpop.f32.mrf.mxu0 }
 0x10e   : > { %v5009_v37 = vadd.f32 %v434_v36, %v5003_v33  ;;  %513 = vadd.xlane.f32.xlu0 %v5006_v35  ;;  %v562_v38 = vmul.f32 %v5006_v35, %v5006_v35 }
 0x10f   : > { %v436_v39 = vpop.f32.mrf.mxu0 }
 0x110   : > { %v5015_v40 = vadd.f32 %v436_v39, %v5000_v32  ;;  %578 = vadd.xlane.f32.xlu1 %v562_v38  ;;  %v4271_v39 = vld [vmem:[%s7418_s2 + $0x64] ss:$16 sps:$4 sm:$0xff]  }
 0x111   : > { %v438_v41 = vpop.f32.mrf.mxu0  ;;  %1065 = vmatprep.subr.bf16.mxu1 %v4271_v39 }
 0x112   : > { %v5018_v42 = vadd.f32 %v438_v41, %v5003_v33  ;;  %515 = vadd.xlane.f32.xlu0 %v5015_v40  ;;  %v563_v43 = vmul.f32 %v5015_v40, %v5015_v40  ;;  %v4275_v41 = vld [vmem:[%s7418_s2 + $0x6c] ss:$16 sps:$4 sm:$0xff]  }
 0x113   : > { %v442_v44 = vpop.f32.mrf.mxu0  ;;  %1178 = vmatprep.subr.bf16.mxu0 %v4275_v41 }
 0x114   : > { %v5024_v45 = vadd.f32 %v442_v44, %v5000_v32  ;;  %580 = vadd.xlane.f32.xlu1 %v563_v43 }
 0x115   : > { %v444_v46 = vpop.f32.mrf.mxu0 }
 0x116   : > { %v5027_v47 = vadd.f32 %v444_v46, %v5003_v33  ;;  %517 = vadd.xlane.f32.xlu0 %v5024_v45  ;;  %v564_v50 = vmul.f32 %v5024_v45, %v5024_v45  ;;  %v4273_v46 = vld [vmem:[%s7418_s2 + $0x68] ss:$16 sps:$4 sm:$0xff]  }
 0x117   : > { %v446_v48 = vpop.f32.mrf.mxu0  ;;  %1179 = vmatpush1.bf16.msra.mxu0 %v4273_v46 }
 0x118   : > { %v5031_v49 = vadd.f32 %v446_v48, %v5000_v32  ;;  %v4276_v48 = vld [vmem:[%s7418_s2 + $0x60] ss:$16 sps:$4 sm:$0xff]  }
 0x119   : > { %v448_v51 = vpop.f32.mrf.mxu0  ;;  %1066 = vmatpush1.bf16.msra.mxu1 %v4276_v48 }
 0x11a   : > { %v5036_v52 = vadd.f32 %v448_v51, %v5003_v33  ;;  %582 = vadd.xlane.f32.xlu0 %v564_v50  ;;  %519 = vadd.xlane.f32.xlu1 %v5031_v49  ;;  %v565_v55 = vmul.f32 %v5031_v49, %v5031_v49 }
 0x11b   : > { %v452_v53 = vpop.f32.mrf.mxu0 }
 0x11c   : > { %v5040_v54 = vadd.f32 %v452_v53, %v5000_v32 }
 0x11d   : > { %v454_v56 = vpop.f32.mrf.mxu0 }
 0x11e   : > { %v5045_v57 = vadd.f32 %v454_v56, %v5003_v33  ;;  %521 = vadd.xlane.f32.xlu0 %v5040_v54  ;;  %584 = vadd.xlane.f32.xlu1 %v565_v55  ;;  %v566_v62 = vmul.f32 %v5040_v54, %v5040_v54  ;;  %v4277_v55 = vld [vmem:[%s7418_s2 + $0x44] ss:$16 sps:$4 sm:$0xff]   ;;  %v4281_v56 = vld [vmem:[%s7418_s2 + $0x4c] ss:$16 sps:$4 sm:$0xff]  }
 0x11f   : > { %v456_v58 = vpop.f32.mrf.mxu0  ;;  %1067 = vmatprep.subr.bf16.mxu1 %v4277_v55  ;;  %1180 = vmatprep.subr.bf16.mxu0 %v4281_v56 }
 0x120   : > { %v5055_v61 = vadd.f32 %v456_v58, %v5000_v32  ;;  %1181 = vmatpush1.bf16.msra.mxu0 %v4279_v60 }
 0x121   : > { %v458_v2 = vpop.f32.mrf.mxu0  ;;  %1182 = vmatprep.subr.bf16.mxu0 %v4287_v5 }
 0x122   : > { %v5066_v3 = vadd.f32 %v458_v2, %v5003_v33  ;;  %586 = vadd.xlane.f32.xlu0 %v566_v62  ;;  %523 = vadd.xlane.f32.xlu1 %v5055_v61  ;;  %v567_v8 = vmul.f32 %v5055_v61, %v5055_v61  ;;  %v4282_v62 = vld [vmem:[%s7418_s2 + $0x40] ss:$16 sps:$4 sm:$0xff]  }
 0x123   : > { %v462_v4 = vpop.f32.mrf.mxu0  ;;  %1068 = vmatpush1.bf16.msra.mxu1 %v4282_v62 }
 0x124   : > { %v5076_v7 = vadd.f32 %v462_v4, %v5000_v32  ;;  %v4283_v4 = vld [vmem:[%s7418_s2 + $0x24] ss:$16 sps:$4 sm:$0xff]   ;;  %1183 = vmatpush1.bf16.msra.mxu0 %v4285_v9 }
 0x125   : > { %v464_v11 = vpop.f32.mrf.mxu0  ;;  %1069 = vmatprep.subr.bf16.mxu1 %v4283_v4 }
 0x126   : > { %v5087_v12 = vadd.f32 %v464_v11, %v5003_v33  ;;  %525 = vadd.xlane.f32.xlu0 %v5076_v7  ;;  %588 = vadd.xlane.f32.xlu1 %v567_v8  ;;  %v568_v17 = vmul.f32 %v5076_v7, %v5076_v7 }
 0x127   : > { %v466_v13 = vpop.f32.mrf.mxu0  ;;  %1070 = vmatpush1.bf16.msra.mxu1 %v4288_v10 }
 0x128   : > { %v5097_v16 = vadd.f32 %v466_v13, %v5000_v32  ;;  %1071 = vmatprep.subr.bf16.mxu1 %v4289_v15 }
 0x129   : > { %v468_v20 = vpop.f32.mrf.mxu0 }
 0x12a   : > { %v5108_v21 = vadd.f32 %v468_v20, %v5003_v33  ;;  %590 = vadd.xlane.f32.xlu0 %v568_v17  ;;  %527 = vadd.xlane.f32.xlu1 %v5097_v16  ;;  %v569_v26 = vmul.f32 %v5097_v16, %v5097_v16  ;;  %v4293_v17 = vld [vmem:[%s7418_s2 + $0xc] ss:$16 sps:$4 sm:$0xff]   ;;  %v4291_v20 = vld [vmem:[%s7418_s2 + $0x8] ss:$16 sps:$4 sm:$0xff]  }
 0x12b   : > { %v472_v22 = vpop.f32.mrf.mxu0  ;;  %1184 = vmatprep.subr.bf16.mxu0 %v4293_v17 }
 0x12c   : > { %v5118_v25 = vadd.f32 %v472_v22, %v5000_v32  ;;  %v4294_v22 = vld [vmem:[%s7418_s2] ss:$16 sps:$4 sm:$0xff]   ;;  %1185 = vmatpush1.bf16.msra.mxu0 %v4291_v20 }
 0x12d   : > { %v474_v34 = vpop.f32.mrf.mxu0  ;;  %1072 = vmatpush1.bf16.msra.mxu1 %v4294_v22 }
 0x12e   : > { %v5129_v36 = vadd.f32 %v474_v34, %v5003_v33  ;;  %529 = vadd.xlane.f32.xlu0 %v5118_v25  ;;  %592 = vadd.xlane.f32.xlu1 %v569_v26  ;;  %v570_v44 = vmul.f32 %v5118_v25, %v5118_v25 }
 0x12f   : > { %v476_v38 = vpop.f32.mrf.mxu0 }
 0x130   : > { %v5139_v43 = vadd.f32 %v476_v38, %v5000_v32 }
 0x131   : > { %v478_v50 = vpop.f32.mrf.mxu0 }
 0x132   : > { %v5150_v51 = vadd.f32 %v478_v50, %v5003_v33  ;;  %594 = vadd.xlane.f32.xlu0 %v570_v44  ;;  %531 = vadd.xlane.f32.xlu1 %v5139_v43  ;;  %v571_v59 = vmul.f32 %v5139_v43, %v5139_v43 }
 0x133   : > { %v482_v53 = vpop.f32.mrf.mxu0 }
 0x134   : > { %v5160_v58 = vadd.f32 %v482_v53, %v5000_v32 }
 0x135   : > { %v484_v63 = vpop.f32.mrf.mxu0 }
 0x136   : > { %v5171_v1 = vadd.f32 %v484_v63, %v5003_v33  ;;  %533 = vadd.xlane.f32.xlu0 %v5160_v58  ;;  %596 = vadd.xlane.f32.xlu1 %v571_v59  ;;  %v572_v8 = vmul.f32 %v5160_v58, %v5160_v58 }
 0x137   : > { %v486_v2 = vpop.f32.mrf.mxu0 }
 0x138   : > { %v5181_v6 = vadd.f32 %v486_v2, %v5000_v32 }
 0x139   : > { %v488_v11 = vpop.f32.mrf.mxu0 }
 0x13a   : > { %v5192_v13 = vadd.f32 %v488_v11, %v5003_v33  ;;  %598 = vadd.xlane.f32.xlu0 %v572_v8  ;;  %535 = vadd.xlane.f32.xlu1 %v5181_v6  ;;  %v573_v19 = vmul.f32 %v5181_v6, %v5181_v6 }
 0x13b   : > { %v492_v14 = vpop.f32.mrf.mxu0 }
 0x13c   : > { %v5202_v18 = vadd.f32 %v492_v14, %v5000_v32 }
 0x13d   : > { %v494_v23 = vpop.f32.mrf.mxu0 }
 0x13e   : > { %v5213_v24 = vadd.f32 %v494_v23, %v5003_v33  ;;  %537 = vadd.xlane.f32.xlu0 %v5202_v18  ;;  %600 = vadd.xlane.f32.xlu1 %v573_v19  ;;  %v574_v30 = vmul.f32 %v5202_v18, %v5202_v18 }
 0x13f   : > { %v496_v26 = vpop.f32.mrf.mxu0 }
 0x140   : > { %v5217_v27 = vadd.f32 %v496_v26, %v5000_v32 }
 0x141   : > { %v498_v34 = vpop.f32.mrf.mxu0 }
 0x142   : > { %v5222_v38 = vadd.f32 %v498_v34, %v5003_v33  ;;  %602 = vadd.xlane.f32.xlu0 %v574_v30  ;;  %539 = vadd.xlane.f32.xlu1 %v5217_v27  ;;  %v575_v44 = vmul.f32 %v5217_v27, %v5217_v27 }
 0x143   : > { %v502_v39 = vpop.f32.mrf.mxu0 }
 0x144   : > { %v5226_v41 = vadd.f32 %v502_v39, %v5000_v32 }
 0x145   : > { %v504_v46 = vpop.f32.mrf.mxu0 }
 0x146   : > { %v5231_v48 = vadd.f32 %v504_v46, %v5003_v33  ;;  %541 = vadd.xlane.f32.xlu0 %v5226_v41  ;;  %604 = vadd.xlane.f32.xlu1 %v575_v44  ;;  %v576_v55 = vmul.f32 %v5226_v41, %v5226_v41 }
 0x147   : > { %v506_v50 = vpop.f32.mrf.mxu0 }
 0x148   : > { %v5235_v53 = vadd.f32 %v506_v50, %v5000_v32 }
 0x14a   : > { %606 = vadd.xlane.f32.xlu0 %v576_v55  ;;  %543 = vadd.xlane.f32.xlu1 %v5235_v53  ;;  %v577_v56 = vmul.f32 %v5235_v53, %v5235_v53 }
 0x14e   : > { %608 = vadd.xlane.f32.xlu1 %v577_v56 }
 0x197   : > { %v514_v59 = vpop.xlane.xlu0 %513 }
 0x198   : > { %v546_v60 = vmul.f32 0.0078125, %v514_v59 }
 0x199   : > { %v579_v62 = vpop.xlane.xlu1 %578 }
 0x19a   : > { %v626_v63 = vmul.f32 %v546_v60, %v546_v60  ;;  %v610_v2 = vmul.f32 0.0078125, %v579_v62 }
 0x19b   : > { %v516_v4 = vpop.xlane.xlu0 %515 }
 0x19c   : > { %v642_v5 = vsub.f32 %v610_v2, %v626_v63  ;;  %v547_v8 = vmul.f32 0.0078125, %v516_v4 }
 0x19d   : > { %v581_v32 = vpop.xlane.xlu1 %580 }
 0x19e   : > { %v658_v9 = vmax.f32 %v642_v5, 0.0  ;;  %v627_v10 = vmul.f32 %v547_v8, %v547_v8  ;;  %v611_v11 = vmul.f32 0.0078125, %v581_v32 }
 0x19f   : > { %v518_v14 = vpop.xlane.xlu0 %517 }
 0x1a0   : > { %v690_v15 = vadd.f32 1e-05, %v658_v9  ;;  %v643_v17 = vsub.f32 %v611_v11, %v627_v10  ;;  %v5242_v19 = vmul.f32 0.0078125, %v518_v14 }
 0x1a2   : > { %4399 = vrsqrt.f32 %v690_v15  ;;  %v659_v20 = vmax.f32 %v643_v17, 0.0  ;;  %v628_v30 = vmul.f32 %v5242_v19, %v5242_v19 }
 0x1a3   : > { %v583_v22 = vpop.xlane.xlu0 %582  ;;  %v520_v23 = vpop.xlane.xlu1 %519 }
 0x1a4   : > { %v691_v26 = vadd.f32 1e-05, %v659_v20  ;;  %v612_v34 = vmul.f32 0.0078125, %v583_v22  ;;  %v5246_v39 = vmul.f32 0.0078125, %v520_v23  ;;  %v674_v20 = vsub.f32 %v5006_v35, %v546_v60 }
 0x1a5   : > { %v675_v35 = vsub.f32 %v5015_v40, %v547_v8 }
 0x1a6   : > { %4401 = vrsqrt.f32 %v691_v26  ;;  %v644_v44 = vsub.f32 %v612_v34, %v628_v30  ;;  %v629_v56 = vmul.f32 %v5246_v39, %v5246_v39 }
 0x1a7   : > { %v522_v46 = vpop.xlane.xlu0 %521  ;;  %v585_v50 = vpop.xlane.xlu1 %584 }
 0x1a8   : > { %v660_v55 = vmax.f32 %v644_v44, 0.0  ;;  %v5250_v59 = vmul.f32 0.0078125, %v522_v46  ;;  %v613_v62 = vmul.f32 0.0078125, %v585_v50  ;;  %v5261_v46 = vld [vmem:[#allocation7 + $0x1] ss:$0 sm:$0xff] }
 0x1aa   : > { %v692_v63 = vadd.f32 1e-05, %v660_v55  ;;  %v645_v2 = vsub.f32 %v613_v62, %v629_v56  ;;  %v630_v4 = vmul.f32 %v5250_v59, %v5250_v59  ;;  %v5263_v62 = vld [vmem:[#allocation7 + $0x2] ss:$0 sm:$0xff] }
 0x1ab   : > { %v587_v5 = vpop.xlane.xlu0 %586  ;;  %v524_v32 = vpop.xlane.xlu1 %523 }
 0x1ac   : > { %4403 = vrsqrt.f32 %v692_v63  ;;  %v661_v9 = vmax.f32 %v645_v2, 0.0  ;;  %v614_v10 = vmul.f32 0.0078125, %v587_v5  ;;  %v5254_v11 = vmul.f32 0.0078125, %v524_v32 }
 0x1ae   : > { %v693_v14 = vadd.f32 1e-05, %v661_v9  ;;  %v646_v15 = vsub.f32 %v614_v10, %v630_v4  ;;  %v631_v22 = vmul.f32 %v5254_v11, %v5254_v11 }
 0x1af   : > { %v4400_v17 = vpop.eup %4399  ;;  %v526_v23 = vpop.xlane.xlu0 %525 }
 0x1b0   : > { %v589_v26 = vpop.xlane.xlu1 %588  ;;  %4405 = vrsqrt.f32 %v693_v14  ;;  %v662_v30 = vmax.f32 %v646_v15, 0.0  ;;  %v5259_v34 = vmul.f32 0.0078125, %v526_v23  ;;  %v722_v50 = vmul.f32 %v4400_v17, %v674_v20 }
 0x1b1   : > { %v615_v44 = vmul.f32 0.0078125, %v589_v26 }
 0x1b2   : > { %v694_v55 = vadd.f32 1e-05, %v662_v30  ;;  %v632_v60 = vmul.f32 %v5259_v34, %v5259_v34  ;;  %v738_v5 = vmul.f32 %v722_v50, %v5261_v46 }
 0x1b3   : > { %v647_v56 = vsub.f32 %v615_v44, %v631_v22  ;;  %v4402_v63 = vpop.eup %4401  ;;  %v591_v2 = vpop.xlane.xlu0 %590 }
 0x1b4   : > { %v528_v4 = vpop.xlane.xlu1 %527  ;;  %4407 = vrsqrt.f32 %v694_v55  ;;  %v616_v9 = vmul.f32 0.0078125, %v591_v2  ;;  %v723_v14 = vmul.f32 %v4402_v63, %v675_v35  ;;  %v754_v15 = vadd.f32 %v738_v5, %v5263_v62 }
 0x1b5   : > { %v663_v32 = vmax.f32 %v647_v56, 0.0  ;;  %v5269_v10 = vmul.f32 0.0078125, %v528_v4  ;;  %v676_v56 = vsub.f32 %v5024_v45, %v5242_v19  ;;  %v677_v45 = vsub.f32 %v5031_v49, %v5246_v39 }
 0x1b6   : > { %v648_v20 = vsub.f32 %v616_v9, %v632_v60  ;;  %v739_v23 = vmul.f32 %v723_v14, %v5261_v46  ;;  %vm770_vm1 = vcmp.ge.f32.partialorder %v754_v15, 0.0  ;;  %v786_v26 = vmul.f32 0.1, %v754_v15 }
 0x1b7   : > { %v695_v17 = vadd.f32 1e-05, %v663_v32  ;;  %v633_v40 = vmul.f32 %v5269_v10, %v5269_v10  ;;  %v530_v8 = vpop.xlane.xlu0 %529 }
 0x1b8   : > { %v593_v22 = vpop.xlane.xlu1 %592  ;;  %v664_v30 = vmax.f32 %v648_v20, 0.0  ;;  %v5275_v44 = vmul.f32 0.0078125, %v530_v8  ;;  %v755_v63 = vadd.f32 %v739_v23, %v5263_v62  ;;  %v802_v2 = vsel %vm770_vm1, %v754_v15, %v786_v26 }
 0x1b9   : > { %4409 = vrsqrt.f32 %v695_v17  ;;  %v617_v50 = vmul.f32 0.0078125, %v593_v22  ;;  %v4404_v55 = vpop.eup %4403 }
 0x1ba   : > { %v696_v35 = vadd.f32 1e-05, %v664_v30  ;;  %v634_v4 = vmul.f32 %v5275_v44, %v5275_v44  ;;  %vm771_vm2 = vcmp.ge.f32.partialorder %v755_v63, 0.0  ;;  %v787_v9 = vmul.f32 0.1, %v755_v63 }
 0x1bb   : > { %v649_v60 = vsub.f32 %v617_v50, %v633_v40  ;;  %v595_v5 = vpop.xlane.xlu0 %594  ;;  %v724_v14 = vmul.f32 %v4404_v55, %v676_v56  ;;  %v678_v40 = vsub.f32 %v5040_v54, %v5250_v59  ;;  %v818_v30 = vadd.f32 %v802_v2, %v5009_v37 }
 0x1bc   : > { %v532_v32 = vpop.xlane.xlu1 %531  ;;  %4411 = vrsqrt.f32 %v696_v35  ;;  %v618_v20 = vmul.f32 0.0078125, %v595_v5  ;;  %v803_v19 = vsel %vm771_vm2, %v755_v63, %v787_v9 }
 0x1bd   : > { %v665_v17 = vmax.f32 %v649_v60, 0.0  ;;  %v5282_v8 = vmul.f32 0.0078125, %v532_v32  ;;  %v4406_v22 = vpop.eup %4405  ;;  %v740_v15 = vmul.f32 %v724_v14, %v5261_v46  ;;  %v819_v35 = vadd.f32 %v803_v19, %v5018_v42 }
 0x1be   : > { %v650_v26 = vsub.f32 %v618_v20, %v634_v4  ;;  %v725_v60 = vmul.f32 %v4406_v22, %v677_v45 }
 0x1bf   : > { %v697_v23 = vadd.f32 1e-05, %v665_v17  ;;  %v635_v50 = vmul.f32 %v5282_v8, %v5282_v8  ;;  %v534_v55 = vpop.xlane.xlu0 %533  ;;  %v756_v49 = vadd.f32 %v740_v15, %v5263_v62  ;;  %v834_v59 = vpack.c.bf16 %v819_v35, %v818_v30 }
 0x1c0   : > { %v597_v56 = vpop.xlane.xlu1 %596  ;;  %v666_v39 = vmax.f32 %v650_v26, 0.0  ;;  %v5294_v63 = vmul.f32 0.0078125, %v534_v55  ;;  %v741_v4 = vmul.f32 %v725_v60, %v5261_v46  ;;  %v679_v26 = vsub.f32 %v5055_v61, %v5254_v11 }
 0x1c1   : > { %4413 = vrsqrt.f32 %v697_v23  ;;  %v619_v5 = vmul.f32 0.0078125, %v597_v56  ;;  %v4408_v54 = vpop.eup %4407  ;;  %vm772_vm3 = vcmp.ge.f32.partialorder %v756_v49, 0.0  ;;  %v788_v37 = vmul.f32 0.1, %v756_v49  ;;  %1090 = vmatmul.mubr.bf16.vlgmr.msra.gmra.mxu1 %v834_v59  ;;  %1203 = vmatmul.mubr.bf16.vlgmr.msra.gmra.mxu0 %v834_v59 }
 0x1c2   : > { %v698_v2 = vadd.f32 1e-05, %v666_v39  ;;  %v636_v32 = vmul.f32 %v5294_v63, %v5294_v63  ;;  %v757_v17 = vadd.f32 %v741_v4, %v5263_v62  ;;  %v726_v22 = vmul.f32 %v4408_v54, %v678_v40  ;;  %1099 = vmatprep.mubr.bf16.mxu1 %v4810_v0  ;;  %1212 = vmatprep.mubr.bf16.mxu0 %v4810_v0 }
 0x1c3   : > { %v651_v9 = vsub.f32 %v619_v5, %v635_v50  ;;  %v599_v42 = vpop.xlane.xlu0 %598  ;;  %v804_v20 = vsel %vm772_vm3, %v756_v49, %v788_v37  ;;  %v680_v40 = vsub.f32 %v5076_v7, %v5259_v34 }
 0x1c4   : > { %v536_v14 = vpop.xlane.xlu1 %535  ;;  %4415 = vrsqrt.f32 %v698_v2  ;;  %v620_v19 = vmul.f32 0.0078125, %v599_v42  ;;  %vm773_vm4 = vcmp.ge.f32.partialorder %v757_v17, 0.0  ;;  %v789_v30 = vmul.f32 0.1, %v757_v17 }
 0x1c5   : > { %v667_v45 = vmax.f32 %v651_v9, 0.0  ;;  %v5300_v15 = vmul.f32 0.0078125, %v536_v14  ;;  %v742_v50 = vmul.f32 %v726_v22, %v5261_v46  ;;  %v820_v35 = vadd.f32 %v804_v20, %v5027_v47 }
 0x1c6   : > { %v4410_v23 = vpop.eup %4409  ;;  %v652_v56 = vsub.f32 %v620_v19, %v636_v32  ;;  %v805_v5 = vsel %vm773_vm4, %v757_v17, %v789_v30  ;;  %v681_v30 = vsub.f32 %v5097_v16, %v5269_v10 }
 0x1c7   : > { %v699_v55 = vadd.f32 1e-05, %v667_v45  ;;  %v637_v60 = vmul.f32 %v5300_v15, %v5300_v15  ;;  %v538_v49 = vpop.xlane.xlu0 %537  ;;  %v727_v54 = vmul.f32 %v4410_v23, %v679_v26  ;;  %v758_v61 = vadd.f32 %v742_v50, %v5263_v62 }
 0x1c8   : > { %v601_v39 = vpop.xlane.xlu1 %600  ;;  %v668_v11 = vmax.f32 %v652_v56, 0.0  ;;  %v5313_v59 = vmul.f32 0.0078125, %v538_v49  ;;  %v821_v7 = vadd.f32 %v805_v5, %v5036_v52  ;;  %v682_v56 = vsub.f32 %v5118_v25, %v5275_v44 }
 0x1c9   : > { %4417 = vrsqrt.f32 %v699_v55  ;;  %v621_v4 = vmul.f32 0.0078125, %v601_v39  ;;  %v4412_v37 = vpop.eup %4411  ;;  %v743_v34 = vmul.f32 %v727_v54, %v5261_v46  ;;  %vm774_vm5 = vcmp.ge.f32.partialorder %v758_v61, 0.0 }
 0x1ca   : > { %v790_v47 = vmul.f32 0.1, %v758_v61  ;;  %v700_v2 = vadd.f32 1e-05, %v668_v11  ;;  %v638_v32 = vmul.f32 %v5313_v59, %v5313_v59  ;;  %v835_v14 = vpack.c.bf16 %v821_v7, %v820_v35 }
 0x1cb   : > { %v653_v9 = vsub.f32 %v621_v4, %v637_v60  ;;  %v603_v42 = vpop.xlane.xlu0 %602  ;;  %v759_v20 = vadd.f32 %v743_v34, %v5263_v62  ;;  %v728_v45 = vmul.f32 %v4412_v37, %v680_v40 }
 0x1cc   : > { %v540_v17 = vpop.xlane.xlu1 %539  ;;  %v806_v22 = vsel %vm774_vm5, %v758_v61, %v790_v47  ;;  %4419 = vrsqrt.f32 %v700_v2  ;;  %v622_v23 = vmul.f32 0.0078125, %v603_v42  ;;  %1100 = vmatmul.mubr.bf16.gmra.mxu1 %v835_v14  ;;  %1213 = vmatmul.mubr.bf16.gmra.mxu0 %v835_v14 }
 0x1cd   : > { %v669_v19 = vmax.f32 %v653_v9, 0.0  ;;  %v5320_v52 = vmul.f32 0.0078125, %v540_v17  ;;  %vm775_vm6 = vcmp.ge.f32.partialorder %v759_v20, 0.0  ;;  %v791_v50 = vmul.f32 0.1, %v759_v20  ;;  %1109 = vmatprep.mubr.bf16.mxu1 %v4810_v0  ;;  %1222 = vmatprep.mubr.bf16.mxu0 %v4810_v0 }
 0x1ce   : > { %v4414_v26 = vpop.eup %4413  ;;  %v744_v55 = vmul.f32 %v728_v45, %v5261_v46  ;;  %v654_v40 = vsub.f32 %v622_v23, %v638_v32  ;;  %v822_v60 = vadd.f32 %v806_v22, %v5045_v57 }
 0x1cf   : > { %v701_v35 = vadd.f32 1e-05, %v669_v19  ;;  %v639_v16 = vmul.f32 %v5320_v52, %v5320_v52  ;;  %v542_v10 = vpop.xlane.xlu0 %541  ;;  %v807_v39 = vsel %vm775_vm6, %v759_v20, %v791_v50  ;;  %v729_v5 = vmul.f32 %v4414_v26, %v681_v30 }
 0x1d0   : > { %v605_v49 = vpop.xlane.xlu1 %604  ;;  %v760_v54 = vadd.f32 %v744_v55, %v5263_v62  ;;  %v670_v61 = vmax.f32 %v654_v40, 0.0  ;;  %v5333_v25 = vmul.f32 0.0078125, %v542_v10  ;;  %v823_v4 = vadd.f32 %v807_v39, %v5066_v3 }
 0x1d1   : > { %4421 = vrsqrt.f32 %v701_v35  ;;  %v623_v44 = vmul.f32 0.0078125, %v605_v49  ;;  %v4416_v11 = vpop.eup %4415  ;;  %v745_v37 = vmul.f32 %v729_v5, %v5261_v46  ;;  %v683_v19 = vsub.f32 %v5139_v43, %v5282_v8 }
 0x1d2   : > { %vm776_vm7 = vcmp.ge.f32.partialorder %v760_v54, 0.0  ;;  %v792_v57 = vmul.f32 0.1, %v760_v54  ;;  %v702_v7 = vadd.f32 1e-05, %v670_v61  ;;  %v640_v34 = vmul.f32 %v5333_v25, %v5333_v25 }
 0x1d3   : > { %v655_v47 = vsub.f32 %v623_v44, %v639_v16  ;;  %v607_v2 = vpop.xlane.xlu0 %606  ;;  %v836_v32 = vpack.c.bf16 %v823_v4, %v822_v60  ;;  %v761_v42 = vadd.f32 %v745_v37, %v5263_v62  ;;  %v730_v17 = vmul.f32 %v4416_v11, %v682_v56 }
 0x1d4   : > { %v544_v9 = vpop.xlane.xlu1 %543  ;;  %v808_v14 = vsel %vm776_vm7, %v760_v54, %v792_v57  ;;  %4423 = vrsqrt.f32 %v702_v7  ;;  %v624_v22 = vmul.f32 0.0078125, %v607_v2  ;;  %v684_v30 = vsub.f32 %v5160_v58, %v5294_v63 }
 0x1d5   : > { %v671_v20 = vmax.f32 %v655_v47, 0.0  ;;  %v5340_v3 = vmul.f32 0.0078125, %v544_v9  ;;  %1110 = vmatmul.mubr.bf16.gmra.mxu1 %v836_v32  ;;  %1223 = vmatmul.mubr.bf16.gmra.mxu0 %v836_v32  ;;  %vm777_vm8 = vcmp.ge.f32.partialorder %v761_v42, 0.0  ;;  %v793_v23 = vmul.f32 0.1, %v761_v42 }
 0x1d6   : > { %v4418_v45 = vpop.eup %4417  ;;  %v746_v26 = vmul.f32 %v730_v17, %v5261_v46  ;;  %v656_v55 = vsub.f32 %v624_v22, %v640_v34  ;;  %1119 = vmatprep.mubr.bf16.mxu1 %v4810_v0  ;;  %1232 = vmatprep.mubr.bf16.mxu0 %v4810_v0  ;;  %v824_v56 = vadd.f32 %v808_v14, %v5087_v12 }
 0x1d7   : > { %v703_v50 = vadd.f32 1e-05, %v671_v20  ;;  %v641_v43 = vmul.f32 %v5340_v3, %v5340_v3  ;;  %v809_v35 = vsel %vm777_vm8, %v761_v42, %v793_v23  ;;  %v731_v40 = vmul.f32 %v4418_v45, %v683_v19 }
 0x1d8   : > { %v609_v8 = vpop.xlane.xlu1 %608  ;;  %v762_v60 = vadd.f32 %v746_v26, %v5263_v62  ;;  %v672_v16 = vmax.f32 %v656_v55, 0.0  ;;  %v825_v58 = vadd.f32 %v809_v35, %v5108_v21  ;;  %v685_v11 = vsub.f32 %v5181_v6, %v5300_v15 }
 0x1d9   : > { %4425 = vrsqrt.f32 %v703_v50  ;;  %v625_v10 = vmul.f32 0.0078125, %v609_v8  ;;  %v4420_v63 = vpop.eup %4419  ;;  %v747_v49 = vmul.f32 %v731_v40, %v5261_v46  ;;  %v686_v6 = vsub.f32 %v5202_v18, %v5313_v59 }
 0x1da   : > { %vm778_vm9 = vcmp.ge.f32.partialorder %v762_v60, 0.0  ;;  %v794_v39 = vmul.f32 0.1, %v762_v60  ;;  %v704_v5 = vadd.f32 1e-05, %v672_v16  ;;  %v837_v54 = vpack.c.bf16 %v825_v58, %v824_v56 }
 0x1db   : > { %v657_v12 = vsub.f32 %v625_v10, %v641_v43  ;;  %v732_v61 = vmul.f32 %v4420_v63, %v684_v30  ;;  %v763_v44 = vadd.f32 %v747_v49, %v5263_v62  ;;  %v687_v19 = vsub.f32 %v5217_v27, %v5320_v52 }
 0x1dc   : > { %4427 = vrsqrt.f32 %v704_v5  ;;  %v810_v7 = vsel %vm778_vm9, %v762_v60, %v794_v39  ;;  %v688_v52 = vsub.f32 %v5226_v41, %v5333_v25  ;;  %v689_v60 = vsub.f32 %v5235_v53, %v5340_v3  ;;  %v508_v5 = vpop.f32.mrf.mxu0 }
 0x1dd   : > { %v673_v4 = vmax.f32 %v657_v12, 0.0  ;;  %v748_v37 = vmul.f32 %v732_v61, %v5261_v46  ;;  %1120 = vmatmul.mubr.bf16.gmra.mxu1 %v837_v54  ;;  %1233 = vmatmul.mubr.bf16.gmra.mxu0 %v837_v54  ;;  %vm779_vm10 = vcmp.ge.f32.partialorder %v763_v44, 0.0  ;;  %v795_v21 = vmul.f32 0.1, %v763_v44 }
 0x1de   : > { %v4422_v57 = vpop.eup %4421  ;;  %1129 = vmatprep.mubr.bf16.mxu1 %v4810_v0  ;;  %1242 = vmatprep.mubr.bf16.mxu0 %v4810_v0  ;;  %v826_v32 = vadd.f32 %v810_v7, %v5129_v36  ;;  %v4309_v7 = vld [vmem:[%s7419_s3 + $0x34] ss:$8 sps:$4 sm:$0xff]  }
 0x1df   : > { %v705_v34 = vadd.f32 1e-05, %v673_v4  ;;  %v733_v47 = vmul.f32 %v4422_v57, %v685_v11  ;;  %v764_v2 = vadd.f32 %v748_v37, %v5263_v62  ;;  %v811_v15 = vsel %vm779_vm10, %v763_v44, %v795_v21  ;;  %v4300_v4 = vld [vmem:[%s7419_s3 + $0x64] ss:$8 sps:$4 sm:$0xff]   ;;  %v4301_v37 = vld [vmem:[%s7419_s3 + $0x50] ss:$8 sps:$4 sm:$0xff]  }
 0x1e0   : > { %v827_v9 = vadd.f32 %v811_v15, %v5150_v51  ;;  %v509_v44 = vadd.f32 %v508_v5, %v5003_v33  ;;  %v4297_v33 = vld [vmem:[%s7419_s3 + $0x74] ss:$8 sps:$4 sm:$0xff]   ;;  %v4306_v57 = vld [vmem:[%s7419_s3 + $0x44] ss:$8 sps:$4 sm:$0xff]   ;;  %v4304_v21 = vld [vmem:[%s7419_s3 + $0x40] ss:$8 sps:$4 sm:$0xff]  }
 0x1e1   : > { %4429 = vrsqrt.f32 %v705_v34  ;;  %v749_v42 = vmul.f32 %v733_v47, %v5261_v46  ;;  %v4424_v14 = vpop.eup %4423  ;;  %vm780_vm11 = vcmp.ge.f32.partialorder %v764_v2, 0.0  ;;  %v796_v17 = vmul.f32 0.1, %v764_v2  ;;  %2027 = vmatprep.subr.bf16.mxu1 %v4297_v33  ;;  %v4307_v34 = vld [vmem:[%s7419_s3 + $0x30] ss:$8 sps:$4 sm:$0xff]  }
 0x1e2   : > { %v838_v20 = vpack.c.bf16 %v827_v9, %v826_v32  ;;  %v734_v45 = vmul.f32 %v4424_v14, %v686_v6  ;;  %v5425_v47 = vld [vmem:[#allocation7 + $0x3] ss:$8 sm:$0xf] }
 0x1e3   : > { %v765_v22 = vadd.f32 %v749_v42, %v5263_v62  ;;  %v812_v59 = vsel %vm780_vm11, %v764_v2, %v796_v17  ;;  %v5429_v2 = vrot.slane %v5425_v47, %v4994_v29  ;;  %v5433_v6 = vrot.slane %v5425_v47, %v4997_v31 }
 0x1e4   : > { %v750_v23 = vmul.f32 %v734_v45, %v5261_v46  ;;  %v828_v50 = vadd.f32 %v812_v59, %v5171_v1 }
 0x1e5   : > { %vm781_vm12 = vcmp.ge.f32.partialorder %v765_v22, 0.0  ;;  %v797_v18 = vmul.f32 0.1, %v765_v22  ;;  %1130 = vmatmul.mubr.bf16.gmra.mxu1 %v838_v20  ;;  %1243 = vmatmul.mubr.bf16.gmra.mxu0 %v838_v20 }
 0x1e6   : > { %v4426_v36 = vpop.eup %4425  ;;  %1139 = vmatprep.mubr.bf16.mxu1 %v4810_v0  ;;  %1252 = vmatprep.mubr.bf16.mxu0 %v4810_v0  ;;  %v766_v30 = vadd.f32 %v750_v23, %v5263_v62 }
 0x1e7   : > { %v813_v51 = vsel %vm781_vm12, %v765_v22, %v797_v18  ;;  %v735_v26 = vmul.f32 %v4426_v36, %v687_v19 }
 0x1e8   : > { %v829_v27 = vadd.f32 %v813_v51, %v5192_v13  ;;  %v798_v56 = vmul.f32 0.1, %v766_v30  ;;  %vm782_vm13 = vcmp.ge.f32.partialorder %v766_v30, 0.0 }
 0x1e9   : > { %v751_v55 = vmul.f32 %v735_v26, %v5261_v46  ;;  %v4428_v43 = vpop.eup %4427 }
 0x1ea   : > { %v839_v8 = vpack.c.bf16 %v829_v27, %v828_v50  ;;  %v736_v40 = vmul.f32 %v4428_v43, %v688_v52  ;;  %v814_v1 = vsel %vm782_vm13, %v766_v30, %v798_v56 }
 0x1eb   : > { %v767_v35 = vadd.f32 %v751_v55, %v5263_v62  ;;  %v830_v63 = vadd.f32 %v814_v1, %v5213_v24  ;;  %v4310_v1 = vld [vmem:[%s7419_s3 + $0x20] ss:$8 sps:$4 sm:$0xff]  }
 0x1ec   : > { %v752_v13 = vmul.f32 %v736_v40, %v5261_v46 }
 0x1ed   : > { %vm783_vm14 = vcmp.ge.f32.partialorder %v767_v35, 0.0  ;;  %v799_v16 = vmul.f32 0.1, %v767_v35  ;;  %1140 = vmatmul.mubr.bf16.gmra.mxu1 %v839_v8  ;;  %1253 = vmatmul.mubr.bf16.gmra.mxu0 %v839_v8 }
 0x1ee   : > { %v4430_v10 = vpop.eup %4429  ;;  %1149 = vmatprep.mubr.bf16.mxu1 %v4810_v0  ;;  %1262 = vmatprep.mubr.bf16.mxu0 %v4810_v0  ;;  %v768_v58 = vadd.f32 %v752_v13, %v5263_v62 }
 0x1ef   : > { %v815_v41 = vsel %vm783_vm14, %v767_v35, %v799_v16  ;;  %v737_v25 = vmul.f32 %v4430_v10, %v689_v60  ;;  %v4312_v35 = vld [vmem:[%s7419_s3 + $0x24] ss:$8 sps:$4 sm:$0xff]  }
 0x1f0   : > { %v831_v53 = vadd.f32 %v815_v41, %v5222_v38  ;;  %v800_v49 = vmul.f32 0.1, %v768_v58  ;;  %vm784_vm15 = vcmp.ge.f32.partialorder %v768_v58, 0.0 }
 0x1f1   : > { %v753_v3 = vmul.f32 %v737_v25, %v5261_v46 }
 0x1f2   : > { %v840_v39 = vpack.c.bf16 %v831_v53, %v830_v63  ;;  %v816_v61 = vsel %vm784_vm15, %v768_v58, %v800_v49  ;;  %v4315_v63 = vld [vmem:[%s7419_s3 + $0x14] ss:$8 sps:$4 sm:$0xff]  }
 0x1f3   : > { %v769_v12 = vadd.f32 %v753_v3, %v5263_v62  ;;  %v832_v38 = vadd.f32 %v816_v61, %v5231_v48  ;;  %v4295_v62 = vld [vmem:[%s7419_s3 + $0x70] ss:$8 sps:$4 sm:$0xff]   ;;  %v4303_v48 = vld [vmem:[%s7419_s3 + $0x54] ss:$8 sps:$4 sm:$0xff]  }
 0x1f4   : > { %2028 = vmatpush1.bf16.msra.mxu1 %v4295_v62  ;;  %v4316_v62 = vld [vmem:[%s7419_s3] ss:$8 sps:$4 sm:$0xff]  }
 0x1f5   : > { %vm785_vm0 = vcmp.ge.f32.partialorder %v769_v12, 0.0  ;;  %v801_v54 = vmul.f32 0.1, %v769_v12  ;;  %1150 = vmatmul.mubr.bf16.gmra.mxu1 %v840_v39  ;;  %1263 = vmatmul.mubr.bf16.gmra.mxu0 %v840_v39  ;;  %v4313_v39 = vld [vmem:[%s7419_s3 + $0x10] ss:$8 sps:$4 sm:$0xff]  }
 0x1f6   : > { %1159 = vmatprep.mubr.bf16.mxu1 %v4810_v0  ;;  %1272 = vmatprep.mubr.bf16.mxu0 %v4810_v0  ;;  %v4298_v0 = vld [vmem:[%s7419_s3 + $0x60] ss:$8 sps:$4 sm:$0xff]  }
 0x1f7   : > { %v817_v24 = vsel %vm785_vm0, %v769_v12, %v801_v54  ;;  %2029 = vmatprep.subr.bf16.mxu1 %v4300_v4 }
 0x1f8   : > { %v833_v46 = vadd.f32 %v817_v24, %v509_v44  ;;  %2030 = vmatpush1.bf16.msra.mxu1 %v4298_v0  ;;  %v4318_v24 = vld [vmem:[%s7419_s3 + $0x4] ss:$8 sps:$4 sm:$0xff]  }
 0x1f9   : > { %2031 = vmatprep.subr.bf16.mxu1 %v4303_v48 }
 0x1fa   : > { %v841_v11 = vpack.c.bf16 %v833_v46, %v832_v38 }
 0x1fc   : > { %2032 = vmatpush1.bf16.msra.mxu1 %v4301_v37 }
 0x1fd   : > { %1160 = vmatmul.mubr.bf16.gmra.mxu1 %v841_v11  ;;  %1273 = vmatmul.mubr.bf16.gmra.mxu0 %v841_v11 }
 0x1fe   : > { %2033 = vmatprep.subr.bf16.mxu1 %v4306_v57  ;;  %v4321_v57 = vld [vmem:[%s7419_s3 + $0xf4] ss:$8 sps:$4 sm:$0xff]  }
 0x200   : > { %2034 = vmatpush1.bf16.msra.mxu1 %v4304_v21 }
 0x201   : > { %2035 = vmatprep.subr.bf16.mxu1 %v4309_v7 }
 0x204   : > { %2036 = vmatpush1.bf16.msra.mxu1 %v4307_v34 }
 0x205   : > { %2037 = vmatprep.subr.bf16.mxu1 %v4312_v35 }
 0x208   : > { %2038 = vmatpush1.bf16.msra.mxu1 %v4310_v1  ;;  %v4325_v1 = vld [vmem:[%s7419_s3 + $0xd0] ss:$8 sps:$4 sm:$0xff]  }
 0x209   : > { %2039 = vmatprep.subr.bf16.mxu1 %v4315_v63  ;;  %v4330_v63 = vld [vmem:[%s7419_s3 + $0xc4] ss:$8 sps:$4 sm:$0xff]  }
 0x20c   : > { %2040 = vmatpush1.bf16.msra.mxu1 %v4313_v39 }
 0x20d   : > { %2041 = vmatprep.subr.bf16.mxu1 %v4318_v24 }
 0x210   : > { %2042 = vmatpush1.bf16.msra.mxu1 %v4316_v62  ;;  %v4333_v62 = vld [vmem:[%s7419_s3 + $0xb4] ss:$8 sps:$4 sm:$0xff]  }
 0x211   : > { %2043 = vmatprep.subr.bf16.mxu1 %v4321_v57 }
 0x281   : > { %v1091_v15 = vpop.f32.mrf.mxu1 }
 0x282   : > { %v5436_v9 = vadd.f32 %v1091_v15, %v5429_v2  ;;  %v4319_v15 = vld [vmem:[%s7419_s3 + $0xf0] ss:$8 sps:$4 sm:$0xff]  }
 0x283   : > { %v1093_v32 = vpop.f32.mrf.mxu1  ;;  %2044 = vmatpush2.bf16.msra.mxu1 %v4319_v15 }
 0x284   : > { %v5439_v42 = vadd.f32 %v1093_v32, %v5433_v6  ;;  %v1352_v18 = vmul.f32 %v5436_v9, %v5436_v9 }
 0x285   : > { %v1095_v14 = vpop.f32.mrf.mxu1 }
 0x286   : > { %v1287_v17 = vadd.f32 %v5439_v42, %v5436_v9  ;;  %v1353_v20 = vmul.f32 %v5439_v42, %v5439_v42  ;;  %v5446_v45 = vadd.f32 %v1095_v14, %v5429_v2 }
 0x287   : > { %v1097_v22 = vpop.f32.mrf.mxu1 }
 0x288   : > { %v5449_v19 = vadd.f32 %v1097_v22, %v5433_v6  ;;  %1288 = vadd.xlane.f32.xlu0 %v1287_v17  ;;  %v1384_v23 = vadd.f32 %v1353_v20, %v1352_v18  ;;  %v1354_v26 = vmul.f32 %v5446_v45, %v5446_v45  ;;  %v4324_v18 = vld [vmem:[%s7419_s3 + $0xe4] ss:$8 sps:$4 sm:$0xff]  }
 0x289   : > { %2045 = vmatprep.subr.bf16.mxu1 %v4324_v18 }
 0x28a   : > { %v1290_v59 = vadd.f32 %v5449_v19, %v5446_v45  ;;  %v1355_v36 = vmul.f32 %v5449_v19, %v5449_v19 }
 0x28c   : > { %v1101_v51 = vpop.f32.mrf.mxu1  ;;  %1291 = vadd.xlane.f32.xlu1 %v1290_v59  ;;  %1385 = vadd.xlane.f32.xlu0 %v1384_v23  ;;  %v1387_v52 = vadd.f32 %v1355_v36, %v1354_v26 }
 0x28d   : > { %v5460_v50 = vadd.f32 %v1101_v51, %v5429_v2  ;;  %v4322_v51 = vld [vmem:[%s7419_s3 + $0xe0] ss:$8 sps:$4 sm:$0xff]  }
 0x28e   : > { %v1103_v30 = vpop.f32.mrf.mxu1  ;;  %2046 = vmatpush2.bf16.msra.mxu1 %v4322_v51 }
 0x28f   : > { %v5463_v27 = vadd.f32 %v1103_v30, %v5433_v6  ;;  %v1356_v16 = vmul.f32 %v5460_v50, %v5460_v50 }
 0x290   : > { %v1105_v55 = vpop.f32.mrf.mxu1  ;;  %1388 = vadd.xlane.f32.xlu1 %v1387_v52 }
 0x291   : > { %v1293_v56 = vadd.f32 %v5463_v27, %v5460_v50  ;;  %v1357_v43 = vmul.f32 %v5463_v27, %v5463_v27  ;;  %v5473_v40 = vadd.f32 %v1105_v55, %v5429_v2 }
 0x292   : > { %v1107_v8 = vpop.f32.mrf.mxu1 }
 0x293   : > { %v5476_v60 = vadd.f32 %v1107_v8, %v5433_v6  ;;  %1294 = vadd.xlane.f32.xlu0 %v1293_v56  ;;  %v1390_v41 = vadd.f32 %v1357_v43, %v1356_v16  ;;  %v1358_v49 = vmul.f32 %v5473_v40, %v5473_v40  ;;  %v4327_v43 = vld [vmem:[%s7419_s3 + $0xd4] ss:$8 sps:$4 sm:$0xff]  }
 0x294   : > { %2047 = vmatprep.subr.bf16.mxu1 %v4327_v43 }
 0x295   : > { %v1111_v13 = vpop.f32.mrf.mxu1  ;;  %v1296_v10 = vadd.f32 %v5476_v60, %v5473_v40  ;;  %v1359_v25 = vmul.f32 %v5476_v60, %v5476_v60  ;;  %2048 = vmatpush2.bf16.msra.mxu1 %v4325_v1 }
 0x296   : > { %v5491_v53 = vadd.f32 %v1111_v13, %v5429_v2  ;;  %2049 = vmatprep.subr.bf16.mxu1 %v4330_v63 }
 0x297   : > { %v1113_v58 = vpop.f32.mrf.mxu1  ;;  %1297 = vadd.xlane.f32.xlu1 %v1296_v10  ;;  %1391 = vadd.xlane.f32.xlu0 %v1390_v41  ;;  %v1393_v12 = vadd.f32 %v1359_v25, %v1358_v49 }
 0x298   : > { %v5494_v3 = vadd.f32 %v1113_v58, %v5433_v6  ;;  %v1360_v11 = vmul.f32 %v5491_v53, %v5491_v53 }
 0x299   : > { %v1115_v5 = vpop.f32.mrf.mxu1 }
 0x29a   : > { %v1299_v54 = vadd.f32 %v5494_v3, %v5491_v53  ;;  %v1361_v61 = vmul.f32 %v5494_v3, %v5494_v3  ;;  %v5509_v38 = vadd.f32 %v1115_v5, %v5429_v2 }
 0x29b   : > { %v1117_v44 = vpop.f32.mrf.mxu1  ;;  %1394 = vadd.xlane.f32.xlu1 %v1393_v12  ;;  %v4328_v12 = vld [vmem:[%s7419_s3 + $0xc0] ss:$8 sps:$4 sm:$0xff]  }
 0x29c   : > { %v5512_v46 = vadd.f32 %v1117_v44, %v5433_v6  ;;  %1300 = vadd.xlane.f32.xlu0 %v1299_v54  ;;  %v1396_v0 = vadd.f32 %v1361_v61, %v1360_v11  ;;  %v1362_v34 = vmul.f32 %v5509_v38, %v5509_v38  ;;  %2050 = vmatpush2.bf16.msra.mxu1 %v4328_v12  ;;  %v4342_v12 = vld [vmem:[%s7419_s3 + $0x84] ss:$8 sps:$4 sm:$0xff]  }
 0x29d   : > { %v1121_v33 = vpop.f32.mrf.mxu1  ;;  %2051 = vmatprep.subr.bf16.mxu1 %v4333_v62 }
 0x29e   : > { %v1302_v4 = vadd.f32 %v5512_v46, %v5509_v38  ;;  %v1363_v48 = vmul.f32 %v5512_v46, %v5512_v46  ;;  %v5527_v21 = vadd.f32 %v1121_v33, %v5429_v2 }
 0x29f   : > { %v1123_v37 = vpop.f32.mrf.mxu1 }
 0x2a0   : > { %v5530_v7 = vadd.f32 %v1123_v37, %v5433_v6  ;;  %1303 = vadd.xlane.f32.xlu1 %v1302_v4  ;;  %1397 = vadd.xlane.f32.xlu0 %v1396_v0  ;;  %v1399_v14 = vadd.f32 %v1363_v48, %v1362_v34  ;;  %v1364_v36 = vmul.f32 %v5527_v21, %v5527_v21  ;;  %v4331_v48 = vld [vmem:[%s7419_s3 + $0xb0] ss:$8 sps:$4 sm:$0xff]  }
 0x2a1   : > { %v1125_v32 = vpop.f32.mrf.mxu1  ;;  %2052 = vmatpush2.bf16.msra.mxu1 %v4331_v48 }
 0x2a2   : > { %v1305_v17 = vadd.f32 %v5530_v7, %v5527_v21  ;;  %v1365_v20 = vmul.f32 %v5530_v7, %v5530_v7  ;;  %v5545_v59 = vadd.f32 %v1125_v32, %v5429_v2 }
 0x2a3   : > { %v1127_v22 = vpop.f32.mrf.mxu1 }
 0x2a4   : > { %v5548_v23 = vadd.f32 %v1127_v22, %v5433_v6  ;;  %1400 = vadd.xlane.f32.xlu1 %v1399_v14  ;;  %1306 = vadd.xlane.f32.xlu0 %v1305_v17  ;;  %v1402_v52 = vadd.f32 %v1365_v20, %v1364_v36  ;;  %v1366_v16 = vmul.f32 %v5545_v59, %v5545_v59  ;;  %v4336_v14 = vld [vmem:[%s7419_s3 + $0xa4] ss:$8 sps:$4 sm:$0xff]   ;;  %v5616_v17 = vpop.f32.mrf.mxu0  ;;  %v4334_v36 = vld [vmem:[%s7419_s3 + $0xa0] ss:$8 sps:$4 sm:$0xff]  }
 0x2a5   : > { %v1131_v26 = vpop.f32.mrf.mxu1  ;;  %2053 = vmatprep.subr.bf16.mxu1 %v4336_v14 }
 0x2a6   : > { %v1308_v30 = vadd.f32 %v5548_v23, %v5545_v59  ;;  %v1367_v55 = vmul.f32 %v5548_v23, %v5548_v23  ;;  %v5563_v8 = vadd.f32 %v1131_v26, %v5429_v2  ;;  %2054 = vmatpush2.bf16.msra.mxu1 %v4334_v36  ;;  %v5636_v43 = vpop.f32.mrf.mxu0 }
 0x2a7   : > { %v1133_v56 = vpop.f32.mrf.mxu1 }
 0x2a8   : > { %v5566_v35 = vadd.f32 %v1133_v56, %v5433_v6  ;;  %1309 = vadd.xlane.f32.xlu1 %v1308_v30  ;;  %1403 = vadd.xlane.f32.xlu0 %v1402_v52  ;;  %v1405_v10 = vadd.f32 %v1367_v55, %v1366_v16  ;;  %v1368_v5 = vmul.f32 %v5563_v8, %v5563_v8  ;;  %v4339_v56 = vld [vmem:[%s7419_s3 + $0x94] ss:$8 sps:$4 sm:$0xff]  }
 0x2a9   : > { %v1135_v13 = vpop.f32.mrf.mxu1  ;;  %2055 = vmatprep.subr.bf16.mxu1 %v4339_v56 }
 0x2aa   : > { %v1311_v41 = vadd.f32 %v5566_v35, %v5563_v8  ;;  %v1369_v25 = vmul.f32 %v5566_v35, %v5566_v35  ;;  %v5581_v49 = vadd.f32 %v1135_v13, %v5429_v2 }
 0x2ab   : > { %v1137_v58 = vpop.f32.mrf.mxu1 }
 0x2ac   : > { %7504 = vst [vmem:[#allocation14_spill] sm:$0xff] %v5581_v49  ;;  %v5584_v39 = vadd.f32 %v1137_v58, %v5433_v6  ;;  %1406 = vadd.xlane.f32.xlu1 %v1405_v10  ;;  %1312 = vadd.xlane.f32.xlu0 %v1311_v41  ;;  %v1408_v44 = vadd.f32 %v1369_v25, %v1368_v5  ;;  %v4337_v10 = vld [vmem:[%s7419_s3 + $0x90] ss:$8 sps:$4 sm:$0xff]  }
 0x2ad   : > { %v1141_v54 = vpop.f32.mrf.mxu1  ;;  %v1370_v0 = vmul.f32 %v5581_v49, %v5581_v49  ;;  %2056 = vmatpush2.bf16.msra.mxu1 %v4337_v10 }
 0x2ae   : > { %7505 = vst [vmem:[#allocation15_spill] sm:$0xff] %v5584_v39  ;;  %v1314_v61 = vadd.f32 %v5584_v39, %v5581_v49  ;;  %v1371_v24 = vmul.f32 %v5584_v39, %v5584_v39  ;;  %v5599_v33 = vadd.f32 %v1141_v54, %v5429_v2  ;;  %v5656_v54 = vpop.f32.mrf.mxu0  ;;  %2057 = vmatprep.subr.bf16.mxu1 %v4342_v12 }
 0x2af   : > { %v1143_v11 = vpop.f32.mrf.mxu1 }
 0x2b0   : > { %7506 = vst [vmem:[#allocation16_spill] sm:$0xff] %v5599_v33  ;;  %v5602_v4 = vadd.f32 %v1143_v11, %v5433_v6  ;;  %1315 = vadd.xlane.f32.xlu1 %v1314_v61  ;;  %1409 = vadd.xlane.f32.xlu0 %v1408_v44  ;;  %v1411_v57 = vadd.f32 %v1371_v24, %v1370_v0  ;;  %v4340_v11 = vld [vmem:[%s7419_s3 + $0x80] ss:$8 sps:$4 sm:$0xff]  }
 0x2b1   : > { %v1145_v37 = vpop.f32.mrf.mxu1  ;;  %v1372_v18 = vmul.f32 %v5599_v33, %v5599_v33  ;;  %2058 = vmatpush2.bf16.msra.mxu1 %v4340_v11 }
 0x2b2   : > { %7507 = vst [vmem:[#allocation17_spill] sm:$0xff] %v5602_v4  ;;  %v1317_v34 = vadd.f32 %v5602_v4, %v5599_v33  ;;  %v1373_v15 = vmul.f32 %v5602_v4, %v5602_v4  ;;  %v5619_v20 = vadd.f32 %v1145_v37, %v5429_v2 }
 0x2b3   : > { %v1147_v32 = vpop.f32.mrf.mxu1 }
 0x2b4   : > { %7508 = vst [vmem:[#allocation18_spill] sm:$0xff] %v5619_v20  ;;  %v5622_v22 = vadd.f32 %v1147_v32, %v5433_v6  ;;  %1412 = vadd.xlane.f32.xlu1 %v1411_v57  ;;  %1318 = vadd.xlane.f32.xlu0 %v1317_v34  ;;  %v1414_v30 = vadd.f32 %v1373_v15, %v1372_v18  ;;  %v5673_v34 = vpop.f32.mrf.mxu0 }
 0x2b5   : > { %v1151_v51 = vpop.f32.mrf.mxu1  ;;  %v1374_v13 = vmul.f32 %v5619_v20, %v5619_v20 }
 0x2b6   : > { %7509 = vst [vmem:[#allocation19_spill] sm:$0xff] %v5622_v22  ;;  %v1320_v26 = vadd.f32 %v5622_v22, %v5619_v20  ;;  %v1375_v52 = vmul.f32 %v5622_v22, %v5622_v22  ;;  %v5639_v16 = vadd.f32 %v1151_v51, %v5429_v2  ;;  %v5683_v36 = vpop.f32.mrf.mxu0 }
 0x2b7   : > { %v1153_v55 = vpop.f32.mrf.mxu1 }
 0x2b8   : > { %7510 = vst [vmem:[#allocation20_spill] sm:$0xff] %v5639_v16  ;;  %v5642_v1 = vadd.f32 %v1153_v55, %v5433_v6  ;;  %1321 = vadd.xlane.f32.xlu1 %v1320_v26  ;;  %1415 = vadd.xlane.f32.xlu0 %v1414_v30  ;;  %v1417_v25 = vadd.f32 %v1375_v52, %v1374_v13  ;;  %v1216_v10 = vpop.f32.mrf.mxu0 }
 0x2b9   : > { %v1155_v41 = vpop.f32.mrf.mxu1  ;;  %v1376_v24 = vmul.f32 %v5639_v16, %v5639_v16 }
 0x2ba   : > { %7511 = vst [vmem:[#allocation21_spill] sm:$0xff] %v5642_v1  ;;  %v1323_v58 = vadd.f32 %v5642_v1, %v5639_v16  ;;  %v1377_v63 = vmul.f32 %v5642_v1, %v5642_v1  ;;  %v5659_v61 = vadd.f32 %v1155_v41, %v5429_v2 }
 0x2bb   : > { %v1157_v5 = vpop.f32.mrf.mxu1 }
 0x2bc   : > { %7512 = vst [vmem:[#allocation22_spill] sm:$0xff] %v5659_v61  ;;  %v5662_v44 = vadd.f32 %v1157_v5, %v5433_v6  ;;  %1418 = vadd.xlane.f32.xlu1 %v1417_v25  ;;  %1324 = vadd.xlane.f32.xlu0 %v1323_v58  ;;  %v1420_v48 = vadd.f32 %v1377_v63, %v1376_v24 }
 0x2bd   : > { %v1161_v62 = vpop.f32.mrf.mxu1  ;;  %v1378_v14 = vmul.f32 %v5659_v61, %v5659_v61 }
 0x2be   : > { %7513 = vst [vmem:[#allocation23_spill] sm:$0xff] %v5662_v44  ;;  %v1326_v0 = vadd.f32 %v5662_v44, %v5659_v61  ;;  %v1379_v37 = vmul.f32 %v5662_v44, %v5662_v44  ;;  %v5676_v15 = vadd.f32 %v1161_v62, %v5429_v2 }
 0x2bf   : > { %v1163_v57 = vpop.f32.mrf.mxu1 }
 0x2c0   : > { %7514 = vst [vmem:[#allocation24_spill] sm:$0xff] %v5676_v15  ;;  %v5679_v32 = vadd.f32 %v1163_v57, %v5433_v6  ;;  %1327 = vadd.xlane.f32.xlu1 %v1326_v0  ;;  %1421 = vadd.xlane.f32.xlu0 %v1420_v48  ;;  %v1423_v51 = vadd.f32 %v1379_v37, %v1378_v14 }
 0x2c1   : > { %v1165_v18 = vpop.f32.mrf.mxu1  ;;  %v1380_v13 = vmul.f32 %v5676_v15, %v5676_v15 }
 0x2c2   : > { %7515 = vst [vmem:[#allocation25_spill] sm:$0xff] %v5679_v32  ;;  %v1329_v26 = vadd.f32 %v5679_v32, %v5676_v15  ;;  %v1381_v30 = vmul.f32 %v5679_v32, %v5679_v32  ;;  %v5690_v55 = vadd.f32 %v1165_v18, %v5429_v2 }
 0x2c3   : > { %v1167_v52 = vpop.f32.mrf.mxu1 }
 0x2c4   : > { %7516 = vst [vmem:[#allocation26_spill] sm:$0xff] %v5690_v55  ;;  %v5693_v56 = vadd.f32 %v1167_v52, %v5433_v6  ;;  %1424 = vadd.xlane.f32.xlu1 %v1423_v51  ;;  %1330 = vadd.xlane.f32.xlu0 %v1329_v26  ;;  %v1426_v25 = vadd.f32 %v1381_v30, %v1380_v13  ;;  %v1218_v6 = vpop.f32.mrf.mxu0 }
 0x2c5   : > { %v1382_v2 = vmul.f32 %v5690_v55, %v5690_v55 }
 0x2c6   : > { %7517 = vst [vmem:[#allocation27_spill] sm:$0xff] %v5693_v56  ;;  %v1332_v41 = vadd.f32 %v5693_v56, %v5690_v55  ;;  %v1383_v58 = vmul.f32 %v5693_v56, %v5693_v56  ;;  %v1220_v5 = vpop.f32.mrf.mxu0  ;;  %v891_v56 = vsub.s32 3, %v4991_v28 }
 0x2c8   : > { %1333 = vadd.xlane.f32.xlu1 %v1332_v41  ;;  %1427 = vadd.xlane.f32.xlu0 %v1426_v25  ;;  %v1429_v63 = vadd.f32 %v1383_v58, %v1382_v2  ;;  %v1224_v12 = vpop.f32.mrf.mxu0 }
 0x2ca   : > { %v1226_v24 = vpop.f32.mrf.mxu0 }
 0x2cc   : > { %1430 = vadd.xlane.f32.xlu1 %v1429_v63  ;;  %v1228_v11 = vpop.f32.mrf.mxu0  ;;  %v887_v63 = vsub.s32 2, %v4991_v28 }
 0x2ce   : > { %v1230_v62 = vpop.f32.mrf.mxu0  ;;  %v5720_v16 = vrot.slane %v5425_v47, %v887_v63 }
 0x2d0   : > { %v1234_v0 = vpop.f32.mrf.mxu0  ;;  %7518 = vst [vmem:[#allocation28_spill] sm:$0xff] %v5720_v16  ;;  %v5729_v49 = vadd.f32 %v5616_v17, %v5720_v16  ;;  %v5747_v17 = vadd.f32 %v5683_v36, %v5720_v16 }
 0x2d2   : > { %v1236_v48 = vpop.f32.mrf.mxu0 }
 0x2d4   : > { %v1238_v37 = vpop.f32.mrf.mxu0 }
 0x2d6   : > { %v1240_v57 = vpop.f32.mrf.mxu0 }
 0x2d8   : > { %v1244_v14 = vpop.f32.mrf.mxu0 }
 0x2da   : > { %v1246_v18 = vpop.f32.mrf.mxu0 }
 0x2dc   : > { %v1248_v51 = vpop.f32.mrf.mxu0 }
 0x2de   : > { %v1250_v26 = vpop.f32.mrf.mxu0 }
 0x2e0   : > { %v1254_v30 = vpop.f32.mrf.mxu0 }
 0x2e2   : > { %v1256_v52 = vpop.f32.mrf.mxu0 }
 0x2e4   : > { %v5703_v13 = vpop.f32.mrf.mxu0 }
 0x2e6   : > { %v5705_v41 = vpop.f32.mrf.mxu0 }
 0x2e8   : > { %v5707_v25 = vpop.f32.mrf.mxu0 }
 0x2ea   : > { %v5713_v55 = vpop.f32.mrf.mxu0 }
 0x2ec   : > { %v1268_v22 = vpop.f32.mrf.mxu0 }
 0x311   : > { %v1289_v58 = vpop.xlane.xlu0 %1288 }
 0x312   : > { %v5709_v2 = vmul.f32 0.00390625, %v1289_v58  ;;  %v5723_v58 = vrot.slane %v5425_v47, %v891_v56  ;;  %v5737_v47 = vadd.f32 %v5656_v54, %v5720_v16  ;;  %v5753_v54 = vadd.f32 %v1218_v6, %v5720_v16 }
 0x314   : > { %v1448_v44 = vmul.f32 %v5709_v2, %v5709_v2  ;;  %7519 = vst [vmem:[#allocation29_spill] sm:$0xff] %v5723_v58  ;;  %7520 = vst [vmem:[#allocation30_spill] sm:$0xff] %v5737_v47  ;;  %v5756_v47 = vadd.f32 %v1220_v5, %v5723_v58  ;;  %v5765_v36 = vadd.f32 %v1226_v24, %v5723_v58 }
 0x315   : > { %v1386_v32 = vpop.xlane.xlu0 %1385  ;;  %v1292_v15 = vpop.xlane.xlu1 %1291  ;;  %v5771_v6 = vadd.f32 %v1230_v62, %v5723_v58  ;;  %v5774_v5 = vadd.f32 %v1234_v0, %v5720_v16  ;;  %v5786_v62 = vadd.f32 %v1238_v37, %v5720_v16  ;;  %v5789_v0 = vadd.f32 %v1240_v57, %v5723_v58 }
 0x316   : > { %v1432_v61 = vmul.f32 0.00390625, %v1386_v32  ;;  %v5717_v1 = vmul.f32 0.00390625, %v1292_v15  ;;  %v5733_v15 = vadd.f32 %v5636_v43, %v5723_v58  ;;  %v1284_v32 = vld [vmem:[#allocation7 + $0x4] ss:$8 sm:$0x3]  ;;  %v5750_v43 = vadd.f32 %v1216_v10, %v5723_v58 }
 0x317   : > { %v5768_v10 = vadd.f32 %v1228_v11, %v5720_v16  ;;  %7522 = vst [vmem:[#allocation32_spill] sm:$0xff] %v5774_v5  ;;  %v5783_v11 = vadd.f32 %v1236_v48, %v5723_v58  ;;  %v5792_v5 = vadd.f32 %v1244_v14, %v5720_v16  ;;  %v5801_v48 = vadd.f32 %v1250_v26, %v5723_v58 }
 0x318   : > { %v1464_v20 = vsub.f32 %v1432_v61, %v1448_v44  ;;  %v1449_v33 = vmul.f32 %v5717_v1, %v5717_v1  ;;  %v1270_v44 = vpop.f32.mrf.mxu0  ;;  %v5804_v37 = vadd.f32 %v1254_v30, %v5720_v16  ;;  %v5807_v57 = vadd.f32 %v1256_v52, %v5723_v58 }
 0x319   : > { %v1389_v4 = vpop.xlane.xlu1 %1388  ;;  %7524 = vst [vmem:[#allocation34_spill] sm:$0xff] %v5792_v5  ;;  %7527 = vst [vmem:[#allocation37_spill] sm:$0xff] %v5801_v48  ;;  %v5818_v30 = vadd.f32 %v5703_v13, %v5720_v16  ;;  %v5822_v52 = vadd.f32 %v5705_v41, %v5723_v58  ;;  %v5839_v13 = vadd.f32 %v1268_v22, %v5720_v16 }
 0x31a   : > { %v1480_v28 = vmax.f32 %v1464_v20, 0.0  ;;  %v1433_v39 = vmul.f32 0.00390625, %v1389_v4  ;;  %v5741_v20 = vadd.f32 %v5673_v34, %v5723_v58  ;;  %v5759_v34 = vadd.f32 %v1224_v12, %v5720_v16  ;;  %7528 = vst [vmem:[#allocation38_spill] sm:$0xff] %v5804_v37  ;;  %7529 = vst [vmem:[#allocation39_spill] sm:$0xff] %v5807_v57 }
 0x31b   : > { %7530 = vst [vmem:[#allocation40_spill] sm:$0xff] %v5818_v30  ;;  %7531 = vst [vmem:[#allocation41_spill] sm:$0xff] %v5822_v52  ;;  %v5842_v41 = vadd.f32 %v1270_v44, %v5723_v58  ;;  %v1497_v44 = vsub.f32 %v5439_v42, %v5709_v2  ;;  %v7538_v30 = vld [vmem:[#allocation14_spill] sm:$0xff]  ;;  %v7539_v52 = vld [vmem:[#allocation15_spill] sm:$0xff] }
 0x31c   : > { %v1295_v61 = vpop.xlane.xlu0 %1294  ;;  %v1528_v4 = vadd.f32 1e-05, %v1480_v28  ;;  %v1465_v56 = vsub.f32 %v1433_v39, %v1449_v33  ;;  %7521 = vst [vmem:[#allocation31_spill] sm:$0xff] %v5759_v34  ;;  %v5762_v39 = vrot.slane %v1284_v32, %v4994_v29  ;;  %7534 = vst [vmem:[#allocation44_spill] sm:$0xff] %v5839_v13  ;;  %v7545_v57 = vld [vmem:[#allocation30_spill] sm:$0xff] }
 0x31d   : > { %v5743_v63 = vmul.f32 0.00390625, %v1295_v61  ;;  %v5776_v61 = vpop.f32.mrf.mxu0  ;;  %7535 = vst [vmem:[#allocation45_spill] sm:$0xff] %v5842_v41 }
 0x31e   : > { %4431 = vrsqrt.f32 %v1528_v4  ;;  %v1481_v33 = vmax.f32 %v1465_v56, 0.0  ;;  %7523 = vst [vmem:[#allocation33_spill] sm:$0xff] %v5776_v61  ;;  %v5798_v61 = vadd.f32 %v1248_v51, %v5720_v16 }
 0x31f   : > { %v1450_v4 = vmul.f32 %v5743_v63, %v5743_v63 }
 0x320   : > { %v1392_v28 = vpop.xlane.xlu0 %1391  ;;  %v1298_v12 = vpop.xlane.xlu1 %1297  ;;  %v1529_v34 = vadd.f32 1e-05, %v1481_v33  ;;  %v5795_v33 = vadd.f32 %v1246_v18, %v5723_v58  ;;  %7526 = vst [vmem:[#allocation36_spill] sm:$0xff] %v5798_v61  ;;  %v5810_v18 = vrot.slane %v1284_v32, %v4997_v31 }
 0x321   : > { %v1434_v56 = vmul.f32 0.00390625, %v1392_v28  ;;  %v5780_v24 = vmul.f32 0.00390625, %v1298_v12  ;;  %v1286_v12 = vld [vmem:[#allocation7 + $0x5] ss:$8 sm:$0x3] }
 0x322   : > { %7525 = vst [vmem:[#allocation35_spill] sm:$0xff] %v5795_v33  ;;  %4433 = vrsqrt.f32 %v1529_v34  ;;  %v1276_v33 = vpop.f32.mrf.mxu0  ;;  %v5828_v32 = vrot.slane %v1286_v12, %v4997_v31 }
 0x323   : > { %v1466_v28 = vsub.f32 %v1434_v56, %v1450_v4  ;;  %v1451_v34 = vmul.f32 %v5780_v24, %v5780_v24  ;;  %v5825_v4 = vrot.slane %v1286_v12, %v4994_v29  ;;  %v5832_v56 = vadd.f32 %v5707_v25, %v5720_v16 }
 0x324   : > { %v1395_v5 = vpop.xlane.xlu1 %1394  ;;  %v1496_v12 = vsub.f32 %v5436_v9, %v5709_v2 }
 0x325   : > { %v1301_v14 = vpop.xlane.xlu0 %1300  ;;  %v1482_v51 = vmax.f32 %v1466_v28, 0.0  ;;  %v1435_v26 = vmul.f32 0.00390625, %v1395_v5  ;;  %7532 = vst [vmem:[#allocation42_spill] sm:$0xff] %v5832_v56  ;;  %v5836_v5 = vadd.f32 %v5713_v55, %v5723_v58 }
 0x326   : > { %v5812_v61 = vmul.f32 0.00390625, %v1301_v14  ;;  %v5845_v14 = vadd.f32 %v1276_v33, %v5723_v58  ;;  %v1498_v33 = vsub.f32 %v5446_v45, %v5717_v1 }
 0x327   : > { %7533 = vst [vmem:[#allocation43_spill] sm:$0xff] %v5836_v5  ;;  %v1467_v28 = vsub.f32 %v1435_v26, %v1451_v34  ;;  %v1530_v31 = vadd.f32 1e-05, %v1482_v51  ;;  %v1499_v34 = vsub.f32 %v5449_v19, %v5717_v1 }
 0x328   : > { %7536 = vst [vmem:[#allocation46_spill] sm:$0xff] %v5845_v14  ;;  %v1452_v55 = vmul.f32 %v5812_v61, %v5812_v61 }
 0x329   : > { %v1398_v25 = vpop.xlane.xlu0 %1397  ;;  %v1304_v29 = vpop.xlane.xlu1 %1303  ;;  %v1483_v56 = vmax.f32 %v1467_v28, 0.0  ;;  %4435 = vrsqrt.f32 %v1530_v31 }
 0x32a   : > { %v1436_v5 = vmul.f32 0.00390625, %v1398_v25  ;;  %v5851_v22 = vmul.f32 0.00390625, %v1304_v29 }
 0x32b   : > { %v1531_v29 = vadd.f32 1e-05, %v1483_v56  ;;  %v4432_v25 = vpop.eup %4431 }
 0x32c   : > { %v1468_v28 = vsub.f32 %v1436_v5, %v1452_v55  ;;  %v1560_v9 = vmul.f32 %v4432_v25, %v1496_v12  ;;  %v1453_v5 = vmul.f32 %v5851_v22, %v5851_v22  ;;  %v1561_v45 = vmul.f32 %v4432_v25, %v1497_v44 }
 0x32d   : > { %v1307_v1 = vpop.xlane.xlu0 %1306  ;;  %v1401_v2 = vpop.xlane.xlu1 %1400  ;;  %4437 = vrsqrt.f32 %v1531_v29 }
 0x32e   : > { %v1484_v51 = vmax.f32 %v1468_v28, 0.0  ;;  %v5873_v56 = vmul.f32 0.00390625, %v1307_v1  ;;  %v1437_v55 = vmul.f32 0.00390625, %v1401_v2  ;;  %v1603_v42 = vmul.f32 %v5762_v39, %v1560_v9 }
 0x32f   : > { %v4434_v28 = vpop.eup %4433  ;;  %v1604_v2 = vmul.f32 %v5810_v18, %v1561_v45 }
 0x330   : > { %v1532_v19 = vadd.f32 1e-05, %v1484_v51  ;;  %v1469_v26 = vsub.f32 %v1437_v55, %v1453_v5  ;;  %v1454_v31 = vmul.f32 %v5873_v56, %v5873_v56  ;;  %v1562_v44 = vmul.f32 %v4434_v28, %v1498_v33 }
 0x331   : > { %v1404_v16 = vpop.xlane.xlu0 %1403  ;;  %v1310_v14 = vpop.xlane.xlu1 %1309  ;;  %v1563_v25 = vmul.f32 %v4434_v28, %v1499_v34  ;;  %v1647_v12 = vadd.f32 %v5828_v32, %v1604_v2  ;;  %v1646_v58 = vadd.f32 %v5825_v4, %v1603_v42 }
 0x332   : > { %4439 = vrsqrt.f32 %v1532_v19  ;;  %v1438_v9 = vmul.f32 0.00390625, %v1404_v16  ;;  %v5887_v29 = vmul.f32 0.00390625, %v1310_v14  ;;  %v1485_v51 = vmax.f32 %v1469_v26, 0.0 }
 0x333   : > { %v1605_v5 = vmul.f32 %v5762_v39, %v1562_v44  ;;  %v1606_v34 = vmul.f32 %v5810_v18, %v1563_v25  ;;  %vm1679_vm1 = vcmp.ge.f32.partialorder %v1647_v12, 0.0  ;;  %vm1678_vm2 = vcmp.ge.f32.partialorder %v1646_v58, 0.0 }
 0x334   : > { %v1470_v55 = vsub.f32 %v1438_v9, %v1454_v31  ;;  %v1533_v33 = vadd.f32 1e-05, %v1485_v51  ;;  %v1455_v16 = vmul.f32 %v5887_v29, %v5887_v29  ;;  %v1711_v31 = vmul.f32 0.1, %v1647_v12 }
 0x335   : > { %v1313_v19 = vpop.xlane.xlu0 %1312  ;;  %v1407_v14 = vpop.xlane.xlu1 %1406  ;;  %v1649_v2 = vadd.f32 %v5828_v32, %v1606_v34  ;;  %v1648_v44 = vadd.f32 %v5825_v4, %v1605_v5 }
 0x336   : > { %v1486_v26 = vmax.f32 %v1470_v55, 0.0  ;;  %v5899_v42 = vmul.f32 0.00390625, %v1313_v19  ;;  %v1439_v28 = vmul.f32 0.00390625, %v1407_v14  ;;  %4441 = vrsqrt.f32 %v1533_v33  ;;  %v4436_v45 = vpop.eup %4435 }
 0x337   : > { %vm1681_vm3 = vcmp.ge.f32.partialorder %v1649_v2, 0.0  ;;  %v1713_v33 = vmul.f32 0.1, %v1649_v2  ;;  %v1743_v34 = vsel %vm1679_vm1, %v1647_v12, %v1711_v31  ;;  %vm1680_vm4 = vcmp.ge.f32.partialorder %v1648_v44, 0.0 }
 0x338   : > { %v1534_v9 = vadd.f32 1e-05, %v1486_v26  ;;  %v1471_v25 = vsub.f32 %v1439_v28, %v1455_v16  ;;  %v1456_v55 = vmul.f32 %v5899_v42, %v5899_v42  ;;  %v5913_v41 = vadd.f32 %v1743_v34, %v5733_v15 }
 0x339   : > { %v1410_v19 = vpop.xlane.xlu0 %1409  ;;  %v1316_v14 = vpop.xlane.xlu1 %1315  ;;  %v1745_v51 = vsel %vm1681_vm3, %v1649_v2, %v1713_v33  ;;  %v1710_v16 = vmul.f32 0.1, %v1646_v58  ;;  %v1712_v15 = vmul.f32 0.1, %v1648_v44 }
 0x33a   : > { %4443 = vrsqrt.f32 %v1534_v9  ;;  %v1487_v5 = vmax.f32 %v1471_v25, 0.0  ;;  %v1440_v26 = vmul.f32 0.00390625, %v1410_v19  ;;  %v5910_v13 = vmul.f32 0.00390625, %v1316_v14  ;;  %7537 = vst [vmem:[#allocation47_spill] sm:$0xff] %v5913_v41  ;;  %v4438_v31 = vpop.eup %4437 }
 0x33b   : > { %v5922_v2 = vadd.f32 %v1745_v51, %v5741_v20  ;;  %v1742_v14 = vsel %vm1678_vm2, %v1646_v58, %v1710_v16  ;;  %v1744_v37 = vsel %vm1680_vm4, %v1648_v44, %v1712_v15  ;;  %v7542_v20 = vsub.f32 %v5463_v27, %v5743_v63 }
 0x33c   : > { %v1535_v28 = vadd.f32 1e-05, %v1487_v5  ;;  %v1472_v1 = vsub.f32 %v1440_v26, %v1456_v55  ;;  %v1457_v25 = vmul.f32 %v5910_v13, %v5910_v13  ;;  %v5933_v12 = vadd.f32 %v1742_v14, %v5729_v49 }
 0x33d   : > { %v1319_v9 = vpop.xlane.xlu0 %1318  ;;  %v1413_v19 = vpop.xlane.xlu1 %1412  ;;  %7540 = vst [vmem:[#allocation14_spill] sm:$0xff] %v5922_v2  ;;  %v1807_v26 = vpack.c.bf16 %v5922_v2, %v5913_v41  ;;  %v1565_v51 = vmul.f32 %v4436_v45, %v7542_v20  ;;  %v5943_v2 = vadd.f32 %v1744_v37, %v7545_v57  ;;  %v7547_v27 = vsub.f32 %v5476_v60, %v5780_v24 }
 0x33e   : > { %4445 = vrsqrt.f32 %v1535_v28  ;;  %v1488_v55 = vmax.f32 %v1472_v1, 0.0  ;;  %v5925_v33 = vmul.f32 0.00390625, %v1319_v9  ;;  %v1441_v34 = vmul.f32 0.00390625, %v1413_v19  ;;  %7541 = vst [vmem:[#allocation15_spill] sm:$0xff] %v5933_v12  ;;  %v7544_v28 = vld [vmem:[#allocation17_spill] sm:$0xff] }
 0x33f   : > { %v5927_v5 = vpop.eup %4439  ;;  %2059 = vmatprep.mubr.bf16.mxu1 %v1807_v26  ;;  %7546 = vst [vmem:[#allocation17_spill] sm:$0xff] %v5943_v2  ;;  %v1567_v14 = vmul.f32 %v4438_v31, %v7547_v27  ;;  %v1806_v37 = vpack.c.bf16 %v5943_v2, %v5933_v12 }
 0x340   : > { %v1536_v58 = vadd.f32 1e-05, %v1488_v55  ;;  %v1473_v19 = vsub.f32 %v1441_v34, %v1457_v25  ;;  %v1458_v49 = vmul.f32 %v5925_v33, %v5925_v33  ;;  %v1608_v55 = vmul.f32 %v5810_v18, %v1565_v51 }
 0x341   : > { %v1416_v44 = vpop.xlane.xlu0 %1415  ;;  %v1322_v15 = vpop.xlane.xlu1 %1321  ;;  %v1610_v57 = vmul.f32 %v5810_v18, %v1567_v14  ;;  %v7548_v34 = vsub.f32 %v5460_v50, %v5743_v63  ;;  %2060 = vmatmul.mubr.bf16.vlgmr.msra.gmra.mxu1 %v1806_v37  ;;  %v7551_v37 = vsub.f32 %v5473_v40, %v5780_v24 }
 0x342   : > { %4447 = vrsqrt.f32 %v1536_v58  ;;  %v1489_v20 = vmax.f32 %v1473_v19, 0.0  ;;  %v1442_v16 = vmul.f32 0.00390625, %v1416_v44  ;;  %v5951_v9 = vmul.f32 0.00390625, %v1322_v15  ;;  %v7550_v44 = vld [vmem:[#allocation19_spill] sm:$0xff]  ;;  %v7553_v58 = vld [vmem:[#allocation21_spill] sm:$0xff] }
 0x343   : > { %v1651_v25 = vadd.f32 %v5828_v32, %v1608_v55  ;;  %v1564_v26 = vmul.f32 %v4436_v45, %v7548_v34  ;;  %v5960_v60 = vpop.eup %4441  ;;  %v1653_v12 = vadd.f32 %v5828_v32, %v1610_v57  ;;  %v1566_v19 = vmul.f32 %v4438_v31, %v7551_v37 }
 0x344   : > { %v1537_v27 = vadd.f32 1e-05, %v1489_v20  ;;  %v1474_v51 = vsub.f32 %v1442_v16, %v1458_v49  ;;  %v1459_v14 = vmul.f32 %v5951_v9, %v5951_v9 }
 0x345   : > { %v1325_v2 = vpop.xlane.xlu0 %1324  ;;  %v1419_v55 = vpop.xlane.xlu1 %1418  ;;  %vm1683_vm5 = vcmp.ge.f32.partialorder %v1651_v25, 0.0  ;;  %v1715_v50 = vmul.f32 0.1, %v1651_v25  ;;  %vm1685_vm6 = vcmp.ge.f32.partialorder %v1653_v12, 0.0  ;;  %v1717_v20 = vmul.f32 0.1, %v1653_v12 }
 0x346   : > { %4449 = vrsqrt.f32 %v1537_v27  ;;  %v1490_v63 = vmax.f32 %v1474_v51, 0.0  ;;  %v5969_v45 = vmul.f32 0.00390625, %v1325_v2  ;;  %v1443_v16 = vmul.f32 0.00390625, %v1419_v55 }
 0x347   : > { %v5971_v49 = vpop.eup %4443  ;;  %v1747_v34 = vsel %vm1683_vm5, %v1651_v25, %v1715_v50  ;;  %v1749_v1 = vsel %vm1685_vm6, %v1653_v12, %v1717_v20  ;;  %v1607_v40 = vmul.f32 %v5762_v39, %v1564_v26 }
 0x348   : > { %v1538_v15 = vadd.f32 1e-05, %v1490_v63  ;;  %v1475_v51 = vsub.f32 %v1443_v16, %v1459_v14  ;;  %v1460_v2 = vmul.f32 %v5969_v45, %v5969_v45  ;;  %v5983_v48 = vadd.f32 %v1747_v34, %v5750_v43 }
 0x349   : > { %v1422_v55 = vpop.xlane.xlu0 %1421  ;;  %v1328_v25 = vpop.xlane.xlu1 %1327  ;;  %v5987_v50 = vadd.f32 %v1749_v1, %v5756_v47  ;;  %v1609_v16 = vmul.f32 %v5762_v39, %v1566_v19  ;;  %v1650_v12 = vadd.f32 %v5825_v4, %v1607_v40  ;;  %v7556_v43 = vsub.f32 %v5494_v3, %v5812_v61 }
 0x34a   : > { %7554 = vst [vmem:[#allocation30_spill] sm:$0xff] %v5983_v48  ;;  %4451 = vrsqrt.f32 %v1538_v15  ;;  %v1491_v24 = vmax.f32 %v1475_v51, 0.0  ;;  %v1444_v31 = vmul.f32 0.00390625, %v1422_v55  ;;  %v5991_v14 = vmul.f32 0.00390625, %v1328_v25  ;;  %v7559_v51 = vld [vmem:[#allocation23_spill] sm:$0xff] }
 0x34b   : > { %7555 = vst [vmem:[#allocation19_spill] sm:$0xff] %v5987_v50  ;;  %v5989_v63 = vpop.eup %4445  ;;  %v1569_v20 = vmul.f32 %v5927_v5, %v7556_v43  ;;  %v1809_v34 = vpack.c.bf16 %v5987_v50, %v5983_v48  ;;  %v7557_v47 = vsub.f32 %v5512_v46, %v5851_v22  ;;  %v1652_v3 = vadd.f32 %v5825_v4, %v1609_v16  ;;  %v7560_v16 = vld [vmem:[#allocation24_spill] sm:$0xff] }
 0x34c   : > { %v1539_v26 = vadd.f32 1e-05, %v1491_v24  ;;  %v1476_v15 = vsub.f32 %v1444_v31, %v1460_v2  ;;  %vm1682_vm7 = vcmp.ge.f32.partialorder %v1650_v12, 0.0  ;;  %v1714_v24 = vmul.f32 0.1, %v1650_v12 }
 0x34d   : > { %v1571_v1 = vmul.f32 %v5960_v60, %v7557_v47  ;;  %v1331_v25 = vpop.xlane.xlu0 %1330  ;;  %v1425_v40 = vpop.xlane.xlu1 %1424  ;;  %2069 = vmatprep.mubr.bf16.mxu1 %v1809_v34  ;;  %vm1684_vm8 = vcmp.ge.f32.partialorder %v1652_v3, 0.0  ;;  %v1716_v43 = vmul.f32 0.1, %v1652_v3  ;;  %v1461_v47 = vmul.f32 %v5991_v14, %v5991_v14 }
 0x34e   : > { %4453 = vrsqrt.f32 %v1539_v26  ;;  %v1492_v2 = vmax.f32 %v1476_v15, 0.0  ;;  %v6010_v31 = vmul.f32 0.00390625, %v1331_v25  ;;  %v1445_v19 = vmul.f32 0.00390625, %v1425_v40  ;;  %v7561_v26 = vld [vmem:[#allocation25_spill] sm:$0xff] }
 0x34f   : > { %v6012_v46 = vpop.eup %4447  ;;  %v1746_v55 = vsel %vm1682_vm7, %v1650_v12, %v1714_v24  ;;  %v1748_v34 = vsel %vm1684_vm8, %v1652_v3, %v1716_v43  ;;  %v1614_v3 = vmul.f32 %v5810_v18, %v1571_v1  ;;  %v7564_v1 = vld [vmem:[#allocation26_spill] sm:$0xff] }
 0x350   : > { %v1540_v57 = vadd.f32 1e-05, %v1492_v2  ;;  %v1525_v15 = vsub.f32 %v7561_v26, %v6010_v31  ;;  %v6021_v25 = vadd.f32 %v1746_v55, %v5747_v17  ;;  %v1477_v50 = vsub.f32 %v1445_v19, %v1461_v47 }
 0x351   : > { %v1462_v48 = vmul.f32 %v6010_v31, %v6010_v31  ;;  %v1428_v37 = vpop.xlane.xlu0 %1427  ;;  %v1334_v41 = vpop.xlane.xlu1 %1333  ;;  %v6026_v40 = vadd.f32 %v1748_v34, %v5753_v54  ;;  %v1612_v2 = vmul.f32 %v5810_v18, %v1569_v20  ;;  %v7562_v19 = vsub.f32 %v5491_v53, %v5812_v61  ;;  %v7565_v53 = vld [vmem:[#allocation27_spill] sm:$0xff] }
 0x352   : > { %4455 = vrsqrt.f32 %v1540_v57  ;;  %v1446_v12 = vmul.f32 0.00390625, %v1428_v37  ;;  %v1493_v27 = vmax.f32 %v1477_v50, 0.0  ;;  %v6032_v17 = vmul.f32 0.00390625, %v1334_v41 }
 0x353   : > { %v6029_v24 = vpop.eup %4449  ;;  %v1568_v55 = vmul.f32 %v5927_v5, %v7562_v19  ;;  %v1808_v57 = vpack.c.bf16 %v6026_v40, %v6021_v25  ;;  %v1655_v37 = vadd.f32 %v5828_v32, %v1612_v2  ;;  %v7563_v20 = vsub.f32 %v5509_v38, %v5851_v22 }
 0x354   : > { %v1478_v54 = vsub.f32 %v1446_v12, %v1462_v48  ;;  %v1541_v43 = vadd.f32 1e-05, %v1493_v27  ;;  %v1657_v41 = vadd.f32 %v5828_v32, %v1614_v3  ;;  %v1526_v47 = vsub.f32 %v7564_v1, %v6032_v17 }
 0x355   : > { %v1570_v50 = vmul.f32 %v5960_v60, %v7563_v20  ;;  %v1527_v61 = vsub.f32 %v7565_v53, %v6032_v17  ;;  %2070 = vmatmul.mubr.bf16.gmra.mxu1 %v1808_v57  ;;  %vm1687_vm9 = vcmp.ge.f32.partialorder %v1655_v37, 0.0  ;;  %v1719_v48 = vmul.f32 0.1, %v1655_v37  ;;  %v1431_v12 = vpop.xlane.xlu1 %1430 }
 0x356   : > { %v1494_v5 = vmax.f32 %v1478_v54, 0.0  ;;  %v1611_v34 = vmul.f32 %v5762_v39, %v1568_v55  ;;  %4457 = vrsqrt.f32 %v1541_v43  ;;  %vm1689_vm10 = vcmp.ge.f32.partialorder %v1657_v41, 0.0 }
 0x357   : > { %v6051_v2 = vpop.eup %4451  ;;  %v1721_v38 = vmul.f32 0.1, %v1657_v41  ;;  %v1613_v22 = vmul.f32 %v5762_v39, %v1570_v50  ;;  %v1751_v27 = vsel %vm1687_vm9, %v1655_v37, %v1719_v48  ;;  %v1463_v19 = vmul.f32 %v6032_v17, %v6032_v17 }
 0x358   : > { %v1542_v60 = vadd.f32 1e-05, %v1494_v5  ;;  %v1654_v3 = vadd.f32 %v5825_v4, %v1611_v34  ;;  %v6058_v54 = vadd.f32 %v1751_v27, %v5765_v36  ;;  %v1447_v20 = vmul.f32 0.00390625, %v1431_v12 }
 0x359   : > { %v1753_v57 = vsel %vm1689_vm10, %v1657_v41, %v1721_v38  ;;  %v1656_v55 = vadd.f32 %v5825_v4, %v1613_v22  ;;  %v7566_v41 = vsub.f32 %v5530_v7, %v5873_v56  ;;  %v7568_v22 = vsub.f32 %v5527_v21, %v5873_v56 }
 0x35a   : > { %4459 = vrsqrt.f32 %v1542_v60  ;;  %v6062_v43 = vadd.f32 %v1753_v57, %v5771_v6  ;;  %vm1686_vm11 = vcmp.ge.f32.partialorder %v1654_v3, 0.0  ;;  %v1718_v50 = vmul.f32 0.1, %v1654_v3 }
 0x35b   : > { %v6064_v5 = vpop.eup %4453  ;;  %vm1688_vm12 = vcmp.ge.f32.partialorder %v1656_v55, 0.0  ;;  %v1720_v37 = vmul.f32 0.1, %v1656_v55  ;;  %v1479_v48 = vsub.f32 %v1447_v20, %v1463_v19  ;;  %v1573_v36 = vmul.f32 %v5971_v49, %v7566_v41  ;;  %v7569_v19 = vld [vmem:[#allocation31_spill] sm:$0xff] }
 0x35c   : > { %v1811_v34 = vpack.c.bf16 %v6062_v43, %v6058_v54  ;;  %v1750_v12 = vsel %vm1686_vm11, %v1654_v3, %v1718_v50  ;;  %v7567_v6 = vsub.f32 %v5548_v23, %v5887_v29  ;;  %v1572_v60 = vmul.f32 %v5971_v49, %v7568_v22 }
 0x35d   : > { %v1752_v27 = vsel %vm1688_vm12, %v1656_v55, %v1720_v37  ;;  %v6081_v57 = vadd.f32 %v1750_v12, %v7569_v19  ;;  %v1495_v7 = vmax.f32 %v1479_v48, 0.0  ;;  %v1616_v20 = vmul.f32 %v5810_v18, %v1573_v36 }
 0x35e   : > { %v1575_v38 = vmul.f32 %v5989_v63, %v7567_v6  ;;  %2079 = vmatprep.mubr.bf16.mxu1 %v1811_v34  ;;  %v6085_v3 = vadd.f32 %v1752_v27, %v5768_v10  ;;  %v7571_v50 = vsub.f32 %v5545_v59, %v5887_v29  ;;  %v1615_v56 = vmul.f32 %v5762_v39, %v1572_v60 }
 0x35f   : > { %v6093_v49 = vpop.eup %4455  ;;  %v1543_v55 = vadd.f32 1e-05, %v1495_v7  ;;  %v1659_v37 = vadd.f32 %v5828_v32, %v1616_v20  ;;  %v7572_v48 = vsub.f32 %v5566_v35, %v5899_v42  ;;  %v7573_v41 = vsub.f32 %v7539_v52, %v5910_v13 }
 0x360   : > { %7570 = vst [vmem:[#allocation21_spill] sm:$0xff] %v6085_v3  ;;  %v1618_v23 = vmul.f32 %v5810_v18, %v1575_v38  ;;  %v1574_v21 = vmul.f32 %v5989_v63, %v7571_v50  ;;  %v1810_v59 = vpack.c.bf16 %v6085_v3, %v6081_v57  ;;  %v1658_v34 = vadd.f32 %v5825_v4, %v1615_v56  ;;  %v7633_v3 = vld [vmem:[#allocation17_spill] sm:$0xff] }
 0x361   : > { %v1577_v10 = vmul.f32 %v6012_v46, %v7572_v48  ;;  %v1579_v36 = vmul.f32 %v6029_v24, %v7573_v41  ;;  %4461 = vrsqrt.f32 %v1543_v55  ;;  %vm1691_vm13 = vcmp.ge.f32.partialorder %v1659_v37, 0.0 }
 0x362   : > { %v1661_v29 = vadd.f32 %v5828_v32, %v1618_v23  ;;  %v1617_v63 = vmul.f32 %v5762_v39, %v1574_v21  ;;  %v1723_v12 = vmul.f32 0.1, %v1659_v37  ;;  %2080 = vmatmul.mubr.bf16.gmra.mxu1 %v1810_v59  ;;  %vm1690_vm15 = vcmp.ge.f32.partialorder %v1658_v34, 0.0 }
 0x363   : > { %v1620_v35 = vmul.f32 %v5810_v18, %v1577_v10  ;;  %v1722_v22 = vmul.f32 0.1, %v1658_v34  ;;  %v1622_v60 = vmul.f32 %v5810_v18, %v1579_v36  ;;  %v6113_v19 = vpop.eup %4457  ;;  %v7578_v41 = vsub.f32 %v5563_v8, %v5899_v42 }
 0x364   : > { %vm1693_vm14 = vcmp.ge.f32.partialorder %v1661_v29, 0.0  ;;  %v1725_v6 = vmul.f32 0.1, %v1661_v29  ;;  %v1660_v52 = vadd.f32 %v5825_v4, %v1617_v63  ;;  %v1755_v38 = vsel %vm1691_vm13, %v1659_v37, %v1723_v12  ;;  %v7576_v37 = vld [vmem:[#allocation32_spill] sm:$0xff] }
 0x365   : > { %v1663_v27 = vadd.f32 %v5828_v32, %v1620_v35  ;;  %v6116_v20 = vadd.f32 %v1755_v38, %v5783_v11  ;;  %v1754_v21 = vsel %vm1690_vm15, %v1658_v34, %v1722_v22  ;;  %v1665_v56 = vadd.f32 %v5828_v32, %v1622_v60 }
 0x366   : > { %v1757_v7 = vsel %vm1693_vm14, %v1661_v29, %v1725_v6  ;;  %vm1692_vm0 = vcmp.ge.f32.partialorder %v1660_v52, 0.0  ;;  %v1724_v23 = vmul.f32 0.1, %v1660_v52  ;;  %v6123_v48 = vadd.f32 %v1754_v21, %v7576_v37  ;;  %v7582_v6 = vld [vmem:[#allocation35_spill] sm:$0xff] }
 0x367   : > { %7574 = vst [vmem:[#allocation23_spill] sm:$0xff] %v6116_v20  ;;  %v6119_v50 = vadd.f32 %v1757_v7, %v5789_v0  ;;  %vm1695_vm1 = vcmp.ge.f32.partialorder %v1663_v27, 0.0  ;;  %v1727_v10 = vmul.f32 0.1, %v1663_v27  ;;  %v1576_v11 = vmul.f32 %v6012_v46, %v7578_v41  ;;  %v6129_v36 = vpop.eup %4459  ;;  %v7587_v7 = vld [vmem:[#allocation16_spill] sm:$0xff] }
 0x368   : > { %v1756_v55 = vsel %vm1692_vm0, %v1660_v52, %v1724_v23  ;;  %7577 = vst [vmem:[#allocation25_spill] sm:$0xff] %v6123_v48  ;;  %vm1697_vm2 = vcmp.ge.f32.partialorder %v1665_v56, 0.0  ;;  %v1729_v29 = vmul.f32 0.1, %v1665_v56  ;;  %v7580_v34 = vsub.f32 %v7538_v30, %v5910_v13 }
 0x369   : > { %7575 = vst [vmem:[#allocation24_spill] sm:$0xff] %v6119_v50  ;;  %v1813_v0 = vpack.c.bf16 %v6119_v50, %v6116_v20  ;;  %v6134_v59 = vadd.f32 %v1756_v55, %v5786_v62  ;;  %v1759_v63 = vsel %vm1695_vm1, %v1663_v27, %v1727_v10  ;;  %v1619_v8 = vmul.f32 %v5762_v39, %v1576_v11  ;;  %v7631_v20 = vld [vmem:[#allocation14_spill] sm:$0xff] }
 0x36a   : > { %v1578_v12 = vmul.f32 %v6029_v24, %v7580_v34  ;;  %v7581_v42 = vsub.f32 %v7544_v28, %v5925_v33  ;;  %v1761_v35 = vsel %vm1697_vm2, %v1665_v56, %v1729_v29  ;;  %v6148_v52 = vadd.f32 %v1759_v63, %v7582_v6  ;;  %v7585_v24 = vld [vmem:[#allocation37_spill] sm:$0xff] }
 0x36b   : > { %7579 = vst [vmem:[#allocation26_spill] sm:$0xff] %v6134_v59  ;;  %2089 = vmatprep.mubr.bf16.mxu1 %v1813_v0  ;;  %v1812_v62 = vpack.c.bf16 %v6134_v59, %v6123_v48  ;;  %v7584_v30 = vsub.f32 %v7550_v44, %v5951_v9  ;;  %v6155_v38 = vadd.f32 %v1761_v35, %v7585_v24  ;;  %v7589_v44 = vld [vmem:[#allocation18_spill] sm:$0xff] }
 0x36c   : > { %v1581_v46 = vmul.f32 %v6051_v2, %v7581_v42  ;;  %7583 = vst [vmem:[#allocation27_spill] sm:$0xff] %v6148_v52  ;;  %v1621_v28 = vmul.f32 %v5762_v39, %v1578_v12  ;;  %v1662_v22 = vadd.f32 %v5825_v4, %v1619_v8  ;;  %v7588_v23 = vsub.f32 %v7587_v7, %v5925_v33  ;;  %v7593_v8 = vld [vmem:[#allocation34_spill] sm:$0xff] }
 0x36d   : > { %v1583_v13 = vmul.f32 %v6064_v5, %v7584_v30  ;;  %7586 = vst [vmem:[#allocation31_spill] sm:$0xff] %v6155_v38  ;;  %2090 = vmatmul.mubr.bf16.gmra.mxu1 %v1812_v62  ;;  %v7590_v56 = vsub.f32 %v7589_v44, %v5951_v9  ;;  %v7591_v37 = vsub.f32 %v7553_v58, %v5969_v45 }
 0x36e   : > { %v1624_v60 = vmul.f32 %v5810_v18, %v1581_v46  ;;  %v1580_v21 = vmul.f32 %v6051_v2, %v7588_v23  ;;  %v1815_v41 = vpack.c.bf16 %v6155_v38, %v6148_v52  ;;  %v1664_v11 = vadd.f32 %v5825_v4, %v1621_v28  ;;  %v6180_v29 = vpop.eup %4461  ;;  %v2141_v52 = vld [vmem:[#allocation7 + $0x7] ss:$8 sm:$0x3] }
 0x36f   : > { %v1626_v27 = vmul.f32 %v5810_v18, %v1583_v13  ;;  %v1582_v55 = vmul.f32 %v6064_v5, %v7590_v56  ;;  %v1585_v10 = vmul.f32 %v6093_v49, %v7591_v37  ;;  %vm1694_vm3 = vcmp.ge.f32.partialorder %v1662_v22, 0.0  ;;  %v7595_v13 = vld [vmem:[#allocation36_spill] sm:$0xff] }
 0x370   : > { %v1726_v0 = vmul.f32 0.1, %v1662_v22  ;;  %v1667_v33 = vadd.f32 %v5828_v32, %v1624_v60  ;;  %v1623_v9 = vmul.f32 %v5762_v39, %v1580_v21  ;;  %2099 = vmatprep.mubr.bf16.mxu1 %v1815_v41  ;;  %vm1696_vm4 = vcmp.ge.f32.partialorder %v1664_v11, 0.0  ;;  %v7599_v21 = vld [vmem:[#allocation41_spill] sm:$0xff]  ;;  %v7601_v41 = vld [vmem:[#allocation20_spill] sm:$0xff] }
 0x371   : > { %v1669_v2 = vadd.f32 %v5828_v32, %v1626_v27  ;;  %v1625_v5 = vmul.f32 %v5762_v39, %v1582_v55  ;;  %v1728_v58 = vmul.f32 0.1, %v1664_v11  ;;  %v7592_v34 = vsub.f32 %v7559_v51, %v5991_v14  ;;  %v7597_v27 = vld [vmem:[#allocation39_spill] sm:$0xff] }
 0x372   : > { %v1758_v63 = vsel %vm1694_vm3, %v1662_v22, %v1726_v0  ;;  %vm1699_vm5 = vcmp.ge.f32.partialorder %v1667_v33, 0.0  ;;  %v1731_v46 = vmul.f32 0.1, %v1667_v33  ;;  %v1666_v6 = vadd.f32 %v5825_v4, %v1623_v9 }
 0x373   : > { %v1587_v12 = vmul.f32 %v6113_v19, %v7592_v34  ;;  %v6187_v42 = vadd.f32 %v1758_v63, %v7593_v8  ;;  %vm1701_vm6 = vcmp.ge.f32.partialorder %v1669_v2, 0.0  ;;  %v1760_v62 = vsel %vm1696_vm4, %v1664_v11, %v1728_v58 }
 0x374   : > { %v1733_v35 = vmul.f32 0.1, %v1669_v2  ;;  %v1668_v30 = vadd.f32 %v5825_v4, %v1625_v5  ;;  %v6192_v24 = vadd.f32 %v1760_v62, %v7595_v13  ;;  %v1763_v28 = vsel %vm1699_vm5, %v1667_v33, %v1731_v46  ;;  %v7603_v33 = vld [vmem:[#allocation22_spill] sm:$0xff] }
 0x375   : > { %7594 = vst [vmem:[#allocation32_spill] sm:$0xff] %v6187_v42  ;;  %v1628_v51 = vmul.f32 %v5810_v18, %v1585_v10  ;;  %v1630_v22 = vmul.f32 %v5810_v18, %v1587_v12  ;;  %v6197_v7 = vadd.f32 %v1763_v28, %v7597_v27  ;;  %vm1698_vm7 = vcmp.ge.f32.partialorder %v1666_v6, 0.0  ;;  %v7605_v12 = vld [vmem:[#allocation38_spill] sm:$0xff]  ;;  %v7610_v27 = vld [vmem:[#allocation43_spill] sm:$0xff] }
 0x376   : > { %7596 = vst [vmem:[#allocation35_spill] sm:$0xff] %v6192_v24  ;;  %v1765_v60 = vsel %vm1701_vm6, %v1669_v2, %v1733_v35  ;;  %vm1700_vm8 = vcmp.ge.f32.partialorder %v1668_v30, 0.0  ;;  %v1814_v23 = vpack.c.bf16 %v6192_v24, %v6187_v42  ;;  %v1730_v56 = vmul.f32 0.1, %v1666_v6  ;;  %v1278_v35 = vpop.f32.mrf.mxu0 }
 0x377   : > { %7598 = vst [vmem:[#allocation37_spill] sm:$0xff] %v6197_v7  ;;  %v6202_v44 = vadd.f32 %v1765_v60, %v7599_v21  ;;  %v1732_v55 = vmul.f32 0.1, %v1668_v30  ;;  %v1671_v37 = vadd.f32 %v5828_v32, %v1628_v51  ;;  %v1673_v10 = vadd.f32 %v5828_v32, %v1630_v22  ;;  %v7612_v21 = vld [vmem:[#allocation45_spill] sm:$0xff] }
 0x378   : > { %v7602_v11 = vsub.f32 %v7601_v41, %v5969_v45  ;;  %v7604_v2 = vsub.f32 %v7603_v33, %v5991_v14  ;;  %2100 = vmatmul.mubr.bf16.gmra.mxu1 %v1814_v23  ;;  %v1762_v58 = vsel %vm1698_vm7, %v1666_v6, %v1730_v56  ;;  %v1589_v34 = vmul.f32 %v6129_v36, %v1525_v15  ;;  %v7614_v33 = vld [vmem:[#allocation42_spill] sm:$0xff] }
 0x379   : > { %7600 = vst [vmem:[#allocation16_spill] sm:$0xff] %v6202_v44  ;;  %v1817_v5 = vpack.c.bf16 %v6202_v44, %v6197_v7  ;;  %v1764_v63 = vsel %vm1700_vm8, %v1668_v30, %v1732_v55  ;;  %v6221_v45 = vadd.f32 %v1762_v58, %v7605_v12  ;;  %vm1703_vm9 = vcmp.ge.f32.partialorder %v1671_v37, 0.0  ;;  %v7618_v58 = vld [vmem:[#allocation29_spill] sm:$0xff] }
 0x37a   : > { %v1584_v0 = vmul.f32 %v6093_v49, %v7602_v11  ;;  %v1586_v9 = vmul.f32 %v6113_v19, %v7604_v2  ;;  %v7607_v49 = vld [vmem:[#allocation40_spill] sm:$0xff]  ;;  %vm1705_vm10 = vcmp.ge.f32.partialorder %v1673_v10, 0.0  ;;  %v1735_v14 = vmul.f32 0.1, %v1671_v37 }
 0x37b   : > { %7606 = vst [vmem:[#allocation18_spill] sm:$0xff] %v6221_v45  ;;  %v6224_v8 = vadd.f32 %v1764_v63, %v7607_v49  ;;  %2109 = vmatprep.mubr.bf16.mxu1 %v1817_v5  ;;  %v1737_v19 = vmul.f32 0.1, %v1673_v10  ;;  %v1591_v15 = vmul.f32 %v6180_v29, %v1527_v61  ;;  %v1632_v6 = vmul.f32 %v5810_v18, %v1589_v34 }
 0x37c   : > { %v1627_v46 = vmul.f32 %v5762_v39, %v1584_v0  ;;  %v1629_v62 = vmul.f32 %v5762_v39, %v1586_v9  ;;  %v7609_v30 = vsub.f32 %v7560_v16, %v6010_v31  ;;  %v1767_v28 = vsel %vm1703_vm9, %v1671_v37, %v1735_v14  ;;  %v7616_v9 = vld [vmem:[#allocation44_spill] sm:$0xff] }
 0x37d   : > { %7608 = vst [vmem:[#allocation34_spill] sm:$0xff] %v6224_v8  ;;  %v1816_v26 = vpack.c.bf16 %v6224_v8, %v6221_v45  ;;  %v1769_v51 = vsel %vm1705_vm10, %v1673_v10, %v1737_v19  ;;  %v6242_v23 = vadd.f32 %v1767_v28, %v7610_v27  ;;  %v1634_v61 = vmul.f32 %v5810_v18, %v1591_v15  ;;  %v4345_v27 = vld [vmem:[#allocation5 + $0x74] ss:$8 sps:$4 sm:$0xff]  }
 0x37e   : > { %v1588_v13 = vmul.f32 %v6129_v36, %v7609_v30  ;;  %v1670_v22 = vadd.f32 %v5825_v4, %v1627_v46  ;;  %v1672_v60 = vadd.f32 %v5825_v4, %v1629_v62  ;;  %v6245_v53 = vadd.f32 %v1769_v51, %v7612_v21  ;;  %v1280_v36 = vpop.f32.mrf.mxu0  ;;  %v7623_v30 = vld [vmem:[#allocation33_spill] sm:$0xff]  ;;  %2883 = vmatprep.subr.bf16.mxu0 %v4345_v27 }
 0x37f   : > { %7611 = vst [vmem:[#allocation36_spill] sm:$0xff] %v6242_v23  ;;  %v1675_v56 = vadd.f32 %v5828_v32, %v1632_v6  ;;  %v1677_v37 = vadd.f32 %v5828_v32, %v1634_v61  ;;  %v1590_v18 = vmul.f32 %v6180_v29, %v1526_v47  ;;  %v1281_v63 = vadd.f32 %v1280_v36, %v7618_v58  ;;  %v7619_v29 = vld [vmem:[#allocation46_spill] sm:$0xff]  ;;  %v4348_v21 = vld [vmem:[#allocation5 + $0x64] ss:$8 sps:$4 sm:$0xff]  }
 0x380   : > { %7613 = vst [vmem:[#allocation39_spill] sm:$0xff] %v6245_v53  ;;  %vm1702_vm11 = vcmp.ge.f32.partialorder %v1670_v22, 0.0  ;;  %vm1704_vm12 = vcmp.ge.f32.partialorder %v1672_v60, 0.0  ;;  %v1734_v31 = vmul.f32 0.1, %v1670_v22  ;;  %v1819_v55 = vpack.c.bf16 %v6245_v53, %v6242_v23  ;;  %2110 = vmatmul.mubr.bf16.gmra.mxu1 %v1816_v26  ;;  %v7622_v26 = vld [vmem:[#allocation28_spill] sm:$0xff] }
 0x381   : > { %v1736_v16 = vmul.f32 0.1, %v1672_v60  ;;  %vm1707_vm13 = vcmp.ge.f32.partialorder %v1675_v56, 0.0  ;;  %v1739_v10 = vmul.f32 0.1, %v1675_v56  ;;  %v1631_v0 = vmul.f32 %v5762_v39, %v1588_v13 }
 0x382   : > { %v1766_v41 = vsel %vm1702_vm11, %v1670_v22, %v1734_v31  ;;  %2119 = vmatprep.mubr.bf16.mxu1 %v1819_v55  ;;  %vm1709_vm14 = vcmp.ge.f32.partialorder %v1677_v37, 0.0  ;;  %v1741_v32 = vmul.f32 0.1, %v1677_v37  ;;  %v1633_v12 = vmul.f32 %v5762_v39, %v1590_v18  ;;  %v4351_v61 = vld [vmem:[#allocation5 + $0x54] ss:$8 sps:$4 sm:$0xff]  }
 0x383   : > { %v1768_v11 = vsel %vm1704_vm12, %v1672_v60, %v1736_v16  ;;  %v6258_v2 = vadd.f32 %v1766_v41, %v7614_v33  ;;  %v1771_v34 = vsel %vm1707_vm13, %v1675_v56, %v1739_v10  ;;  %v1674_v17 = vadd.f32 %v5825_v4, %v1631_v0  ;;  %v4343_v60 = vld [vmem:[#allocation5 + $0x70] ss:$8 sps:$4 sm:$0xff]   ;;  %v4354_v31 = vld [vmem:[#allocation5 + $0x44] ss:$8 sps:$4 sm:$0xff]   ;;  %v4352_v16 = vld [vmem:[#allocation5 + $0x40] ss:$8 sps:$4 sm:$0xff]  }
 0x384   : > { %v6261_v5 = vadd.f32 %v1768_v11, %v7616_v9  ;;  %v1773_v47 = vsel %vm1709_vm14, %v1677_v37, %v1741_v32  ;;  %v6269_v49 = vadd.f32 %v1771_v34, %v7619_v29  ;;  %v1676_v19 = vadd.f32 %v5825_v4, %v1633_v12  ;;  %2884 = vmatpush1.bf16.msra.mxu0 %v4343_v60  ;;  %v4349_v56 = vld [vmem:[#allocation5 + $0x50] ss:$8 sps:$4 sm:$0xff]   ;;  %v4357_v36 = vld [vmem:[#allocation5 + $0x34] ss:$8 sps:$4 sm:$0xff]   ;;  %v7626_v10 = vld [vmem:[#allocation12_spill] sm:$0xff] }
 0x385   : > { %7615 = vst [vmem:[#allocation41_spill] sm:$0xff] %v6258_v2  ;;  %v6271_v14 = vadd.f32 %v1773_v47, %v1281_v63  ;;  %vm1706_vm15 = vcmp.ge.f32.partialorder %v1674_v17, 0.0  ;;  %v1738_v46 = vmul.f32 0.1, %v1674_v17  ;;  %v1279_v15 = vadd.f32 %v1278_v35, %v7622_v26  ;;  %v4346_v35 = vld [vmem:[#allocation5 + $0x60] ss:$8 sps:$4 sm:$0xff]   ;;  %2885 = vmatprep.subr.bf16.mxu0 %v4348_v21 }
 0x386   : > { %7617 = vst [vmem:[#allocation20_spill] sm:$0xff] %v6261_v5  ;;  %v1818_v1 = vpack.c.bf16 %v6261_v5, %v6258_v2  ;;  %7620 = vst [vmem:[#allocation22_spill] sm:$0xff] %v6269_v49  ;;  %vm1708_vm0 = vcmp.ge.f32.partialorder %v1676_v19, 0.0  ;;  %v1740_v39 = vmul.f32 0.1, %v1676_v19  ;;  %v1275_v13 = vadd.f32 %v7623_v30, %v7622_v26  ;;  %v7627_v11 = vld [vmem:[#allocation13_spill] sm:$0xff] }
 0x387   : > { %7621 = vst [vmem:[#allocation38_spill] sm:$0xff] %v6271_v14  ;;  %v1821_v62 = vpack.c.bf16 %v6271_v14, %v6269_v49  ;;  %v1770_v6 = vsel %vm1706_vm15, %v1674_v17, %v1738_v46  ;;  %v4355_v55 = vld [vmem:[#allocation5 + $0x30] ss:$8 sps:$4 sm:$0xff]   ;;  %v1855_v37 = vld [vmem:[#allocation7 + $0x6] ss:$8 sm:$0x3] }
 0x388   : > { %2120 = vmatmul.mubr.bf16.gmra.mxu1 %v1818_v1  ;;  %v1772_v28 = vsel %vm1708_vm0, %v1676_v19, %v1740_v39  ;;  %v6281_v22 = vadd.f32 %v1770_v6, %v1275_v13  ;;  %2886 = vmatpush1.bf16.msra.mxu0 %v4346_v35  ;;  %v6286_v41 = vrot.slane %v1855_v37, %v7626_v10  ;;  %v4358_v6 = vld [vmem:[#allocation5 + $0x20] ss:$8 sps:$4 sm:$0xff]   ;;  %v4360_v30 = vld [vmem:[#allocation5 + $0x24] ss:$8 sps:$4 sm:$0xff]  }
 0x389   : > { %2129 = vmatprep.mubr.bf16.mxu1 %v1821_v62  ;;  %v6279_v51 = vadd.f32 %v1772_v28, %v1279_v15  ;;  %2887 = vmatprep.subr.bf16.mxu0 %v4351_v61  ;;  %v6289_v18 = vrot.slane %v1855_v37, %v7627_v11 }
 0x38a   : > { %7625 = vst [vmem:[#allocation43_spill] sm:$0xff] %v6281_v22 }
 0x38b   : > { %7624 = vst [vmem:[#allocation40_spill] sm:$0xff] %v6279_v51  ;;  %v1820_v4 = vpack.c.bf16 %v6279_v51, %v6281_v22 }
 0x38c   : > { %2888 = vmatpush1.bf16.msra.mxu0 %v4349_v56 }
 0x38d   : > { %2889 = vmatprep.subr.bf16.mxu0 %v4354_v31 }
 0x390   : > { %2130 = vmatmul.mubr.bf16.gmra.mxu1 %v1820_v4  ;;  %2890 = vmatpush1.bf16.msra.mxu0 %v4352_v16 }
 0x391   : > { %2891 = vmatprep.subr.bf16.mxu0 %v4357_v36 }
 0x394   : > { %2892 = vmatpush1.bf16.msra.mxu0 %v4355_v55 }
 0x395   : > { %2893 = vmatprep.subr.bf16.mxu0 %v4360_v30 }
 0x398   : > { %2894 = vmatpush1.bf16.msra.mxu0 %v4358_v6 }
 0x401   : > { %v2061_v0 = vpop.f32.mrf.mxu1 }
 0x402   : > { %v6292_v9 = vadd.f32 %v2061_v0, %v6286_v41 }
 0x403   : > { %v2063_v33 = vpop.f32.mrf.mxu1 }
 0x404   : > { %v6295_v32 = vadd.f32 %v2063_v33, %v6289_v18  ;;  %v2208_v47 = vmul.f32 %v6292_v9, %v6292_v9 }
 0x405   : > { %v2065_v58 = vpop.f32.mrf.mxu1 }
 0x406   : > { %v2144_v63 = vadd.f32 %v6295_v32, %v6292_v9  ;;  %v2209_v34 = vmul.f32 %v6295_v32, %v6295_v32  ;;  %v6302_v17 = vadd.f32 %v2065_v58, %v6286_v41 }
 0x407   : > { %v2067_v12 = vpop.f32.mrf.mxu1 }
 0x408   : > { %v6305_v1 = vadd.f32 %v2067_v12, %v6289_v18  ;;  %2145 = vadd.xlane.f32.xlu0 %v2144_v63  ;;  %v2240_v19 = vadd.f32 %v2209_v34, %v2208_v47  ;;  %v2210_v62 = vmul.f32 %v6302_v17, %v6302_v17 }
 0x40a   : > { %v2147_v29 = vadd.f32 %v6305_v1, %v6302_v17  ;;  %v2211_v46 = vmul.f32 %v6305_v1, %v6305_v1 }
 0x40c   : > { %2148 = vadd.xlane.f32.xlu1 %v2147_v29  ;;  %2241 = vadd.xlane.f32.xlu0 %v2240_v19  ;;  %v2243_v39 = vadd.f32 %v2211_v46, %v2210_v62 }
 0x410   : > { %2244 = vadd.xlane.f32.xlu1 %v2243_v39  ;;  %v4363_v39 = vld [vmem:[#allocation5 + $0x14] ss:$8 sps:$4 sm:$0xff]  }
 0x411   : > { %2895 = vmatprep.subr.bf16.mxu0 %v4363_v39 }
 0x415   : > { %v2071_v26 = vpop.f32.mrf.mxu1 }
 0x416   : > { %v6316_v13 = vadd.f32 %v2071_v26, %v6286_v41  ;;  %v4361_v26 = vld [vmem:[#allocation5 + $0x10] ss:$8 sps:$4 sm:$0xff]  }
 0x417   : > { %v2073_v15 = vpop.f32.mrf.mxu1  ;;  %2896 = vmatpush1.bf16.msra.mxu0 %v4361_v26 }
 0x418   : > { %v6319_v28 = vadd.f32 %v2073_v15, %v6289_v18  ;;  %v2212_v56 = vmul.f32 %v6316_v13, %v6316_v13 }
 0x419   : > { %v2075_v4 = vpop.f32.mrf.mxu1 }
 0x41a   : > { %v2150_v60 = vadd.f32 %v6319_v28, %v6316_v13  ;;  %v2213_v27 = vmul.f32 %v6319_v28, %v6319_v28  ;;  %v6326_v35 = vadd.f32 %v2075_v4, %v6286_v41 }
 0x41b   : > { %v2077_v21 = vpop.f32.mrf.mxu1 }
 0x41c   : > { %v6329_v61 = vadd.f32 %v2077_v21, %v6289_v18  ;;  %2151 = vadd.xlane.f32.xlu0 %v2150_v60  ;;  %v2246_v16 = vadd.f32 %v2213_v27, %v2212_v56  ;;  %v2214_v55 = vmul.f32 %v6326_v35, %v6326_v35  ;;  %v4366_v21 = vld [vmem:[#allocation5 + $0x4] ss:$8 sps:$4 sm:$0xff]  }
 0x41d   : > { %2897 = vmatprep.subr.bf16.mxu0 %v4366_v21  ;;  %v4375_v21 = vld [vmem:[#allocation5 + $0xd4] ss:$8 sps:$4 sm:$0xff]  }
 0x41e   : > { %v2153_v31 = vadd.f32 %v6329_v61, %v6326_v35  ;;  %v2215_v36 = vmul.f32 %v6329_v61, %v6329_v61 }
 0x420   : > { %2154 = vadd.xlane.f32.xlu1 %v2153_v31  ;;  %2247 = vadd.xlane.f32.xlu0 %v2246_v16  ;;  %v2249_v0 = vadd.f32 %v2215_v36, %v2214_v55  ;;  %v4364_v16 = vld [vmem:[#allocation5] ss:$8 sps:$4 sm:$0xff]  }
 0x421   : > { %2898 = vmatpush1.bf16.msra.mxu0 %v4364_v16 }
 0x422   : > { %v2081_v37 = vpop.f32.mrf.mxu1 }
 0x423   : > { %v6340_v58 = vadd.f32 %v2081_v37, %v6286_v41 }
 0x424   : > { %v2083_v33 = vpop.f32.mrf.mxu1  ;;  %2250 = vadd.xlane.f32.xlu1 %v2249_v0 }
 0x425   : > { %v6343_v63 = vadd.f32 %v2083_v33, %v6289_v18  ;;  %v2216_v62 = vmul.f32 %v6340_v58, %v6340_v58 }
 0x426   : > { %v2085_v34 = vpop.f32.mrf.mxu1 }
 0x427   : > { %v2156_v12 = vadd.f32 %v6343_v63, %v6340_v58  ;;  %v2217_v47 = vmul.f32 %v6343_v63, %v6343_v63  ;;  %v6350_v19 = vadd.f32 %v2085_v34, %v6286_v41  ;;  %v4369_v34 = vld [vmem:[#allocation5 + $0xf4] ss:$8 sps:$4 sm:$0xff]  }
 0x428   : > { %v2087_v29 = vpop.f32.mrf.mxu1  ;;  %2899 = vmatprep.subr.bf16.mxu0 %v4369_v34 }
 0x429   : > { %v6353_v46 = vadd.f32 %v2087_v29, %v6289_v18  ;;  %2157 = vadd.xlane.f32.xlu0 %v2156_v12  ;;  %v2252_v30 = vadd.f32 %v2217_v47, %v2216_v62  ;;  %v2218_v27 = vmul.f32 %v6350_v19, %v6350_v19  ;;  %v4367_v62 = vld [vmem:[#allocation5 + $0xf0] ss:$8 sps:$4 sm:$0xff]  }
 0x42a   : > { %2900 = vmatpush2.bf16.msra.mxu0 %v4367_v62 }
 0x42b   : > { %v2159_v6 = vadd.f32 %v6353_v46, %v6350_v19  ;;  %v2219_v4 = vmul.f32 %v6353_v46, %v6353_v46 }
 0x42d   : > { %v2091_v15 = vpop.f32.mrf.mxu1  ;;  %2160 = vadd.xlane.f32.xlu1 %v2159_v6  ;;  %2253 = vadd.xlane.f32.xlu0 %v2252_v30  ;;  %v2255_v55 = vadd.f32 %v2219_v4, %v2218_v27  ;;  %v4372_v30 = vld [vmem:[#allocation5 + $0xe4] ss:$8 sps:$4 sm:$0xff]  }
 0x42e   : > { %v6364_v56 = vadd.f32 %v2091_v15, %v6286_v41  ;;  %2901 = vmatprep.subr.bf16.mxu0 %v4372_v30 }
 0x42f   : > { %v2093_v60 = vpop.f32.mrf.mxu1 }
 0x430   : > { %v6367_v31 = vadd.f32 %v2093_v60, %v6289_v18  ;;  %v2220_v29 = vmul.f32 %v6364_v56, %v6364_v56  ;;  %v4370_v60 = vld [vmem:[#allocation5 + $0xe0] ss:$8 sps:$4 sm:$0xff]  }
 0x431   : > { %v2095_v36 = vpop.f32.mrf.mxu1  ;;  %2256 = vadd.xlane.f32.xlu1 %v2255_v55  ;;  %2902 = vmatpush2.bf16.msra.mxu0 %v4370_v60 }
 0x432   : > { %v2162_v37 = vadd.f32 %v6367_v31, %v6364_v56  ;;  %v2221_v0 = vmul.f32 %v6367_v31, %v6367_v31  ;;  %v6374_v12 = vadd.f32 %v2095_v36, %v6286_v41  ;;  %2903 = vmatprep.subr.bf16.mxu0 %v4375_v21 }
 0x433   : > { %v2097_v33 = vpop.f32.mrf.mxu1 }
 0x434   : > { %v6377_v47 = vadd.f32 %v2097_v33, %v6289_v18  ;;  %2163 = vadd.xlane.f32.xlu0 %v2162_v37  ;;  %v2258_v26 = vadd.f32 %v2221_v0, %v2220_v29  ;;  %v2222_v4 = vmul.f32 %v6374_v12, %v6374_v12  ;;  %v4373_v37 = vld [vmem:[#allocation5 + $0xd0] ss:$8 sps:$4 sm:$0xff]  }
 0x435   : > { %2904 = vmatpush2.bf16.msra.mxu0 %v4373_v37 }
 0x436   : > { %v2165_v39 = vadd.f32 %v6377_v47, %v6374_v12  ;;  %v2223_v15 = vmul.f32 %v6377_v47, %v6377_v47 }
 0x438   : > { %v2101_v6 = vpop.f32.mrf.mxu1  ;;  %2166 = vadd.xlane.f32.xlu1 %v2165_v39  ;;  %2259 = vadd.xlane.f32.xlu0 %v2258_v26  ;;  %v2261_v55 = vadd.f32 %v2223_v15, %v2222_v4 }
 0x439   : > { %v6388_v16 = vadd.f32 %v2101_v6, %v6286_v41  ;;  %v4378_v6 = vld [vmem:[#allocation5 + $0xc4] ss:$8 sps:$4 sm:$0xff]  }
 0x43a   : > { %v2103_v27 = vpop.f32.mrf.mxu1  ;;  %2905 = vmatprep.subr.bf16.mxu0 %v4378_v6 }
 0x43b   : > { %v6391_v36 = vadd.f32 %v2103_v27, %v6289_v18  ;;  %v2224_v26 = vmul.f32 %v6388_v16, %v6388_v16  ;;  %v4376_v27 = vld [vmem:[#allocation5 + $0xc0] ss:$8 sps:$4 sm:$0xff]  }
 0x43c   : > { %v2105_v0 = vpop.f32.mrf.mxu1  ;;  %2262 = vadd.xlane.f32.xlu1 %v2261_v55  ;;  %2906 = vmatpush2.bf16.msra.mxu0 %v4376_v27  ;;  %v4384_v27 = vld [vmem:[#allocation5 + $0xa4] ss:$8 sps:$4 sm:$0xff]  }
 0x43d   : > { %v2168_v33 = vadd.f32 %v6391_v36, %v6388_v16  ;;  %v2225_v34 = vmul.f32 %v6391_v36, %v6391_v36  ;;  %v6398_v62 = vadd.f32 %v2105_v0, %v6286_v41 }
 0x43e   : > { %v2107_v29 = vpop.f32.mrf.mxu1 }
 0x43f   : > { %v6401_v39 = vadd.f32 %v2107_v29, %v6289_v18  ;;  %2169 = vadd.xlane.f32.xlu0 %v2168_v33  ;;  %v2264_v4 = vadd.f32 %v2225_v34, %v2224_v26  ;;  %v2226_v37 = vmul.f32 %v6398_v62, %v6398_v62  ;;  %v4381_v34 = vld [vmem:[#allocation5 + $0xb4] ss:$8 sps:$4 sm:$0xff]  }
 0x440   : > { %v2111_v15 = vpop.f32.mrf.mxu1  ;;  %2907 = vmatprep.subr.bf16.mxu0 %v4381_v34 }
 0x441   : > { %v2171_v30 = vadd.f32 %v6401_v39, %v6398_v62  ;;  %v2227_v60 = vmul.f32 %v6401_v39, %v6401_v39  ;;  %v6410_v55 = vadd.f32 %v2111_v15, %v6286_v41  ;;  %v4379_v15 = vld [vmem:[#allocation5 + $0xb0] ss:$8 sps:$4 sm:$0xff]  }
 0x442   : > { %v2113_v21 = vpop.f32.mrf.mxu1  ;;  %2908 = vmatpush2.bf16.msra.mxu0 %v4379_v15 }
 0x443   : > { %v6413_v0 = vadd.f32 %v2113_v21, %v6289_v18  ;;  %2172 = vadd.xlane.f32.xlu1 %v2171_v30  ;;  %2265 = vadd.xlane.f32.xlu0 %v2264_v4  ;;  %v2267_v29 = vadd.f32 %v2227_v60, %v2226_v37  ;;  %v2228_v4 = vmul.f32 %v6410_v55, %v6410_v55 }
 0x444   : > { %v2115_v33 = vpop.f32.mrf.mxu1  ;;  %2909 = vmatprep.subr.bf16.mxu0 %v4384_v27 }
 0x445   : > { %v2174_v26 = vadd.f32 %v6413_v0, %v6410_v55  ;;  %v2229_v6 = vmul.f32 %v6413_v0, %v6413_v0  ;;  %v6422_v21 = vadd.f32 %v2115_v33, %v6286_v41  ;;  %v4382_v33 = vld [vmem:[#allocation5 + $0xa0] ss:$8 sps:$4 sm:$0xff]  }
 0x446   : > { %v2117_v22 = vpop.f32.mrf.mxu1  ;;  %2910 = vmatpush2.bf16.msra.mxu0 %v4382_v33  ;;  %v4390_v33 = vld [vmem:[#allocation5 + $0x84] ss:$8 sps:$4 sm:$0xff]  }
 0x447   : > { %v6425_v30 = vadd.f32 %v2117_v22, %v6289_v18  ;;  %2268 = vadd.xlane.f32.xlu1 %v2267_v29  ;;  %2175 = vadd.xlane.f32.xlu0 %v2174_v26  ;;  %v2270_v51 = vadd.f32 %v2229_v6, %v2228_v4  ;;  %v2230_v26 = vmul.f32 %v6422_v21, %v6422_v21  ;;  %v4387_v6 = vld [vmem:[#allocation5 + $0x94] ss:$8 sps:$4 sm:$0xff]  }
 0x448   : > { %v2121_v60 = vpop.f32.mrf.mxu1  ;;  %2911 = vmatprep.subr.bf16.mxu0 %v4387_v6 }
 0x449   : > { %v2177_v37 = vadd.f32 %v6425_v30, %v6422_v21  ;;  %v2231_v34 = vmul.f32 %v6425_v30, %v6425_v30  ;;  %v6434_v22 = vadd.f32 %v2121_v60, %v6286_v41  ;;  %v4385_v60 = vld [vmem:[#allocation5 + $0x90] ss:$8 sps:$4 sm:$0xff]  }
 0x44a   : > { %v2123_v14 = vpop.f32.mrf.mxu1  ;;  %2912 = vmatpush2.bf16.msra.mxu0 %v4385_v60 }
 0x44b   : > { %v6437_v29 = vadd.f32 %v2123_v14, %v6289_v18  ;;  %2178 = vadd.xlane.f32.xlu1 %v2177_v37  ;;  %2271 = vadd.xlane.f32.xlu0 %v2270_v51  ;;  %v2273_v4 = vadd.f32 %v2231_v34, %v2230_v26  ;;  %v2232_v37 = vmul.f32 %v6434_v22, %v6434_v22 }
 0x44c   : > { %v2125_v15 = vpop.f32.mrf.mxu1  ;;  %2913 = vmatprep.subr.bf16.mxu0 %v4390_v33 }
 0x44d   : > { %v2180_v49 = vadd.f32 %v6437_v29, %v6434_v22  ;;  %v2233_v27 = vmul.f32 %v6437_v29, %v6437_v29  ;;  %v6446_v14 = vadd.f32 %v2125_v15, %v6286_v41  ;;  %v4388_v15 = vld [vmem:[#allocation5 + $0x80] ss:$8 sps:$4 sm:$0xff]  }
 0x44e   : > { %v2127_v5 = vpop.f32.mrf.mxu1  ;;  %2914 = vmatpush2.bf16.msra.mxu0 %v4388_v15 }
 0x44f   : > { %v6449_v51 = vadd.f32 %v2127_v5, %v6289_v18  ;;  %2274 = vadd.xlane.f32.xlu1 %v2273_v4  ;;  %2181 = vadd.xlane.f32.xlu0 %v2180_v49  ;;  %v2276_v2 = vadd.f32 %v2233_v27, %v2232_v37  ;;  %v2234_v4 = vmul.f32 %v6446_v14, %v6446_v14 }
 0x450   : > { %v2131_v34 = vpop.f32.mrf.mxu1 }
 0x451   : > { %v2183_v26 = vadd.f32 %v6449_v51, %v6446_v14  ;;  %v2235_v6 = vmul.f32 %v6449_v51, %v6449_v51  ;;  %v6458_v5 = vadd.f32 %v2131_v34, %v6286_v41 }
 0x452   : > { %v2133_v53 = vpop.f32.mrf.mxu1 }
 0x453   : > { %v6461_v49 = vadd.f32 %v2133_v53, %v6289_v18  ;;  %2184 = vadd.xlane.f32.xlu1 %v2183_v26  ;;  %2277 = vadd.xlane.f32.xlu0 %v2276_v2  ;;  %v2279_v27 = vadd.f32 %v2235_v6, %v2234_v4  ;;  %v2236_v2 = vmul.f32 %v6458_v5, %v6458_v5 }
 0x454   : > { %v2135_v60 = vpop.f32.mrf.mxu1 }
 0x455   : > { %v2186_v37 = vadd.f32 %v6461_v49, %v6458_v5  ;;  %v2237_v33 = vmul.f32 %v6461_v49, %v6461_v49  ;;  %v6470_v34 = vadd.f32 %v2135_v60, %v6286_v41 }
 0x456   : > { %v2137_v23 = vpop.f32.mrf.mxu1 }
 0x457   : > { %7628 = vst [vmem:[#allocation45_spill] sm:$0xff] %v6470_v34  ;;  %v6473_v53 = vadd.f32 %v2137_v23, %v6289_v18  ;;  %2280 = vadd.xlane.f32.xlu1 %v2279_v27  ;;  %2187 = vadd.xlane.f32.xlu0 %v2186_v37  ;;  %v2282_v6 = vadd.f32 %v2237_v33, %v2236_v2 }
 0x458   : > { %v2238_v41 = vmul.f32 %v6470_v34, %v6470_v34 }
 0x459   : > { %7629 = vst [vmem:[#allocation42_spill] sm:$0xff] %v6473_v53  ;;  %v2189_v26 = vadd.f32 %v6473_v53, %v6470_v34  ;;  %v2239_v15 = vmul.f32 %v6473_v53, %v6473_v53 }
 0x45b   : > { %2190 = vadd.xlane.f32.xlu1 %v2189_v26  ;;  %2283 = vadd.xlane.f32.xlu0 %v2282_v6  ;;  %v2285_v4 = vadd.f32 %v2239_v15, %v2238_v41 }
 0x45f   : > { %2286 = vadd.xlane.f32.xlu1 %v2285_v4 }
 0x491   : > { %v2146_v23 = vpop.xlane.xlu0 %2145 }
 0x492   : > { %v2192_v18 = vmul.f32 0.00390625, %v2146_v23 }
 0x494   : > { %v2304_v37 = vmul.f32 %v2192_v18, %v2192_v18 }
 0x495   : > { %v2242_v60 = vpop.xlane.xlu0 %2241  ;;  %v2149_v27 = vpop.xlane.xlu1 %2148 }
 0x496   : > { %v2288_v8 = vmul.f32 0.00390625, %v2242_v60  ;;  %v2193_v45 = vmul.f32 0.00390625, %v2149_v27 }
 0x498   : > { %v2320_v44 = vsub.f32 %v2288_v8, %v2304_v37  ;;  %v2305_v2 = vmul.f32 %v2193_v45, %v2193_v45 }
 0x499   : > { %v2245_v7 = vpop.xlane.xlu1 %2244 }
 0x49a   : > { %v2336_v33 = vmax.f32 %v2320_v44, 0.0  ;;  %v2289_v24 = vmul.f32 0.00390625, %v2245_v7  ;;  %v2143_v7 = vld [vmem:[#allocation7 + $0x20] ss:$8 sm:$0x3] }
 0x49c   : > { %v2384_v42 = vadd.f32 1e-05, %v2336_v33  ;;  %v2321_v26 = vsub.f32 %v2289_v24, %v2305_v2  ;;  %v2352_v24 = vsub.f32 %v6292_v9, %v2192_v18  ;;  %v6495_v33 = vrot.slane %v2141_v52, %v7627_v11 }
 0x49d   : > { %v6503_v9 = vrot.slane %v2143_v7, %v7627_v11 }
 0x49e   : > { %4463 = vrsqrt.f32 %v2384_v42  ;;  %v2337_v6 = vmax.f32 %v2321_v26, 0.0  ;;  %v2353_v42 = vsub.f32 %v6295_v32, %v2192_v18 }
 0x4a0   : > { %v2385_v38 = vadd.f32 1e-05, %v2337_v6 }
 0x4a2   : > { %4465 = vrsqrt.f32 %v2385_v38  ;;  %v6492_v38 = vrot.slane %v2141_v52, %v7626_v10  ;;  %v2354_v52 = vsub.f32 %v6302_v17, %v2193_v45 }
 0x4a5   : > { %v2152_v15 = vpop.xlane.xlu0 %2151 }
 0x4a6   : > { %v6483_v41 = vmul.f32 0.00390625, %v2152_v15 }
 0x4a8   : > { %v2306_v60 = vmul.f32 %v6483_v41, %v6483_v41 }
 0x4a9   : > { %v2248_v4 = vpop.xlane.xlu0 %2247  ;;  %v2155_v23 = vpop.xlane.xlu1 %2154 }
 0x4aa   : > { %v2290_v8 = vmul.f32 0.00390625, %v2248_v4  ;;  %v6487_v27 = vmul.f32 0.00390625, %v2155_v23 }
 0x4ab   : > { %v4464_v2 = vpop.eup %4463 }
 0x4ac   : > { %v2322_v44 = vsub.f32 %v2290_v8, %v2306_v60  ;;  %v2307_v6 = vmul.f32 %v6487_v27, %v6487_v27  ;;  %v2416_v4 = vmul.f32 %v4464_v2, %v2352_v24  ;;  %v2417_v23 = vmul.f32 %v4464_v2, %v2353_v42 }
 0x4ad   : > { %v2251_v37 = vpop.xlane.xlu1 %2250  ;;  %v6500_v60 = vrot.slane %v2143_v7, %v7626_v10 }
 0x4ae   : > { %v2338_v26 = vmax.f32 %v2322_v44, 0.0  ;;  %v2291_v15 = vmul.f32 0.00390625, %v2251_v37  ;;  %v2459_v8 = vmul.f32 %v6492_v38, %v2416_v4  ;;  %v2355_v44 = vsub.f32 %v6305_v1, %v2193_v45 }
 0x4af   : > { %v2460_v48 = vmul.f32 %v6495_v33, %v2417_v23  ;;  %v4466_v37 = vpop.eup %4465 }
 0x4b0   : > { %v2386_v32 = vadd.f32 1e-05, %v2338_v26  ;;  %v2323_v18 = vsub.f32 %v2291_v15, %v2307_v6  ;;  %v2418_v2 = vmul.f32 %v4466_v37, %v2354_v52  ;;  %v2419_v10 = vmul.f32 %v4466_v37, %v2355_v44 }
 0x4b1   : > { %v2503_v7 = vadd.f32 %v6503_v9, %v2460_v48  ;;  %v2502_v26 = vadd.f32 %v6500_v60, %v2459_v8  ;;  %v2356_v52 = vsub.f32 %v6316_v13, %v6483_v41 }
 0x4b2   : > { %v2158_v59 = vpop.xlane.xlu0 %2157  ;;  %4467 = vrsqrt.f32 %v2386_v32  ;;  %v2339_v42 = vmax.f32 %v2323_v18, 0.0  ;;  %v2461_v15 = vmul.f32 %v6492_v38, %v2418_v2  ;;  %v2462_v45 = vmul.f32 %v6495_v33, %v2419_v10 }
 0x4b3   : > { %v6509_v24 = vmul.f32 0.00390625, %v2158_v59  ;;  %vm2535_vm1 = vcmp.ge.f32.partialorder %v2503_v7, 0.0  ;;  %v2567_v1 = vmul.f32 0.1, %v2503_v7  ;;  %vm2534_vm2 = vcmp.ge.f32.partialorder %v2502_v26, 0.0 }
 0x4b4   : > { %v2387_v6 = vadd.f32 1e-05, %v2339_v42  ;;  %v2505_v48 = vadd.f32 %v6503_v9, %v2462_v45  ;;  %v2504_v18 = vadd.f32 %v6500_v60, %v2461_v15  ;;  %v2566_v8 = vmul.f32 0.1, %v2502_v26 }
 0x4b5   : > { %v2308_v59 = vmul.f32 %v6509_v24, %v6509_v24  ;;  %v2599_v10 = vsel %vm2535_vm1, %v2503_v7, %v2567_v1  ;;  %v2357_v15 = vsub.f32 %v6319_v28, %v6483_v41  ;;  %v2360_v41 = vsub.f32 %v6340_v58, %v6509_v24 }
 0x4b6   : > { %v2254_v17 = vpop.xlane.xlu0 %2253  ;;  %v2161_v4 = vpop.xlane.xlu1 %2160  ;;  %4469 = vrsqrt.f32 %v2387_v6  ;;  %vm2537_vm3 = vcmp.ge.f32.partialorder %v2505_v48, 0.0  ;;  %v2569_v2 = vmul.f32 0.1, %v2505_v48  ;;  %vm2536_vm4 = vcmp.ge.f32.partialorder %v2504_v18, 0.0 }
 0x4b7   : > { %v2292_v23 = vmul.f32 0.00390625, %v2254_v17  ;;  %v6517_v32 = vmul.f32 0.00390625, %v2161_v4  ;;  %v2568_v45 = vmul.f32 0.1, %v2504_v18  ;;  %v2598_v11 = vsel %vm2534_vm2, %v2502_v26, %v2566_v8  ;;  %v7632_v26 = vld [vmem:[#allocation15_spill] sm:$0xff] }
 0x4b8   : > { %v2601_v13 = vsel %vm2537_vm3, %v2505_v48, %v2569_v2  ;;  %v2630_v8 = vadd.f32 %v2598_v11, %v7632_v26  ;;  %v2361_v11 = vsub.f32 %v6343_v63, %v6509_v24 }
 0x4b9   : > { %v2324_v44 = vsub.f32 %v2292_v23, %v2308_v59  ;;  %v2309_v37 = vmul.f32 %v6517_v32, %v6517_v32  ;;  %v7630_v59 = vld [vmem:[#allocation47_spill] sm:$0xff]  ;;  %v2633_v53 = vadd.f32 %v2601_v13, %v7631_v20  ;;  %v2600_v34 = vsel %vm2536_vm4, %v2504_v18, %v2568_v45 }
 0x4ba   : > { %v2257_v42 = vpop.xlane.xlu1 %2256  ;;  %v2631_v7 = vadd.f32 %v2599_v10, %v7630_v59  ;;  %v2632_v28 = vadd.f32 %v2600_v34, %v7633_v3 }
 0x4bb   : > { %v2340_v6 = vmax.f32 %v2324_v44, 0.0  ;;  %v2293_v4 = vmul.f32 0.00390625, %v2257_v42  ;;  %v2358_v44 = vsub.f32 %v6326_v35, %v6487_v27  ;;  %v2359_v42 = vsub.f32 %v6329_v61, %v6487_v27 }
 0x4bc   : > { %v2663_v2 = vpack.c.bf16 %v2633_v53, %v2631_v7  ;;  %v2662_v61 = vpack.c.bf16 %v2632_v28, %v2630_v8  ;;  %v2363_v53 = vsub.f32 %v6353_v46, %v6517_v32 }
 0x4bd   : > { %v2164_v17 = vpop.xlane.xlu0 %2163  ;;  %v2388_v1 = vadd.f32 1e-05, %v2340_v6  ;;  %v2325_v23 = vsub.f32 %v2293_v4, %v2309_v37 }
 0x4be   : > { %v6527_v50 = vmul.f32 0.00390625, %v2164_v17  ;;  %2915 = vmatprep.mubr.bf16.mxu0 %v2663_v2  ;;  %v2362_v17 = vsub.f32 %v6350_v19, %v6517_v32 }
 0x4bf   : > { %4471 = vrsqrt.f32 %v2388_v1  ;;  %v2341_v48 = vmax.f32 %v2325_v23, 0.0  ;;  %v4468_v20 = vpop.eup %4467  ;;  %2916 = vmatmul.mubr.bf16.vlgmr.msra.gmra.mxu0 %v2662_v61 }
 0x4c0   : > { %v2310_v18 = vmul.f32 %v6527_v50, %v6527_v50  ;;  %v2421_v34 = vmul.f32 %v4468_v20, %v2357_v15  ;;  %v2420_v27 = vmul.f32 %v4468_v20, %v2356_v52  ;;  %v2365_v13 = vsub.f32 %v6367_v31, %v6527_v50 }
 0x4c1   : > { %v2260_v10 = vpop.xlane.xlu0 %2259  ;;  %v2167_v37 = vpop.xlane.xlu1 %2166  ;;  %v2389_v3 = vadd.f32 1e-05, %v2341_v48 }
 0x4c2   : > { %v2294_v35 = vmul.f32 0.00390625, %v2260_v10  ;;  %v6541_v6 = vmul.f32 0.00390625, %v2167_v37  ;;  %v2464_v7 = vmul.f32 %v6495_v33, %v2421_v34  ;;  %v2463_v52 = vmul.f32 %v6492_v38, %v2420_v27 }
 0x4c3   : > { %4473 = vrsqrt.f32 %v2389_v3  ;;  %v4470_v15 = vpop.eup %4469 }
 0x4c4   : > { %v2326_v45 = vsub.f32 %v2294_v35, %v2310_v18  ;;  %v2311_v26 = vmul.f32 %v6541_v6, %v6541_v6  ;;  %v2423_v10 = vmul.f32 %v4470_v15, %v2359_v42  ;;  %v2507_v37 = vadd.f32 %v6503_v9, %v2464_v7 }
 0x4c5   : > { %v2263_v59 = vpop.xlane.xlu1 %2262  ;;  %v2422_v2 = vmul.f32 %v4470_v15, %v2358_v44  ;;  %v2506_v61 = vadd.f32 %v6500_v60, %v2463_v52 }
 0x4c6   : > { %v2342_v1 = vmax.f32 %v2326_v45, 0.0  ;;  %v2295_v8 = vmul.f32 0.00390625, %v2263_v59  ;;  %v2466_v3 = vmul.f32 %v6495_v33, %v2423_v10  ;;  %vm2539_vm5 = vcmp.ge.f32.partialorder %v2507_v37, 0.0 }
 0x4c7   : > { %v2571_v34 = vmul.f32 0.1, %v2507_v37  ;;  %v2465_v27 = vmul.f32 %v6492_v38, %v2422_v2  ;;  %v7634_v2 = vld [vmem:[#allocation30_spill] sm:$0xff]  ;;  %vm2538_vm7 = vcmp.ge.f32.partialorder %v2506_v61, 0.0 }
 0x4c8   : > { %v2170_v48 = vpop.xlane.xlu0 %2169  ;;  %v2390_v20 = vadd.f32 1e-05, %v2342_v1  ;;  %v2327_v35 = vsub.f32 %v2295_v8, %v2311_v26  ;;  %v2509_v52 = vadd.f32 %v6503_v9, %v2466_v3 }
 0x4c9   : > { %v6562_v18 = vmul.f32 0.00390625, %v2170_v48  ;;  %v2603_v1 = vsel %vm2539_vm5, %v2507_v37, %v2571_v34  ;;  %v2508_v26 = vadd.f32 %v6500_v60, %v2465_v27 }
 0x4ca   : > { %4475 = vrsqrt.f32 %v2390_v20  ;;  %v2343_v44 = vmax.f32 %v2327_v35, 0.0  ;;  %v2635_v20 = vadd.f32 %v2603_v1, %v7634_v2  ;;  %vm2541_vm6 = vcmp.ge.f32.partialorder %v2509_v52, 0.0 }
 0x4cb   : > { %v2312_v59 = vmul.f32 %v6562_v18, %v6562_v18  ;;  %v2573_v45 = vmul.f32 0.1, %v2509_v52  ;;  %vm2540_vm8 = vcmp.ge.f32.partialorder %v2508_v26, 0.0 }
 0x4cc   : > { %v2266_v7 = vpop.xlane.xlu0 %2265  ;;  %v2173_v15 = vpop.xlane.xlu1 %2172  ;;  %v2391_v8 = vadd.f32 1e-05, %v2343_v44 }
 0x4cd   : > { %v2296_v48 = vmul.f32 0.00390625, %v2266_v7  ;;  %v6575_v10 = vmul.f32 0.00390625, %v2173_v15  ;;  %v4472_v35 = vpop.eup %4471  ;;  %v2605_v44 = vsel %vm2541_vm6, %v2509_v52, %v2573_v45  ;;  %v2570_v7 = vmul.f32 0.1, %v2506_v61 }
 0x4ce   : > { %4477 = vrsqrt.f32 %v2391_v8  ;;  %v2572_v15 = vmul.f32 0.1, %v2508_v26  ;;  %v7635_v8 = vld [vmem:[#allocation19_spill] sm:$0xff]  ;;  %v2425_v37 = vmul.f32 %v4472_v35, %v2361_v11  ;;  %v2424_v45 = vmul.f32 %v4472_v35, %v2360_v41 }
 0x4cf   : > { %v2328_v42 = vsub.f32 %v2296_v48, %v2312_v59  ;;  %v2313_v34 = vmul.f32 %v6575_v10, %v6575_v10  ;;  %v2637_v59 = vadd.f32 %v2605_v44, %v7635_v8  ;;  %v2602_v48 = vsel %vm2538_vm7, %v2506_v61, %v2570_v7 }
 0x4d0   : > { %v2176_v3 = vpop.xlane.xlu0 %2175  ;;  %v2269_v27 = vpop.xlane.xlu1 %2268  ;;  %v2604_v23 = vsel %vm2540_vm8, %v2508_v26, %v2572_v15  ;;  %v2634_v11 = vadd.f32 %v2602_v48, %v6021_v25  ;;  %v2467_v32 = vmul.f32 %v6492_v38, %v2424_v45 }
 0x4d1   : > { %v2344_v1 = vmax.f32 %v2328_v42, 0.0  ;;  %v6584_v2 = vmul.f32 0.00390625, %v2176_v3  ;;  %v2297_v4 = vmul.f32 0.00390625, %v2269_v27  ;;  %v4474_v52 = vpop.eup %4473  ;;  %v2665_v63 = vpack.c.bf16 %v2637_v59, %v2635_v20 }
 0x4d2   : > { %v2636_v58 = vadd.f32 %v2604_v23, %v6026_v40  ;;  %v2426_v20 = vmul.f32 %v4474_v52, %v2362_v17 }
 0x4d3   : > { %v2392_v28 = vadd.f32 1e-05, %v2344_v1  ;;  %v2372_v42 = vsub.f32 %v6410_v55, %v6584_v2  ;;  %v2373_v3 = vsub.f32 %v6413_v0, %v6584_v2  ;;  %v2329_v27 = vsub.f32 %v2297_v4, %v2313_v34  ;;  %2925 = vmatprep.mubr.bf16.mxu0 %v2665_v63 }
 0x4d4   : > { %v2314_v61 = vmul.f32 %v6584_v2, %v6584_v2  ;;  %v2272_v26 = vpop.xlane.xlu0 %2271  ;;  %v2179_v44 = vpop.xlane.xlu1 %2178  ;;  %v2664_v7 = vpack.c.bf16 %v2636_v58, %v2634_v11  ;;  %v2427_v4 = vmul.f32 %v4474_v52, %v2363_v53  ;;  %v2468_v34 = vmul.f32 %v6495_v33, %v2425_v37  ;;  %v7653_v2 = vld [vmem:[#allocation35_spill] sm:$0xff] }
 0x4d5   : > { %4479 = vrsqrt.f32 %v2392_v28  ;;  %v2345_v24 = vmax.f32 %v2329_v27, 0.0  ;;  %v2298_v41 = vmul.f32 0.00390625, %v2272_v26  ;;  %v6603_v35 = vmul.f32 0.00390625, %v2179_v44 }
 0x4d6   : > { %2926 = vmatmul.mubr.bf16.gmra.mxu0 %v2664_v7  ;;  %v2470_v37 = vmul.f32 %v6495_v33, %v2427_v4  ;;  %v2511_v19 = vadd.f32 %v6503_v9, %v2468_v34  ;;  %v2469_v27 = vmul.f32 %v6492_v38, %v2426_v20 }
 0x4d7   : > { %v2393_v25 = vadd.f32 1e-05, %v2345_v24  ;;  %v2330_v15 = vsub.f32 %v2298_v41, %v2314_v61  ;;  %v2374_v40 = vsub.f32 %v6422_v21, %v6603_v35  ;;  %v2375_v23 = vsub.f32 %v6425_v30, %v6603_v35  ;;  %v6616_v28 = vpop.eup %4475 }
 0x4d8   : > { %v2182_v1 = vpop.xlane.xlu0 %2181  ;;  %v2315_v46 = vmul.f32 %v6603_v35, %v6603_v35  ;;  %v2275_v53 = vpop.xlane.xlu1 %2274  ;;  %v2513_v48 = vadd.f32 %v6503_v9, %v2470_v37  ;;  %vm2543_vm9 = vcmp.ge.f32.partialorder %v2511_v19, 0.0  ;;  %v2575_v52 = vmul.f32 0.1, %v2511_v19 }
 0x4d9   : > { %4481 = vrsqrt.f32 %v2393_v25  ;;  %v2346_v17 = vmax.f32 %v2330_v15, 0.0  ;;  %v6623_v8 = vmul.f32 0.00390625, %v2182_v1  ;;  %v2299_v59 = vmul.f32 0.00390625, %v2275_v53 }
 0x4da   : > { %vm2545_vm10 = vcmp.ge.f32.partialorder %v2513_v48, 0.0  ;;  %v2577_v41 = vmul.f32 0.1, %v2513_v48  ;;  %v2607_v7 = vsel %vm2543_vm9, %v2511_v19, %v2575_v52  ;;  %v2510_v1 = vadd.f32 %v6500_v60, %v2467_v32 }
 0x4db   : > { %v2394_v61 = vadd.f32 1e-05, %v2346_v17  ;;  %v2376_v26 = vsub.f32 %v6434_v22, %v6623_v8  ;;  %v2377_v44 = vsub.f32 %v6437_v29, %v6623_v8  ;;  %v2331_v63 = vsub.f32 %v2299_v59, %v2315_v46  ;;  %v6631_v45 = vpop.eup %4477 }
 0x4dc   : > { %v2316_v11 = vmul.f32 %v6623_v8, %v6623_v8  ;;  %v2278_v58 = vpop.xlane.xlu0 %2277  ;;  %v2185_v24 = vpop.xlane.xlu1 %2184  ;;  %v2609_v25 = vsel %vm2545_vm10, %v2513_v48, %v2577_v41  ;;  %v2639_v15 = vadd.f32 %v2607_v7, %v6058_v54  ;;  %v2512_v46 = vadd.f32 %v6500_v60, %v2469_v27 }
 0x4dd   : > { %4483 = vrsqrt.f32 %v2394_v61  ;;  %v2347_v4 = vmax.f32 %v2331_v63, 0.0  ;;  %v2300_v34 = vmul.f32 0.00390625, %v2278_v58  ;;  %v6635_v20 = vmul.f32 0.00390625, %v2185_v24 }
 0x4de   : > { %v2641_v48 = vadd.f32 %v2609_v25, %v6062_v43  ;;  %vm2542_vm11 = vcmp.ge.f32.partialorder %v2510_v1, 0.0  ;;  %vm2544_vm12 = vcmp.ge.f32.partialorder %v2512_v46, 0.0  ;;  %v2574_v58 = vmul.f32 0.1, %v2510_v1  ;;  %v7637_v43 = vld [vmem:[#allocation21_spill] sm:$0xff] }
 0x4df   : > { %v2395_v53 = vadd.f32 1e-05, %v2347_v4  ;;  %v2332_v37 = vsub.f32 %v2300_v34, %v2316_v11  ;;  %v2378_v17 = vsub.f32 %v6446_v14, %v6635_v20  ;;  %v2379_v19 = vsub.f32 %v6449_v51, %v6635_v20  ;;  %v7655_v51 = vld [vmem:[#allocation16_spill] sm:$0xff] }
 0x4e0   : > { %v2188_v59 = vpop.xlane.xlu0 %2187  ;;  %v2317_v52 = vmul.f32 %v6635_v20, %v6635_v20  ;;  %v2281_v61 = vpop.xlane.xlu1 %2280  ;;  %v2667_v11 = vpack.c.bf16 %v2641_v48, %v2639_v15  ;;  %v2576_v24 = vmul.f32 0.1, %v2512_v46  ;;  %v2429_v41 = vmul.f32 %v6616_v28, %v2365_v13 }
 0x4e1   : > { %4485 = vrsqrt.f32 %v2395_v53  ;;  %v2348_v54 = vmax.f32 %v2332_v37, 0.0  ;;  %v6647_v32 = vmul.f32 0.00390625, %v2188_v59  ;;  %v2301_v27 = vmul.f32 0.00390625, %v2281_v61 }
 0x4e2   : > { %v6649_v63 = vpop.eup %4479  ;;  %2935 = vmatprep.mubr.bf16.mxu0 %v2667_v11  ;;  %v2606_v37 = vsel %vm2542_vm11, %v2510_v1, %v2574_v58  ;;  %v2608_v31 = vsel %vm2544_vm12, %v2512_v46, %v2576_v24  ;;  %v7636_v13 = vsub.f32 %v6377_v47, %v6541_v6  ;;  %v2472_v4 = vmul.f32 %v6495_v33, %v2429_v41  ;;  %v7638_v47 = vld [vmem:[#allocation45_spill] sm:$0xff] }
 0x4e3   : > { %v2396_v7 = vadd.f32 1e-05, %v2348_v54  ;;  %v2333_v34 = vsub.f32 %v2301_v27, %v2317_v52  ;;  %v2318_v25 = vmul.f32 %v6647_v32, %v6647_v32  ;;  %v2638_v27 = vadd.f32 %v2606_v37, %v6081_v57 }
 0x4e4   : > { %v2284_v53 = vpop.xlane.xlu0 %2283  ;;  %v2191_v15 = vpop.xlane.xlu1 %2190  ;;  %v2431_v59 = vmul.f32 %v6631_v45, %v7636_v13  ;;  %v2640_v11 = vadd.f32 %v2608_v31, %v7637_v43  ;;  %v2515_v57 = vadd.f32 %v6503_v9, %v2472_v4  ;;  %v7641_v4 = vsub.f32 %v6374_v12, %v6541_v6  ;;  %v7645_v12 = vld [vmem:[#allocation24_spill] sm:$0xff] }
 0x4e5   : > { %4487 = vrsqrt.f32 %v2396_v7  ;;  %v2349_v61 = vmax.f32 %v2333_v34, 0.0  ;;  %v2302_v48 = vmul.f32 0.00390625, %v2284_v53  ;;  %v6667_v54 = vmul.f32 0.00390625, %v2191_v15  ;;  %v7639_v7 = vld [vmem:[#allocation42_spill] sm:$0xff] }
 0x4e6   : > { %v4482_v52 = vpop.eup %4481  ;;  %v2474_v1 = vmul.f32 %v6495_v33, %v2431_v59  ;;  %v2666_v53 = vpack.c.bf16 %v2640_v11, %v2638_v27  ;;  %vm2547_vm13 = vcmp.ge.f32.partialorder %v2515_v57, 0.0  ;;  %v7658_v14 = vsub.f32 %v6461_v49, %v6647_v32 }
 0x4e7   : > { %v2397_v46 = vadd.f32 1e-05, %v2349_v61  ;;  %v2334_v58 = vsub.f32 %v2302_v48, %v2318_v25  ;;  %v2382_v24 = vsub.f32 %v7638_v47, %v6667_v54  ;;  %v2383_v34 = vsub.f32 %v7639_v7, %v6667_v54  ;;  %v7662_v47 = vld [vmem:[#allocation41_spill] sm:$0xff] }
 0x4e8   : > { %v2319_v15 = vmul.f32 %v6667_v54, %v6667_v54  ;;  %v2287_v13 = vpop.xlane.xlu1 %2286  ;;  %v2517_v43 = vadd.f32 %v6503_v9, %v2474_v1  ;;  %v7640_v25 = vsub.f32 %v6364_v56, %v6527_v50  ;;  %2936 = vmatmul.mubr.bf16.gmra.mxu0 %v2666_v53  ;;  %v2579_v61 = vmul.f32 0.1, %v2515_v57 }
 0x4e9   : > { %4489 = vrsqrt.f32 %v2397_v46  ;;  %v2350_v41 = vmax.f32 %v2334_v58, 0.0  ;;  %v2303_v37 = vmul.f32 0.00390625, %v2287_v13  ;;  %v2430_v1 = vmul.f32 %v6631_v45, %v7641_v4 }
 0x4ea   : > { %v2428_v31 = vmul.f32 %v6616_v28, %v7640_v25  ;;  %v6685_v59 = vpop.eup %4483  ;;  %vm2549_vm14 = vcmp.ge.f32.partialorder %v2517_v43, 0.0  ;;  %v2581_v48 = vmul.f32 0.1, %v2517_v43  ;;  %v2611_v58 = vsel %vm2547_vm13, %v2515_v57, %v2579_v61 }
 0x4eb   : > { %v2398_v27 = vadd.f32 1e-05, %v2350_v41  ;;  %v2335_v11 = vsub.f32 %v2303_v37, %v2319_v15  ;;  %v7642_v56 = vsub.f32 %v6391_v36, %v6562_v18  ;;  %v7643_v53 = vsub.f32 %v6401_v39, %v6575_v10  ;;  %v7644_v41 = vld [vmem:[#allocation23_spill] sm:$0xff] }
 0x4ec   : > { %v2471_v46 = vmul.f32 %v6492_v38, %v2428_v31  ;;  %v2613_v50 = vsel %vm2549_vm14, %v2517_v43, %v2581_v48  ;;  %v2643_v37 = vadd.f32 %v2611_v58, %v7644_v41  ;;  %v2473_v25 = vmul.f32 %v6492_v38, %v2430_v1 }
 0x4ed   : > { %v2433_v28 = vmul.f32 %v6649_v63, %v7642_v56  ;;  %v2435_v13 = vmul.f32 %v4482_v52, %v7643_v53  ;;  %4491 = vrsqrt.f32 %v2398_v27  ;;  %v2351_v15 = vmax.f32 %v2335_v11, 0.0 }
 0x4ee   : > { %v2645_v6 = vadd.f32 %v2613_v50, %v7645_v12  ;;  %v4486_v45 = vpop.eup %4485  ;;  %v2514_v57 = vadd.f32 %v6500_v60, %v2471_v46  ;;  %v7646_v39 = vsub.f32 %v6388_v16, %v6562_v18  ;;  %v7647_v27 = vsub.f32 %v6398_v62, %v6575_v10  ;;  %v7648_v10 = vld [vmem:[#allocation25_spill] sm:$0xff] }
 0x4ef   : > { %v2476_v43 = vmul.f32 %v6495_v33, %v2433_v28  ;;  %v2478_v36 = vmul.f32 %v6495_v33, %v2435_v13  ;;  %v2399_v31 = vadd.f32 1e-05, %v2351_v15  ;;  %v2516_v4 = vadd.f32 %v6500_v60, %v2473_v25 }
 0x4f0   : > { %v2669_v61 = vpack.c.bf16 %v2645_v6, %v2643_v37  ;;  %v2432_v48 = vmul.f32 %v6649_v63, %v7646_v39  ;;  %v2434_v11 = vmul.f32 %v4482_v52, %v7647_v27  ;;  %vm2546_vm15 = vcmp.ge.f32.partialorder %v2514_v57, 0.0  ;;  %v7649_v37 = vld [vmem:[#allocation26_spill] sm:$0xff] }
 0x4f1   : > { %v2578_v1 = vmul.f32 0.1, %v2514_v57  ;;  %v2519_v46 = vadd.f32 %v6503_v9, %v2476_v43  ;;  %4493 = vrsqrt.f32 %v2399_v31  ;;  %v2521_v58 = vadd.f32 %v6503_v9, %v2478_v36  ;;  %v7650_v36 = vld [vmem:[#allocation27_spill] sm:$0xff] }
 0x4f2   : > { %2945 = vmatprep.mubr.bf16.mxu0 %v2669_v61  ;;  %v2475_v50 = vmul.f32 %v6492_v38, %v2432_v48  ;;  %v2477_v16 = vmul.f32 %v6492_v38, %v2434_v11  ;;  %v6717_v18 = vpop.eup %4487  ;;  %vm2548_vm0 = vcmp.ge.f32.partialorder %v2516_v4, 0.0  ;;  %v2580_v63 = vmul.f32 0.1, %v2516_v4  ;;  %v7651_v61 = vld [vmem:[#allocation31_spill] sm:$0xff] }
 0x4f3   : > { %v2610_v62 = vsel %vm2546_vm15, %v2514_v57, %v2578_v1  ;;  %vm2551_vm1 = vcmp.ge.f32.partialorder %v2519_v46, 0.0  ;;  %vm2553_vm2 = vcmp.ge.f32.partialorder %v2521_v58, 0.0  ;;  %v2583_v56 = vmul.f32 0.1, %v2519_v46 }
 0x4f4   : > { %v2642_v52 = vadd.f32 %v2610_v62, %v7648_v10  ;;  %v2585_v28 = vmul.f32 0.1, %v2521_v58  ;;  %v2612_v53 = vsel %vm2548_vm0, %v2516_v4, %v2580_v63  ;;  %v2518_v13 = vadd.f32 %v6500_v60, %v2475_v50  ;;  %v7652_v63 = vld [vmem:[#allocation32_spill] sm:$0xff] }
 0x4f5   : > { %v2520_v15 = vadd.f32 %v6500_v60, %v2477_v16  ;;  %v2437_v41 = vmul.f32 %v6685_v59, %v2373_v3  ;;  %v2644_v12 = vadd.f32 %v2612_v53, %v7649_v37  ;;  %v2615_v6 = vsel %vm2551_vm1, %v2519_v46, %v2583_v56 }
 0x4f6   : > { %v2617_v25 = vsel %vm2553_vm2, %v2521_v58, %v2585_v28  ;;  %v2439_v57 = vmul.f32 %v4486_v45, %v2375_v23  ;;  %v4490_v43 = vpop.eup %4489  ;;  %v2647_v31 = vadd.f32 %v2615_v6, %v7650_v36  ;;  %vm2550_vm3 = vcmp.ge.f32.partialorder %v2518_v13, 0.0 }
 0x4f7   : > { %v2649_v39 = vadd.f32 %v2617_v25, %v7651_v61  ;;  %vm2552_vm4 = vcmp.ge.f32.partialorder %v2520_v15, 0.0  ;;  %v2668_v48 = vpack.c.bf16 %v2644_v12, %v2642_v52  ;;  %v2582_v27 = vmul.f32 0.1, %v2518_v13 }
 0x4f8   : > { %v2584_v0 = vmul.f32 0.1, %v2520_v15  ;;  %v2480_v3 = vmul.f32 %v6495_v33, %v2437_v41  ;;  %v2482_v4 = vmul.f32 %v6495_v33, %v2439_v57  ;;  %v2436_v30 = vmul.f32 %v6685_v59, %v2372_v42 }
 0x4f9   : > { %v2671_v11 = vpack.c.bf16 %v2649_v39, %v2647_v31  ;;  %v2438_v23 = vmul.f32 %v4486_v45, %v2374_v40  ;;  %2946 = vmatmul.mubr.bf16.gmra.mxu0 %v2668_v48  ;;  %v2614_v1 = vsel %vm2550_vm3, %v2518_v13, %v2582_v27  ;;  %v2441_v50 = vmul.f32 %v6717_v18, %v2377_v44  ;;  %v7656_v48 = vld [vmem:[#allocation18_spill] sm:$0xff] }
 0x4fa   : > { %v2616_v46 = vsel %vm2552_vm4, %v2520_v15, %v2584_v0  ;;  %v2523_v58 = vadd.f32 %v6503_v9, %v2480_v3  ;;  %v4492_v16 = vpop.eup %4491  ;;  %v2646_v55 = vadd.f32 %v2614_v1, %v7652_v63  ;;  %v2525_v59 = vadd.f32 %v6503_v9, %v2482_v4  ;;  %v7654_v15 = vld [vmem:[#allocation37_spill] sm:$0xff]  ;;  %v7657_v0 = vld [vmem:[#allocation34_spill] sm:$0xff]  ;;  %v7660_v1 = vld [vmem:[#allocation36_spill] sm:$0xff] }
 0x4fb   : > { %2955 = vmatprep.mubr.bf16.mxu0 %v2671_v11  ;;  %v2648_v42 = vadd.f32 %v2616_v46, %v7653_v2  ;;  %v2479_v21 = vmul.f32 %v6492_v38, %v2436_v30  ;;  %v2481_v40 = vmul.f32 %v6492_v38, %v2438_v23  ;;  %v2443_v29 = vmul.f32 %v4490_v43, %v2379_v19 }
 0x4fc   : > { %vm2555_vm5 = vcmp.ge.f32.partialorder %v2523_v58, 0.0  ;;  %v2587_v35 = vmul.f32 0.1, %v2523_v58  ;;  %vm2557_vm6 = vcmp.ge.f32.partialorder %v2525_v59, 0.0  ;;  %v2589_v44 = vmul.f32 0.1, %v2525_v59 }
 0x4fd   : > { %v2670_v45 = vpack.c.bf16 %v2648_v42, %v2646_v55  ;;  %v2522_v62 = vadd.f32 %v6500_v60, %v2479_v21  ;;  %v2524_v52 = vadd.f32 %v6500_v60, %v2481_v40  ;;  %v2484_v56 = vmul.f32 %v6495_v33, %v2441_v50  ;;  %v7663_v40 = vld [vmem:[#allocation20_spill] sm:$0xff] }
 0x4fe   : > { %v2619_v10 = vsel %vm2555_vm5, %v2523_v58, %v2587_v35  ;;  %v2486_v28 = vmul.f32 %v6495_v33, %v2443_v29  ;;  %v4494_v53 = vpop.eup %4493  ;;  %v2621_v13 = vsel %vm2557_vm6, %v2525_v59, %v2589_v44  ;;  %v2440_v36 = vmul.f32 %v6717_v18, %v2376_v26  ;;  %v7661_v58 = vld [vmem:[#allocation39_spill] sm:$0xff] }
 0x4ff   : > { %v2651_v41 = vadd.f32 %v2619_v10, %v7654_v15  ;;  %vm2554_vm7 = vcmp.ge.f32.partialorder %v2522_v62, 0.0  ;;  %v2586_v37 = vmul.f32 0.1, %v2522_v62  ;;  %v2653_v19 = vadd.f32 %v2621_v13, %v7655_v51 }
 0x500   : > { %vm2556_vm8 = vcmp.ge.f32.partialorder %v2524_v52, 0.0  ;;  %v2588_v12 = vmul.f32 0.1, %v2524_v52  ;;  %v2527_v6 = vadd.f32 %v6503_v9, %v2484_v56  ;;  %v2529_v57 = vadd.f32 %v6503_v9, %v2486_v28  ;;  %v7664_v56 = vld [vmem:[#allocation22_spill] sm:$0xff] }
 0x501   : > { %v2618_v25 = vsel %vm2554_vm7, %v2522_v62, %v2586_v37  ;;  %v2442_v31 = vmul.f32 %v4490_v43, %v2378_v17  ;;  %2956 = vmatmul.mubr.bf16.gmra.mxu0 %v2670_v45  ;;  %v2673_v61 = vpack.c.bf16 %v2653_v19, %v2651_v41  ;;  %v2483_v22 = vmul.f32 %v6492_v38, %v2440_v36  ;;  %v7666_v19 = vld [vmem:[#allocation40_spill] sm:$0xff] }
 0x502   : > { %v2620_v39 = vsel %vm2556_vm8, %v2524_v52, %v2588_v12  ;;  %v2650_v27 = vadd.f32 %v2618_v25, %v7656_v48  ;;  %vm2559_vm9 = vcmp.ge.f32.partialorder %v2527_v6, 0.0  ;;  %vm2561_vm10 = vcmp.ge.f32.partialorder %v2529_v57, 0.0  ;;  %v7668_v36 = vld [vmem:[#allocation12_spill] sm:$0xff] }
 0x503   : > { %v2652_v3 = vadd.f32 %v2620_v39, %v7657_v0  ;;  %v2591_v11 = vmul.f32 0.1, %v2527_v6  ;;  %v2593_v4 = vmul.f32 0.1, %v2529_v57  ;;  %2965 = vmatprep.mubr.bf16.mxu0 %v2673_v61  ;;  %v2485_v8 = vmul.f32 %v6492_v38, %v2442_v31 }
 0x504   : > { %v2445_v26 = vmul.f32 %v4492_v16, %v7658_v14  ;;  %v2447_v20 = vmul.f32 %v4494_v53, %v2383_v34  ;;  %v7659_v30 = vsub.f32 %v6458_v5, %v6647_v32  ;;  %v2526_v63 = vadd.f32 %v6500_v60, %v2483_v22 }
 0x505   : > { %v2672_v17 = vpack.c.bf16 %v2652_v3, %v2650_v27  ;;  %v2623_v18 = vsel %vm2559_vm9, %v2527_v6, %v2591_v11  ;;  %v2625_v43 = vsel %vm2561_vm10, %v2529_v57, %v2593_v4  ;;  %v2528_v49 = vadd.f32 %v6500_v60, %v2485_v8  ;;  %v7667_v6 = vld [vmem:[#allocation43_spill] sm:$0xff]  ;;  %v6803_v57 = vld [vmem:[#allocation7 + $0x21] ss:$8 sm:$0x3] }
 0x506   : > { %v2444_v23 = vmul.f32 %v4492_v16, %v7659_v30  ;;  %v2655_v46 = vadd.f32 %v2623_v18, %v7660_v1  ;;  %v2657_v50 = vadd.f32 %v2625_v43, %v7661_v58  ;;  %v2488_v55 = vmul.f32 %v6495_v33, %v2445_v26  ;;  %v4391_v30 = vld [vmem:[%s7421_s5 + $0x38] sm:$0xff]  }
 0x507   : > { %v2490_v7 = vmul.f32 %v6495_v33, %v2447_v20  ;;  %v2446_v34 = vmul.f32 %v4494_v53, %v2382_v24  ;;  %vm2558_vm11 = vcmp.ge.f32.partialorder %v2526_v63, 0.0  ;;  %vm2560_vm12 = vcmp.ge.f32.partialorder %v2528_v49, 0.0  ;;  %v7665_v53 = vld [vmem:[#allocation38_spill] sm:$0xff]  ;;  %4135 = vmatprep.subr.bf16.mxu1 %v4391_v30 }
 0x508   : > { %v2487_v2 = vmul.f32 %v6492_v38, %v2444_v23  ;;  %v2675_v5 = vpack.c.bf16 %v2657_v50, %v2655_v46  ;;  %v2590_v32 = vmul.f32 0.1, %v2526_v63  ;;  %v2592_v16 = vmul.f32 0.1, %v2528_v49  ;;  %4136 = vmatpush3.bf16.msra.mxu1 %v4391_v30 }
 0x509   : > { %v2531_v42 = vadd.f32 %v6503_v9, %v2488_v55  ;;  %v2533_v59 = vadd.f32 %v6503_v9, %v2490_v7  ;;  %v2489_v21 = vmul.f32 %v6492_v38, %v2446_v34  ;;  %2966 = vmatmul.mubr.bf16.gmra.mxu0 %v2672_v17  ;;  %v6807_v31 = vrot.slane %v6803_v57, %v7668_v36 }
 0x50a   : > { %v2622_v35 = vsel %vm2558_vm11, %v2526_v63, %v2590_v32  ;;  %v2530_v33 = vadd.f32 %v6500_v60, %v2487_v2  ;;  %2975 = vmatprep.mubr.bf16.mxu0 %v2675_v5  ;;  %v2624_v54 = vsel %vm2560_vm12, %v2528_v49, %v2592_v16 }
 0x50b   : > { %v2654_v24 = vadd.f32 %v2622_v35, %v7662_v47  ;;  %vm2563_vm13 = vcmp.ge.f32.partialorder %v2531_v42, 0.0  ;;  %vm2565_vm14 = vcmp.ge.f32.partialorder %v2533_v59, 0.0  ;;  %v2656_v29 = vadd.f32 %v2624_v54, %v7663_v40  ;;  %v4392_v47 = vld [vmem:[%s7421_s5 + $0x30] sm:$0xff]  }
 0x50c   : > { %v2595_v45 = vmul.f32 0.1, %v2531_v42  ;;  %v2597_v44 = vmul.f32 0.1, %v2533_v59  ;;  %v2532_v62 = vadd.f32 %v6500_v60, %v2489_v21  ;;  %vm2562_vm15 = vcmp.ge.f32.partialorder %v2530_v33, 0.0  ;;  %4137 = vmatprep.subr.bf16.mxu1 %v4392_v47 }
 0x50d   : > { %v2594_v9 = vmul.f32 0.1, %v2530_v33  ;;  %v2674_v10 = vpack.c.bf16 %v2656_v29, %v2654_v24  ;;  %4138 = vmatpush3.bf16.msra.mxu1 %v4392_v47 }
 0x50e   : > { %v2627_v38 = vsel %vm2563_vm13, %v2531_v42, %v2595_v45  ;;  %v2629_v52 = vsel %vm2565_vm14, %v2533_v59, %v2597_v44  ;;  %vm2564_vm0 = vcmp.ge.f32.partialorder %v2532_v62, 0.0  ;;  %v2596_v15 = vmul.f32 0.1, %v2532_v62  ;;  %v4393_v45 = vld [vmem:[%s7421_s5 + $0x28] sm:$0xff]  }
 0x50f   : > { %v2659_v28 = vadd.f32 %v2627_v38, %v7664_v56  ;;  %v2661_v13 = vadd.f32 %v2629_v52, %v7665_v53  ;;  %v2626_v37 = vsel %vm2562_vm15, %v2530_v33, %v2594_v9  ;;  %4139 = vmatprep.subr.bf16.mxu1 %v4393_v45 }
 0x510   : > { %v2628_v51 = vsel %vm2564_vm0, %v2532_v62, %v2596_v15  ;;  %v2658_v60 = vadd.f32 %v2626_v37, %v7667_v6  ;;  %v4395_v37 = vld [vmem:[%s7421_s5 + $0x18] sm:$0xff]  }
 0x511   : > { %v2677_v41 = vpack.c.bf16 %v2661_v13, %v2659_v28  ;;  %2976 = vmatmul.mubr.bf16.gmra.mxu0 %v2674_v10  ;;  %v2660_v12 = vadd.f32 %v2628_v51, %v7666_v19  ;;  %4140 = vmatpush3.bf16.msra.mxu1 %v4393_v45  ;;  %v4394_v28 = vld [vmem:[%s7421_s5 + $0x20] sm:$0xff]  }
 0x512   : > { %4141 = vmatprep.subr.bf16.mxu1 %v4394_v28 }
 0x513   : > { %2985 = vmatprep.mubr.bf16.mxu0 %v2677_v41  ;;  %v2676_v25 = vpack.c.bf16 %v2660_v12, %v2658_v60  ;;  %v4396_v60 = vld [vmem:[%s7421_s5 + $0x10] sm:$0xff]  }
 0x515   : > { %4142 = vmatpush3.bf16.msra.mxu1 %v4394_v28 }
 0x516   : > { %4143 = vmatprep.subr.bf16.mxu1 %v4395_v37 }
 0x519   : > { %2986 = vmatmul.mubr.bf16.gmra.mxu0 %v2676_v25  ;;  %4144 = vmatpush3.bf16.msra.mxu1 %v4395_v37 }
 0x51a   : > { %4145 = vmatprep.subr.bf16.mxu1 %v4396_v60 }
 0x51d   : > { %4146 = vmatpush3.bf16.msra.mxu1 %v4396_v60 }
 0x57f   : > { %v2917_v61 = vpop.f32.mrf.mxu0 }
 0x580   : > { %v6810_v39 = vadd.f32 %v2917_v61, %v6807_v31 }
 0x581   : > { %v6812_v48 = vpop.f32.mrf.mxu0 }
 0x582   : > { %2998 = vadd.xlane.f32.xlu0 %v6810_v39  ;;  %v3046_v3 = vmul.f32 %v6810_v39, %v6810_v39 }
 0x583   : > { %v2921_v27 = vpop.f32.mrf.mxu0 }
 0x584   : > { %v6816_v0 = vadd.f32 %v2921_v27, %v6807_v31 }
 0x585   : > { %v6823_v4 = vpop.f32.mrf.mxu0 }
 0x586   : > { %3000 = vadd.xlane.f32.xlu1 %v6816_v0  ;;  %3062 = vadd.xlane.f32.xlu0 %v3046_v3  ;;  %v3047_v11 = vmul.f32 %v6816_v0, %v6816_v0  ;;  %v4397_v3 = vld [vmem:[%s7421_s5 + $0x8] sm:$0xff]  }
 0x587   : > { %4147 = vmatprep.subr.bf16.mxu1 %v4397_v3 }
 0x588   : > { %4148 = vmatpush3.bf16.msra.mxu1 %v4397_v3 }
 0x58a   : > { %3064 = vadd.xlane.f32.xlu1 %v3047_v11 }
 0x596   : > { %v2927_v22 = vpop.f32.mrf.mxu0 }
 0x597   : > { %v6826_v8 = vadd.f32 %v2927_v22, %v6807_v31 }
 0x598   : > { %v6828_v14 = vpop.f32.mrf.mxu0 }
 0x599   : > { %3002 = vadd.xlane.f32.xlu0 %v6826_v8  ;;  %v3048_v17 = vmul.f32 %v6826_v8, %v6826_v8 }
 0x59a   : > { %v2931_v26 = vpop.f32.mrf.mxu0 }
 0x59b   : > { %v6832_v20 = vadd.f32 %v2931_v26, %v6807_v31 }
 0x59c   : > { %v6839_v43 = vpop.f32.mrf.mxu0 }
 0x59d   : > { %3004 = vadd.xlane.f32.xlu1 %v6832_v20  ;;  %3066 = vadd.xlane.f32.xlu0 %v3048_v17  ;;  %v3049_v18 = vmul.f32 %v6832_v20, %v6832_v20 }
 0x5a1   : > { %3068 = vadd.xlane.f32.xlu1 %v3049_v18  ;;  %v4398_v18 = vld [vmem:[%s7421_s5] sm:$0xff]  }
 0x5a2   : > { %4149 = vmatprep.subr.bf16.mxu1 %v4398_v18 }
 0x5a3   : > { %4150 = vmatpush3.bf16.msra.mxu1 %v4398_v18 }
 0x5a8   : > { %v2937_v23 = vpop.f32.mrf.mxu0 }
 0x5a9   : > { %v6845_v1 = vadd.f32 %v2937_v23, %v6807_v31 }
 0x5aa   : > { %v6847_v46 = vpop.f32.mrf.mxu0 }
 0x5ab   : > { %3006 = vadd.xlane.f32.xlu0 %v6845_v1  ;;  %v3050_v63 = vmul.f32 %v6845_v1, %v6845_v1 }
 0x5ac   : > { %v2941_v58 = vpop.f32.mrf.mxu0 }
 0x5ad   : > { %v6851_v50 = vadd.f32 %v2941_v58, %v6807_v31 }
 0x5ae   : > { %v6858_v55 = vpop.f32.mrf.mxu0 }
 0x5af   : > { %3008 = vadd.xlane.f32.xlu1 %v6851_v50  ;;  %3070 = vadd.xlane.f32.xlu0 %v3050_v63  ;;  %v3051_v49 = vmul.f32 %v6851_v50, %v6851_v50 }
 0x5b3   : > { %3072 = vadd.xlane.f32.xlu1 %v3051_v49 }
 0x5b9   : > { %v2947_v7 = vpop.f32.mrf.mxu0 }
 0x5ba   : > { %v6861_v34 = vadd.f32 %v2947_v7, %v6807_v31 }
 0x5bb   : > { %v6863_v2 = vpop.f32.mrf.mxu0 }
 0x5bc   : > { %3010 = vadd.xlane.f32.xlu0 %v6861_v34  ;;  %v3052_v16 = vmul.f32 %v6861_v34, %v6861_v34 }
 0x5bd   : > { %v2951_v5 = vpop.f32.mrf.mxu0 }
 0x5be   : > { %v6867_v32 = vadd.f32 %v2951_v5, %v6807_v31 }
 0x5bf   : > { %v6871_v42 = vpop.f32.mrf.mxu0 }
 0x5c0   : > { %3012 = vadd.xlane.f32.xlu1 %v6867_v32  ;;  %3074 = vadd.xlane.f32.xlu0 %v3052_v16  ;;  %v3053_v35 = vmul.f32 %v6867_v32, %v6867_v32 }
 0x5c1   : > { %v2957_v59 = vpop.f32.mrf.mxu0 }
 0x5c2   : > { %v6875_v21 = vadd.f32 %v2957_v59, %v6807_v31 }
 0x5c3   : > { %v6879_v33 = vpop.f32.mrf.mxu0 }
 0x5c4   : > { %3076 = vadd.xlane.f32.xlu1 %v3053_v35  ;;  %3014 = vadd.xlane.f32.xlu0 %v6875_v21  ;;  %v3054_v40 = vmul.f32 %v6875_v21, %v6875_v21 }
 0x5c5   : > { %v2961_v54 = vpop.f32.mrf.mxu0 }
 0x5c6   : > { %v6886_v24 = vadd.f32 %v2961_v54, %v6807_v31 }
 0x5c7   : > { %v6890_v29 = vpop.f32.mrf.mxu0 }
 0x5c8   : > { %3016 = vadd.xlane.f32.xlu1 %v6886_v24  ;;  %3078 = vadd.xlane.f32.xlu0 %v3054_v40  ;;  %v3055_v9 = vmul.f32 %v6886_v24, %v6886_v24 }
 0x5c9   : > { %v2967_v44 = vpop.f32.mrf.mxu0 }
 0x5ca   : > { %v6897_v62 = vadd.f32 %v2967_v44, %v6807_v31 }
 0x5cb   : > { %v6901_v10 = vpop.f32.mrf.mxu0 }
 0x5cc   : > { %3080 = vadd.xlane.f32.xlu1 %v3055_v9  ;;  %3018 = vadd.xlane.f32.xlu0 %v6897_v62  ;;  %v3056_v56 = vmul.f32 %v6897_v62, %v6897_v62 }
 0x5cd   : > { %v2971_v38 = vpop.f32.mrf.mxu0 }
 0x5ce   : > { %v6905_v52 = vadd.f32 %v2971_v38, %v6807_v31 }
 0x5cf   : > { %v6912_v53 = vpop.f32.mrf.mxu0 }
 0x5d0   : > { %3020 = vadd.xlane.f32.xlu1 %v6905_v52  ;;  %3082 = vadd.xlane.f32.xlu0 %v3056_v56  ;;  %v3057_v41 = vmul.f32 %v6905_v52, %v6905_v52 }
 0x5d1   : > { %v2977_v13 = vpop.f32.mrf.mxu0 }
 0x5d2   : > { %v6916_v15 = vadd.f32 %v2977_v13, %v6807_v31 }
 0x5d3   : > { %v6923_v51 = vpop.f32.mrf.mxu0 }
 0x5d4   : > { %3084 = vadd.xlane.f32.xlu1 %v3057_v41  ;;  %3022 = vadd.xlane.f32.xlu0 %v6916_v15  ;;  %v3058_v6 = vmul.f32 %v6916_v15, %v6916_v15 }
 0x5d5   : > { %v2981_v19 = vpop.f32.mrf.mxu0 }
 0x5d6   : > { %v6927_v12 = vadd.f32 %v2981_v19, %v6807_v31 }
 0x5d7   : > { %v6934_v25 = vpop.f32.mrf.mxu0 }
 0x5d8   : > { %3024 = vadd.xlane.f32.xlu1 %v6927_v12  ;;  %3086 = vadd.xlane.f32.xlu0 %v3058_v6  ;;  %v3059_v27 = vmul.f32 %v6927_v12, %v6927_v12 }
 0x5d9   : > { %v2987_v36 = vpop.f32.mrf.mxu0 }
 0x5da   : > { %v6938_v61 = vadd.f32 %v2987_v36, %v6807_v31  ;;  %v6960_v36 = vld [vmem:[#allocation7 + $0x22] ss:$0 sm:$0xff] }
 0x5db   : > { %v6945_v11 = vpop.f32.mrf.mxu0 }
 0x5dc   : > { %3088 = vadd.xlane.f32.xlu1 %v3059_v27  ;;  %3026 = vadd.xlane.f32.xlu0 %v6938_v61  ;;  %v3060_v17 = vmul.f32 %v6938_v61, %v6938_v61 }
 0x5dd   : > { %v2991_v22 = vpop.f32.mrf.mxu0 }
 0x5de   : > { %v6949_v26 = vadd.f32 %v2991_v22, %v6807_v31 }
 0x5e0   : > { %3028 = vadd.xlane.f32.xlu1 %v6949_v26  ;;  %3090 = vadd.xlane.f32.xlu0 %v3060_v17  ;;  %v3061_v30 = vmul.f32 %v6949_v26, %v6949_v26 }
 0x5e4   : > { %3092 = vadd.xlane.f32.xlu1 %v3061_v30 }
 0x60b   : > { %v2999_v23 = vpop.xlane.xlu0 %2998 }
 0x60c   : > { %v3030_v31 = vmul.f32 0.0078125, %v2999_v23  ;;  %v6962_v23 = vld [vmem:[#allocation7 + $0x23] ss:$0 sm:$0xff] }
 0x60e   : > { %v3110_v49 = vmul.f32 %v3030_v31, %v3030_v31  ;;  %v3158_v6 = vsub.f32 %v6810_v39, %v3030_v31 }
 0x60f   : > { %v3063_v58 = vpop.xlane.xlu0 %3062  ;;  %v3001_v63 = vpop.xlane.xlu1 %3000 }
 0x610   : > { %v3094_v7 = vmul.f32 0.0078125, %v3063_v58  ;;  %v3031_v5 = vmul.f32 0.0078125, %v3001_v63 }
 0x612   : > { %v3126_v16 = vsub.f32 %v3094_v7, %v3110_v49  ;;  %v3111_v54 = vmul.f32 %v3031_v5, %v3031_v5  ;;  %v3159_v58 = vsub.f32 %v6816_v0, %v3031_v5 }
 0x613   : > { %v3065_v59 = vpop.xlane.xlu1 %3064 }
 0x614   : > { %v3142_v35 = vmax.f32 %v3126_v16, 0.0  ;;  %v3095_v47 = vmul.f32 0.0078125, %v3065_v59 }
 0x616   : > { %v3174_v40 = vadd.f32 1e-05, %v3142_v35  ;;  %v3127_v45 = vsub.f32 %v3095_v47, %v3111_v54  ;;  %v7669_v47 = vld [vmem:[#allocation13_spill] sm:$0xff] }
 0x618   : > { %4495 = vrsqrt.f32 %v3174_v40  ;;  %v3143_v44 = vmax.f32 %v3127_v45, 0.0  ;;  %v6970_v40 = vrot.slane %v6803_v57, %v7669_v47 }
 0x61a   : > { %v3175_v9 = vadd.f32 1e-05, %v3143_v44 }
 0x61c   : > { %4497 = vrsqrt.f32 %v3175_v9 }
 0x622   : > { %v3003_v38 = vpop.xlane.xlu0 %3002 }
 0x623   : > { %v3032_v56 = vmul.f32 0.0078125, %v3003_v38  ;;  %v2920_v38 = vadd.f32 %v6812_v48, %v6970_v40 }
 0x625   : > { %v3112_v41 = vmul.f32 %v3032_v56, %v3032_v56  ;;  %v4496_v60 = vpop.eup %4495 }
 0x626   : > { %v3067_v28 = vpop.xlane.xlu0 %3066  ;;  %v3005_v13 = vpop.xlane.xlu1 %3004  ;;  %v3206_v22 = vmul.f32 %v4496_v60, %v3158_v6 }
 0x627   : > { %v3096_v37 = vmul.f32 0.0078125, %v3067_v28  ;;  %v3033_v19 = vmul.f32 0.0078125, %v3005_v13  ;;  %v2924_v28 = vadd.f32 %v6823_v4, %v6970_v40 }
 0x628   : > { %v3222_v63 = vmul.f32 %v3206_v22, %v6960_v36 }
 0x629   : > { %v3128_v27 = vsub.f32 %v3096_v37, %v3112_v41  ;;  %v3113_v18 = vmul.f32 %v3033_v19, %v3033_v19  ;;  %v4498_v49 = vpop.eup %4497 }
 0x62a   : > { %v3069_v3 = vpop.xlane.xlu1 %3068  ;;  %v3207_v59 = vmul.f32 %v4498_v49, %v3159_v58  ;;  %v3238_v39 = vadd.f32 %v3222_v63, %v6962_v23 }
 0x62b   : > { %v3144_v17 = vmax.f32 %v3128_v27, 0.0  ;;  %v3097_v30 = vmul.f32 0.0078125, %v3069_v3 }
 0x62c   : > { %v3223_v35 = vmul.f32 %v3207_v59, %v6960_v36  ;;  %v3270_v54 = vmul.f32 0.1, %v3238_v39  ;;  %vm3254_vm1 = vcmp.ge.f32.partialorder %v3238_v39, 0.0  ;;  %v3161_v59 = vsub.f32 %v6832_v20, %v3033_v19 }
 0x62d   : > { %v3176_v7 = vadd.f32 1e-05, %v3144_v17  ;;  %v3129_v16 = vsub.f32 %v3097_v30, %v3113_v18  ;;  %v3160_v18 = vsub.f32 %v6826_v8, %v3032_v56  ;;  %v2930_v20 = vadd.f32 %v6828_v14, %v6970_v40 }
 0x62e   : > { %v3239_v0 = vadd.f32 %v3223_v35, %v6962_v23  ;;  %v3286_v9 = vsel %vm3254_vm1, %v3238_v39, %v3270_v54 }
 0x62f   : > { %4499 = vrsqrt.f32 %v3176_v7  ;;  %v3145_v31 = vmax.f32 %v3129_v16, 0.0  ;;  %v3302_v57 = vadd.f32 %v3286_v9, %v2920_v38 }
 0x630   : > { %vm3255_vm2 = vcmp.ge.f32.partialorder %v3239_v0, 0.0  ;;  %v3271_v44 = vmul.f32 0.1, %v3239_v0 }
 0x631   : > { %v3177_v45 = vadd.f32 1e-05, %v3145_v31 }
 0x632   : > { %v3287_v41 = vsel %vm3255_vm2, %v3239_v0, %v3271_v44 }
 0x633   : > { %4501 = vrsqrt.f32 %v3177_v45  ;;  %v3303_v37 = vadd.f32 %v3287_v41, %v2924_v28 }
 0x634   : > { %v3007_v5 = vpop.xlane.xlu0 %3006 }
 0x635   : > { %v6977_v13 = vmul.f32 0.0078125, %v3007_v5  ;;  %v3318_v17 = vpack.c.bf16 %v3303_v37, %v3302_v57  ;;  %v2934_v57 = vadd.f32 %v6839_v43, %v6970_v40 }
 0x637   : > { %v3114_v27 = vmul.f32 %v6977_v13, %v6977_v13  ;;  %4151 = vmatprep.mubr.bf16.mxu1 %v3318_v17 }
 0x638   : > { %v3071_v6 = vpop.xlane.xlu0 %3070  ;;  %v3009_v60 = vpop.xlane.xlu1 %3008 }
 0x639   : > { %v3098_v3 = vmul.f32 0.0078125, %v3071_v6  ;;  %v6981_v22 = vmul.f32 0.0078125, %v3009_v60 }
 0x63b   : > { %v3130_v48 = vsub.f32 %v3098_v3, %v3114_v27  ;;  %v3115_v49 = vmul.f32 %v6981_v22, %v6981_v22 }
 0x63c   : > { %v4500_v30 = vpop.eup %4499  ;;  %v3073_v4 = vpop.xlane.xlu1 %3072 }
 0x63d   : > { %v3208_v58 = vmul.f32 %v4500_v30, %v3160_v18  ;;  %v3146_v63 = vmax.f32 %v3130_v48, 0.0  ;;  %v3099_v7 = vmul.f32 0.0078125, %v3073_v4 }
 0x63f   : > { %v3224_v16 = vmul.f32 %v3208_v58, %v6960_v36  ;;  %v3178_v39 = vadd.f32 1e-05, %v3146_v63  ;;  %v3131_v31 = vsub.f32 %v3099_v7, %v3115_v49  ;;  %v3162_v49 = vsub.f32 %v6845_v1, %v6977_v13 }
 0x640   : > { %v4502_v35 = vpop.eup %4501 }
 0x641   : > { %v3209_v54 = vmul.f32 %v4502_v35, %v3161_v59  ;;  %4503 = vrsqrt.f32 %v3178_v39  ;;  %v3147_v8 = vmax.f32 %v3131_v31, 0.0  ;;  %v3240_v56 = vadd.f32 %v3224_v16, %v6962_v23 }
 0x643   : > { %v3225_v47 = vmul.f32 %v3209_v54, %v6960_v36  ;;  %v3179_v0 = vadd.f32 1e-05, %v3147_v8  ;;  %v3272_v5 = vmul.f32 0.1, %v3240_v56  ;;  %vm3256_vm3 = vcmp.ge.f32.partialorder %v3240_v56, 0.0 }
 0x645   : > { %v3011_v45 = vpop.xlane.xlu0 %3010  ;;  %4505 = vrsqrt.f32 %v3179_v0  ;;  %v3241_v9 = vadd.f32 %v3225_v47, %v6962_v23  ;;  %v3288_v41 = vsel %vm3256_vm3, %v3240_v56, %v3272_v5 }
 0x646   : > { %v6990_v44 = vmul.f32 0.0078125, %v3011_v45  ;;  %v3304_v17 = vadd.f32 %v3288_v41, %v2930_v20  ;;  %v3163_v45 = vsub.f32 %v6851_v50, %v6981_v22 }
 0x647   : > { %vm3257_vm4 = vcmp.ge.f32.partialorder %v3241_v9, 0.0  ;;  %v3273_v28 = vmul.f32 0.1, %v3241_v9 }
 0x648   : > { %v3116_v37 = vmul.f32 %v6990_v44, %v6990_v44 }
 0x649   : > { %v3075_v19 = vpop.xlane.xlu0 %3074  ;;  %v3013_v38 = vpop.xlane.xlu1 %3012  ;;  %v3289_v27 = vsel %vm3257_vm4, %v3241_v9, %v3273_v28 }
 0x64a   : > { %v3100_v6 = vmul.f32 0.0078125, %v3075_v19  ;;  %v6999_v60 = vmul.f32 0.0078125, %v3013_v38  ;;  %v3305_v18 = vadd.f32 %v3289_v27, %v2934_v57 }
 0x64c   : > { %v3132_v3 = vsub.f32 %v3100_v6, %v3116_v37  ;;  %v3117_v14 = vmul.f32 %v6999_v60, %v6999_v60  ;;  %v3319_v43 = vpack.c.bf16 %v3305_v18, %v3304_v17 }
 0x64d   : > { %v3015_v48 = vpop.xlane.xlu0 %3014  ;;  %v3077_v30 = vpop.xlane.xlu1 %3076 }
 0x64e   : > { %v3148_v4 = vmax.f32 %v3132_v3, 0.0  ;;  %v7003_v58 = vmul.f32 0.0078125, %v3015_v48  ;;  %v3101_v63 = vmul.f32 0.0078125, %v3077_v30  ;;  %v4504_v7 = vpop.eup %4503  ;;  %4152 = vmatmul.mubr.bf16.vlgmr.msra.gmra.mxu1 %v3319_v43 }
 0x64f   : > { %v3210_v54 = vmul.f32 %v4504_v7, %v3162_v49 }
 0x650   : > { %v3180_v16 = vadd.f32 1e-05, %v3148_v4  ;;  %v3133_v59 = vsub.f32 %v3101_v63, %v3117_v14  ;;  %v3118_v39 = vmul.f32 %v7003_v58, %v7003_v58 }
 0x651   : > { %v3079_v31 = vpop.xlane.xlu0 %3078  ;;  %v3017_v35 = vpop.xlane.xlu1 %3016  ;;  %v3226_v1 = vmul.f32 %v3210_v54, %v6960_v36 }
 0x652   : > { %4507 = vrsqrt.f32 %v3180_v16  ;;  %v3149_v8 = vmax.f32 %v3133_v59, 0.0  ;;  %v3102_v56 = vmul.f32 0.0078125, %v3079_v31  ;;  %v7009_v47 = vmul.f32 0.0078125, %v3017_v35  ;;  %v4506_v13 = vpop.eup %4505 }
 0x653   : > { %v3211_v38 = vmul.f32 %v4506_v13, %v3163_v45  ;;  %v3242_v28 = vadd.f32 %v3226_v1, %v6962_v23  ;;  %v2940_v16 = vadd.f32 %v6847_v46, %v6970_v40  ;;  %v2944_v59 = vadd.f32 %v6858_v55, %v6970_v40 }
 0x654   : > { %v3181_v0 = vadd.f32 1e-05, %v3149_v8  ;;  %v3134_v5 = vsub.f32 %v3102_v56, %v3118_v39  ;;  %v3119_v9 = vmul.f32 %v7009_v47, %v7009_v47  ;;  %v3164_v13 = vsub.f32 %v6861_v34, %v6990_v44 }
 0x655   : > { %v3019_v20 = vpop.xlane.xlu0 %3018  ;;  %v3081_v19 = vpop.xlane.xlu1 %3080  ;;  %v3227_v50 = vmul.f32 %v3211_v38, %v6960_v36  ;;  %v3274_v27 = vmul.f32 0.1, %v3242_v28  ;;  %vm3258_vm5 = vcmp.ge.f32.partialorder %v3242_v28, 0.0  ;;  %v3165_v34 = vsub.f32 %v6867_v32, %v6999_v60 }
 0x656   : > { %4509 = vrsqrt.f32 %v3181_v0  ;;  %v3150_v41 = vmax.f32 %v3134_v5, 0.0  ;;  %v7017_v57 = vmul.f32 0.0078125, %v3019_v20  ;;  %v3103_v37 = vmul.f32 0.0078125, %v3081_v19 }
 0x657   : > { %v3243_v14 = vadd.f32 %v3227_v50, %v6962_v23  ;;  %v3290_v7 = vsel %vm3258_vm5, %v3242_v28, %v3274_v27  ;;  %v3166_v32 = vsub.f32 %v6875_v21, %v7003_v58 }
 0x658   : > { %v3182_v22 = vadd.f32 1e-05, %v3150_v41  ;;  %v3135_v6 = vsub.f32 %v3103_v37, %v3119_v9  ;;  %v3120_v3 = vmul.f32 %v7017_v57, %v7017_v57  ;;  %v3306_v0 = vadd.f32 %v3290_v7, %v2940_v16 }
 0x659   : > { %v3083_v17 = vpop.xlane.xlu0 %3082  ;;  %v3021_v18 = vpop.xlane.xlu1 %3020  ;;  %vm3259_vm6 = vcmp.ge.f32.partialorder %v3243_v14, 0.0  ;;  %v3275_v63 = vmul.f32 0.1, %v3243_v14  ;;  %v2950_v16 = vadd.f32 %v6863_v2, %v6970_v40 }
 0x65a   : > { %4511 = vrsqrt.f32 %v3182_v22  ;;  %v3151_v48 = vmax.f32 %v3135_v6, 0.0  ;;  %v3104_v30 = vmul.f32 0.0078125, %v3083_v17  ;;  %v7023_v4 = vmul.f32 0.0078125, %v3021_v18 }
 0x65b   : > { %v3291_v54 = vsel %vm3259_vm6, %v3243_v14, %v3275_v63 }
 0x65c   : > { %v3183_v43 = vadd.f32 1e-05, %v3151_v48  ;;  %v3136_v49 = vsub.f32 %v3104_v30, %v3120_v3  ;;  %v3121_v39 = vmul.f32 %v7023_v4, %v7023_v4  ;;  %v3307_v46 = vadd.f32 %v3291_v54, %v2944_v59 }
 0x65d   : > { %v3023_v31 = vpop.xlane.xlu0 %3022  ;;  %v3085_v35 = vpop.xlane.xlu1 %3084  ;;  %v2954_v59 = vadd.f32 %v6871_v42, %v6970_v40  ;;  %v3167_v42 = vsub.f32 %v6886_v24, %v7009_v47 }
 0x65e   : > { %4513 = vrsqrt.f32 %v3183_v43  ;;  %v3152_v8 = vmax.f32 %v3136_v49, 0.0  ;;  %v7031_v56 = vmul.f32 0.0078125, %v3023_v31  ;;  %v3105_v45 = vmul.f32 0.0078125, %v3085_v35 }
 0x65f   : > { %v4508_v1 = vpop.eup %4507  ;;  %v3320_v38 = vpack.c.bf16 %v3307_v46, %v3306_v0 }
 0x660   : > { %v3184_v5 = vadd.f32 1e-05, %v3152_v8  ;;  %v3137_v9 = vsub.f32 %v3105_v45, %v3121_v39  ;;  %v3122_v55 = vmul.f32 %v7031_v56, %v7031_v56  ;;  %v3212_v28 = vmul.f32 %v4508_v1, %v3164_v13 }
 0x661   : > { %v3087_v20 = vpop.xlane.xlu0 %3086  ;;  %v3025_v19 = vpop.xlane.xlu1 %3024  ;;  %4155 = vmatprep.mubr.bf16.mxu1 %v3320_v38 }
 0x662   : > { %4515 = vrsqrt.f32 %v3184_v5  ;;  %v3153_v41 = vmax.f32 %v3137_v9, 0.0  ;;  %v3106_v37 = vmul.f32 0.0078125, %v3087_v20  ;;  %v7037_v50 = vmul.f32 0.0078125, %v3025_v19 }
 0x663   : > { %v4510_v22 = vpop.eup %4509  ;;  %v3228_v44 = vmul.f32 %v3212_v28, %v6960_v36  ;;  %v3168_v9 = vsub.f32 %v6897_v62, %v7017_v57 }
 0x664   : > { %v3185_v6 = vadd.f32 1e-05, %v3153_v41  ;;  %v3138_v27 = vsub.f32 %v3106_v37, %v3122_v55  ;;  %v3123_v3 = vmul.f32 %v7037_v50, %v7037_v50  ;;  %v3213_v14 = vmul.f32 %v4510_v22, %v3165_v34 }
 0x665   : > { %v3027_v17 = vpop.xlane.xlu0 %3026  ;;  %v3089_v18 = vpop.xlane.xlu1 %3088  ;;  %v3244_v48 = vadd.f32 %v3228_v44, %v6962_v23 }
 0x666   : > { %4517 = vrsqrt.f32 %v3185_v6  ;;  %v3154_v30 = vmax.f32 %v3138_v27, 0.0  ;;  %v7045_v63 = vmul.f32 0.0078125, %v3027_v17  ;;  %v3107_v43 = vmul.f32 0.0078125, %v3089_v18 }
 0x667   : > { %v4512_v49 = vpop.eup %4511  ;;  %v3229_v60 = vmul.f32 %v3213_v14, %v6960_v36  ;;  %vm3260_vm7 = vcmp.ge.f32.partialorder %v3244_v48, 0.0  ;;  %v3276_v7 = vmul.f32 0.1, %v3244_v48  ;;  %v3169_v14 = vsub.f32 %v6905_v52, %v7023_v4 }
 0x668   : > { %v3186_v39 = vadd.f32 1e-05, %v3154_v30  ;;  %v3139_v31 = vsub.f32 %v3107_v43, %v3123_v3  ;;  %v3124_v35 = vmul.f32 %v7045_v63, %v7045_v63  ;;  %v3214_v58 = vmul.f32 %v4512_v49, %v3166_v32 }
 0x669   : > { %v3091_v54 = vpop.xlane.xlu0 %3090  ;;  %v3029_v8 = vpop.xlane.xlu1 %3028  ;;  %v3245_v45 = vadd.f32 %v3229_v60, %v6962_v23  ;;  %v3292_v21 = vsel %vm3260_vm7, %v3244_v48, %v3276_v7  ;;  %v2960_v49 = vadd.f32 %v6879_v33, %v6970_v40  ;;  %v2964_v7 = vadd.f32 %v6890_v29, %v6970_v40 }
 0x66a   : > { %4519 = vrsqrt.f32 %v3186_v39  ;;  %v3155_v1 = vmax.f32 %v3139_v31, 0.0  ;;  %v3108_v13 = vmul.f32 0.0078125, %v3091_v54  ;;  %v7057_v0 = vmul.f32 0.0078125, %v3029_v8 }
 0x66b   : > { %v4514_v2 = vpop.eup %4513  ;;  %vm3261_vm8 = vcmp.ge.f32.partialorder %v3245_v45, 0.0  ;;  %v3277_v46 = vmul.f32 0.1, %v3245_v45  ;;  %v3230_v5 = vmul.f32 %v3214_v58, %v6960_v36  ;;  %v3308_v19 = vadd.f32 %v3292_v21, %v2950_v16 }
 0x66c   : > { %v3187_v55 = vadd.f32 1e-05, %v3155_v1  ;;  %v3140_v20 = vsub.f32 %v3108_v13, %v3124_v35  ;;  %v3125_v38 = vmul.f32 %v7057_v0, %v7057_v0  ;;  %v3215_v37 = vmul.f32 %v4514_v2, %v3167_v42 }
 0x66d   : > { %v3093_v28 = vpop.xlane.xlu1 %3092  ;;  %v3293_v41 = vsel %vm3261_vm8, %v3245_v45, %v3277_v46  ;;  %v3246_v22 = vadd.f32 %v3230_v5, %v6962_v23  ;;  %v3170_v4 = vsub.f32 %v6916_v15, %v7031_v56  ;;  %v3171_v58 = vsub.f32 %v6927_v12, %v7037_v50 }
 0x66e   : > { %4521 = vrsqrt.f32 %v3187_v55  ;;  %v3156_v24 = vmax.f32 %v3140_v20, 0.0  ;;  %v3109_v47 = vmul.f32 0.0078125, %v3093_v28  ;;  %v3309_v34 = vadd.f32 %v3293_v41, %v2954_v59 }
 0x66f   : > { %v4516_v44 = vpop.eup %4515  ;;  %v3231_v6 = vmul.f32 %v3215_v37, %v6960_v36  ;;  %vm3262_vm9 = vcmp.ge.f32.partialorder %v3246_v22, 0.0  ;;  %v3278_v62 = vmul.f32 0.1, %v3246_v22  ;;  %v2970_v2 = vadd.f32 %v6901_v10, %v6970_v40 }
 0x670   : > { %v3188_v57 = vadd.f32 1e-05, %v3156_v24  ;;  %v3141_v27 = vsub.f32 %v3109_v47, %v3125_v38  ;;  %v3321_v3 = vpack.c.bf16 %v3309_v34, %v3308_v19  ;;  %v3216_v17 = vmul.f32 %v4516_v44, %v3168_v9 }
 0x671   : > { %v3247_v18 = vadd.f32 %v3231_v6, %v6962_v23  ;;  %v3294_v60 = vsel %vm3262_vm9, %v3246_v22, %v3278_v62  ;;  %v2974_v42 = vadd.f32 %v6912_v53, %v6970_v40  ;;  %v3172_v12 = vsub.f32 %v6938_v61, %v7045_v63 }
 0x672   : > { %4523 = vrsqrt.f32 %v3188_v57  ;;  %v3157_v48 = vmax.f32 %v3141_v27, 0.0  ;;  %4156 = vmatmul.mubr.bf16.gmra.mxu1 %v3321_v3  ;;  %v3232_v30 = vmul.f32 %v3216_v17, %v6960_v36  ;;  %v3310_v31 = vadd.f32 %v3294_v60, %v2960_v49  ;;  %v2993_v3 = vpop.f32.mrf.mxu0 }
 0x673   : > { %v4518_v43 = vpop.eup %4517  ;;  %vm3263_vm10 = vcmp.ge.f32.partialorder %v3247_v18, 0.0  ;;  %v3279_v32 = vmul.f32 0.1, %v3247_v18  ;;  %v3173_v53 = vsub.f32 %v6949_v26, %v7057_v0  ;;  %v2980_v61 = vadd.f32 %v6923_v51, %v6970_v40 }
 0x674   : > { %v3189_v16 = vadd.f32 1e-05, %v3157_v48  ;;  %v3217_v59 = vmul.f32 %v4518_v43, %v3169_v14  ;;  %v3248_v52 = vadd.f32 %v3232_v30, %v6962_v23  ;;  %v2984_v63 = vadd.f32 %v6934_v25, %v6970_v40 }
 0x675   : > { %v3295_v39 = vsel %vm3263_vm10, %v3247_v18, %v3279_v32  ;;  %v2990_v25 = vadd.f32 %v6945_v11, %v6970_v40  ;;  %v2994_v14 = vadd.f32 %v2993_v3, %v6970_v40 }
 0x676   : > { %4525 = vrsqrt.f32 %v3189_v16  ;;  %v3311_v35 = vadd.f32 %v3295_v39, %v2964_v7  ;;  %v3233_v33 = vmul.f32 %v3217_v59, %v6960_v36  ;;  %vm3264_vm11 = vcmp.ge.f32.partialorder %v3248_v52, 0.0 }
 0x677   : > { %v4520_v54 = vpop.eup %4519  ;;  %v3280_v8 = vmul.f32 0.1, %v3248_v52 }
 0x678   : > { %v3322_v45 = vpack.c.bf16 %v3311_v35, %v3310_v31  ;;  %v3249_v21 = vadd.f32 %v3233_v33, %v6962_v23  ;;  %v3218_v29 = vmul.f32 %v4520_v54, %v3170_v4 }
 0x679   : > { %v3296_v15 = vsel %vm3264_vm11, %v3248_v52, %v3280_v8 }
 0x67a   : > { %4159 = vmatprep.mubr.bf16.mxu1 %v3322_v45  ;;  %vm3265_vm12 = vcmp.ge.f32.partialorder %v3249_v21, 0.0  ;;  %v3281_v1 = vmul.f32 0.1, %v3249_v21  ;;  %v3234_v56 = vmul.f32 %v3218_v29, %v6960_v36  ;;  %v3312_v55 = vadd.f32 %v3296_v15, %v2970_v2 }
 0x67b   : > { %v4522_v13 = vpop.eup %4521 }
 0x67c   : > { %v3297_v46 = vsel %vm3265_vm12, %v3249_v21, %v3281_v1  ;;  %v3219_v5 = vmul.f32 %v4522_v13, %v3171_v58  ;;  %v3250_v9 = vadd.f32 %v3234_v56, %v6962_v23 }
 0x67d   : > { %v3313_v20 = vadd.f32 %v3297_v46, %v2974_v42 }
 0x67e   : > { %v3235_v50 = vmul.f32 %v3219_v5, %v6960_v36  ;;  %v3282_v19 = vmul.f32 0.1, %v3250_v9  ;;  %vm3266_vm13 = vcmp.ge.f32.partialorder %v3250_v9, 0.0 }
 0x67f   : > { %v4524_v38 = vpop.eup %4523  ;;  %v3323_v28 = vpack.c.bf16 %v3313_v20, %v3312_v55 }
 0x680   : > { %v3251_v10 = vadd.f32 %v3235_v50, %v6962_v23  ;;  %v3220_v41 = vmul.f32 %v4524_v38, %v3172_v12  ;;  %v3298_v22 = vsel %vm3266_vm13, %v3250_v9, %v3282_v19 }
 0x681   : > { %4160 = vmatmul.mubr.bf16.gmra.mxu1 %v3323_v28  ;;  %v3314_v62 = vadd.f32 %v3298_v22, %v2980_v61 }
 0x682   : > { %vm3267_vm14 = vcmp.ge.f32.partialorder %v3251_v10, 0.0  ;;  %v3283_v37 = vmul.f32 0.1, %v3251_v10  ;;  %v3236_v24 = vmul.f32 %v3220_v41, %v6960_v36 }
 0x683   : > { %v4526_v47 = vpop.eup %4525 }
 0x684   : > { %v3299_v34 = vsel %vm3267_vm14, %v3251_v10, %v3283_v37  ;;  %v3221_v44 = vmul.f32 %v4526_v47, %v3173_v53  ;;  %v3252_v6 = vadd.f32 %v3236_v24, %v6962_v23  ;;  %v7129_v24 = vld [vmem:[#allocation7 + $0x27] ss:$0 sm:$0xff] }
 0x685   : > { %v3315_v57 = vadd.f32 %v3299_v34, %v2984_v63  ;;  %vm3492_vm1 = vcmp.gt.f32.partialorder %v7129_v24, 0.01 }
 0x686   : > { %v3237_v26 = vmul.f32 %v3221_v44, %v6960_v36  ;;  %v3284_v0 = vmul.f32 0.1, %v3252_v6  ;;  %vm3268_vm15 = vcmp.ge.f32.partialorder %v3252_v6, 0.0  ;;  %v7107_v36 = vld [vmem:[#allocation7 + $0x24] ss:$0 sm:$0xff] }
 0x687   : > { %v3324_v27 = vpack.c.bf16 %v3315_v57, %v3314_v62  ;;  %v7137_v57 = vld [vmem:[#allocation7 + $0x25] ss:$0 sm:$0xff] }
 0x688   : > { %v3253_v17 = vadd.f32 %v3237_v26, %v6962_v23  ;;  %v3300_v18 = vsel %vm3268_vm15, %v3252_v6, %v3284_v0 }
 0x689   : > { %4163 = vmatprep.mubr.bf16.mxu1 %v3324_v27  ;;  %v3316_v30 = vadd.f32 %v3300_v18, %v2990_v25  ;;  %v7145_v18 = vld [vmem:[#allocation7 + $0x40] ss:$0 sm:$0xff] }
 0x68a   : > { %vm3269_vm0 = vcmp.ge.f32.partialorder %v3253_v17, 0.0  ;;  %v3285_v51 = vmul.f32 0.1, %v3253_v17 }
 0x68c   : > { %v3301_v48 = vsel %vm3269_vm0, %v3253_v17, %v3285_v51 }
 0x68d   : > { %v3317_v43 = vadd.f32 %v3301_v48, %v2994_v14 }
 0x68f   : > { %v3325_v49 = vpack.c.bf16 %v3317_v43, %v3316_v30 }
 0x691   : > { %4164 = vmatmul.mubr.bf16.gmra.mxu1 %v3325_v49 }
 0x70e   : > { %v4153_v32 = vpop.f32.mrf.mxu1 }
 0x70f   : > { %v7110_v60 = vadd.f32 %v4153_v32, %v7107_v36 }
 0x710   : > { %v3425_v23 = vpop.f32.mrf.mxu1 }
 0x711   : > { %v4099_v7 = vmul.f32 -1.442695, %v7110_v60  ;;  %v3639_v16 = vand.u32 2147483647, %v7110_v60  ;;  %v7115_v11 = vadd.f32 %v3425_v23, %v7107_v36  ;;  %v3623_v26 = vmax.f32 %v7110_v60, 0.0 }
 0x712   : > { %v4154_v40 = vpop.f32.mrf.mxu1 }
 0x713   : > { %4527 = vpow2.f32 %v4099_v7  ;;  %v3655_v59 = vsub.f32 0.0, %v3639_v16  ;;  %v4097_v52 = vmul.f32 -1.442695, %v7115_v11  ;;  %v3637_v4 = vand.u32 2147483647, %v7115_v11 }
 0x714   : > { %v7120_v39 = vadd.f32 %v4154_v40, %v7107_v36  ;;  %v3428_v31 = vpop.f32.mrf.mxu1  ;;  %v3621_v0 = vmax.f32 %v7115_v11, 0.0 }
 0x715   : > { %v3673_v35 = vmul.f32 1.442695, %v3655_v59  ;;  %4529 = vpow2.f32 %v4097_v52  ;;  %v7123_v33 = vadd.f32 %v3428_v31, %v7107_v36  ;;  %v3653_v54 = vsub.f32 0.0, %v3637_v4 }
 0x716   : > { %v4100_v8 = vmul.f32 -1.442695, %v7120_v39  ;;  %v3640_v45 = vand.u32 2147483647, %v7120_v39  ;;  %v3624_v43 = vmax.f32 %v7120_v39, 0.0 }
 0x717   : > { %4531 = vpow2.f32 %v3673_v35  ;;  %v4098_v21 = vmul.f32 -1.442695, %v7123_v33  ;;  %v3638_v29 = vand.u32 2147483647, %v7123_v33  ;;  %v3669_v58 = vmul.f32 1.442695, %v3653_v54 }
 0x718   : > { %4533 = vpow2.f32 %v4100_v8  ;;  %v3656_v1 = vsub.f32 0.0, %v3640_v45  ;;  %v3622_v49 = vmax.f32 %v7123_v33, 0.0  ;;  %v7161_v45 = vld [vmem:[#allocation7 + $0x26] ss:$0 sm:$0xff] }
 0x719   : > { %4535 = vpow2.f32 %v4098_v21  ;;  %v3654_v15 = vsub.f32 0.0, %v3638_v29 }
 0x71a   : > { %4537 = vpow2.f32 %v3669_v58  ;;  %v3675_v56 = vmul.f32 1.442695, %v3656_v1 }
 0x71b   : > { %v3671_v13 = vmul.f32 1.442695, %v3654_v15 }
 0x71c   : > { %4539 = vpow2.f32 %v3675_v56 }
 0x71d   : > { %4541 = vpow2.f32 %v3671_v13 }
 0x720   : > { %v4528_v2 = vpop.eup %4527 }
 0x721   : > { %v3543_v42 = vadd.f32 1.0, %v4528_v2 }
 0x722   : > { %v4530_v46 = vpop.eup %4529 }
 0x723   : > { %4543 = vrcp.f32 %v3543_v42  ;;  %v3541_v5 = vadd.f32 1.0, %v4530_v46 }
 0x724   : > { %v4532_v9 = vpop.eup %4531 }
 0x725   : > { %v4534_v55 = vpop.eup %4533  ;;  %v3703_v20 = vadd.f32 1.0, %v4532_v9  ;;  %4545 = vrcp.f32 %v3541_v5 }
 0x726   : > { %v4536_v12 = vpop.eup %4535  ;;  %v3544_v50 = vadd.f32 1.0, %v4534_v55 }
 0x727   : > { %v4538_v19 = vpop.eup %4537  ;;  %4547 = vlog2.f32 %v3703_v20  ;;  %v3542_v38 = vadd.f32 1.0, %v4536_v12 }
 0x728   : > { %v3701_v28 = vadd.f32 1.0, %v4538_v19  ;;  %4549 = vrcp.f32 %v3544_v50 }
 0x729   : > { %v4540_v10 = vpop.eup %4539  ;;  %4551 = vrcp.f32 %v3542_v38 }
 0x72a   : > { %v4542_v41 = vpop.eup %4541  ;;  %4553 = vlog2.f32 %v3701_v28  ;;  %v3704_v53 = vadd.f32 1.0, %v4540_v10 }
 0x72b   : > { %v3702_v37 = vadd.f32 1.0, %v4542_v41 }
 0x72c   : > { %4555 = vlog2.f32 %v3704_v53 }
 0x72d   : > { %4557 = vlog2.f32 %v3702_v37 }
 0x730   : > { %v4544_v22 = vpop.eup %4543 }
 0x731   : > { %v3591_v44 = vmul.f32 %v4544_v22, %v7129_v24 }
 0x732   : > { %v4157_v47 = vpop.f32.mrf.mxu1  ;;  %v4546_v63 = vpop.eup %4545 }
 0x733   : > { %v7132_v61 = vadd.f32 %v4157_v47, %v7107_v36  ;;  %v3589_v14 = vmul.f32 %v4546_v63, %v7129_v24  ;;  %v3607_v7 = vadd.f32 %v3591_v44, %v7137_v57 }
 0x734   : > { %v3441_v34 = vpop.f32.mrf.mxu1  ;;  %v4548_v62 = vpop.eup %4547 }
 0x735   : > { %v4103_v6 = vmul.f32 -1.442695, %v7132_v61  ;;  %v3643_v27 = vand.u32 2147483647, %v7132_v61  ;;  %v7143_v3 = vadd.f32 %v3441_v34, %v7107_v36  ;;  %v4550_v51 = vpop.eup %4549  ;;  %v3722_v25 = vmul.f32 0.6931472, %v4548_v62 }
 0x736   : > { %v4158_v17 = vpop.f32.mrf.mxu1  ;;  %v4552_v30 = vpop.eup %4551  ;;  %v3592_v52 = vmul.f32 %v4550_v51, %v7129_v24  ;;  %v3605_v35 = vadd.f32 %v3589_v14, %v7137_v57 }
 0x737   : > { %4559 = vpow2.f32 %v4103_v6  ;;  %v7149_v48 = vadd.f32 %v4158_v17, %v7107_v36  ;;  %v3659_v32 = vsub.f32 0.0, %v3643_v27  ;;  %v4101_v60 = vmul.f32 -1.442695, %v7143_v3  ;;  %v4554_v23 = vpop.eup %4553 }
 0x738   : > { %v3751_v16 = vadd.f32 %v3722_v25, %v3623_v26  ;;  %v3641_v11 = vand.u32 2147483647, %v7143_v3  ;;  %v3718_v59 = vmul.f32 0.6931472, %v4554_v23  ;;  %v3444_v54 = vpop.f32.mrf.mxu1  ;;  %v3590_v58 = vmul.f32 %v4552_v30, %v7129_v24 }
 0x739   : > { %v4104_v40 = vmul.f32 -1.442695, %v7149_v48  ;;  %v3681_v4 = vmul.f32 1.442695, %v3659_v32  ;;  %4561 = vpow2.f32 %v4101_v60  ;;  %v4556_v31 = vpop.eup %4555  ;;  %v3644_v13 = vand.u32 2147483647, %v7149_v48 }
 0x73a   : > { %v3767_v39 = vmul.f32 %v3751_v16, %v7145_v18  ;;  %v3657_v33 = vsub.f32 0.0, %v3641_v11  ;;  %v4558_v8 = vpop.eup %4557  ;;  %v3749_v21 = vadd.f32 %v3718_v59, %v3621_v0  ;;  %v3724_v29 = vmul.f32 0.6931472, %v4556_v31 }
 0x73b   : > { %4563 = vpow2.f32 %v4104_v40  ;;  %v3720_v15 = vmul.f32 0.6931472, %v4558_v8  ;;  %v3608_v42 = vadd.f32 %v3592_v52, %v7137_v57  ;;  %v7171_v5 = vadd.f32 %v3444_v54, %v7107_v36 }
 0x73c   : > { %4565 = vpow2.f32 %v3681_v4  ;;  %v3783_v1 = vadd.f32 %v3767_v39, %v7137_v57  ;;  %v3677_v56 = vmul.f32 1.442695, %v3657_v33  ;;  %v3765_v2 = vmul.f32 %v3749_v21, %v7145_v18 }
 0x73d   : > { %v3752_v46 = vadd.f32 %v3724_v29, %v3624_v43  ;;  %v3750_v55 = vadd.f32 %v3720_v15, %v3622_v49  ;;  %v3660_v20 = vsub.f32 0.0, %v3644_v13  ;;  %v4102_v38 = vmul.f32 -1.442695, %v7171_v5 }
 0x73e   : > { %v3801_v9 = vsel %vm3492_vm1, %v3783_v1, %v3607_v7  ;;  %4567 = vpow2.f32 %v3677_v56  ;;  %v3781_v50 = vadd.f32 %v3765_v2, %v7137_v57  ;;  %v3606_v28 = vadd.f32 %v3590_v58, %v7137_v57 }
 0x73f   : > { %v3817_v12 = vmin.f32 %v3801_v9, %v7161_v45  ;;  %v3768_v19 = vmul.f32 %v3752_v46, %v7145_v18  ;;  %v3766_v10 = vmul.f32 %v3750_v55, %v7145_v18  ;;  %v3683_v41 = vmul.f32 1.442695, %v3660_v20 }
 0x740   : > { %v3642_v53 = vand.u32 2147483647, %v7171_v5  ;;  %v3799_v47 = vsel %vm3492_vm1, %v3781_v50, %v3605_v35  ;;  %4569 = vpow2.f32 %v4102_v38 }
 0x741   : > { %v4161_v37 = vpop.f32.mrf.mxu1  ;;  %v3833_v22 = vmax.f32 %v3817_v12, %v7137_v57  ;;  %v3784_v63 = vadd.f32 %v3768_v19, %v7137_v57  ;;  %v3815_v34 = vmin.f32 %v3799_v47, %v7161_v45  ;;  %v3782_v44 = vadd.f32 %v3766_v10, %v7137_v57 }
 0x742   : > { %4571 = vpow2.f32 %v3683_v41  ;;  %v3658_v6 = vsub.f32 0.0, %v3642_v53  ;;  %v7194_v27 = vadd.f32 %v4161_v37, %v7107_v36 }
 0x743   : > { %v3457_v62 = vpop.f32.mrf.mxu1  ;;  %3849 = vst [vmem:[%s7188_s21 + $0x10] sm:$0xff] %v3833_v22  ;;  %v3802_v0 = vsel %vm3492_vm1, %v3784_v63, %v3608_v42  ;;  %v3831_v51 = vmax.f32 %v3815_v34, %v7137_v57  ;;  %v3800_v14 = vsel %vm3492_vm1, %v3782_v44, %v3606_v28 }
 0x744   : > { %v4560_v26 = vpop.eup %4559  ;;  %v7197_v17 = vadd.f32 %v3457_v62, %v7107_v36  ;;  %v3818_v25 = vmin.f32 %v3802_v0, %v7161_v45  ;;  %v3816_v49 = vmin.f32 %v3800_v14, %v7161_v45  ;;  %v3679_v32 = vmul.f32 1.442695, %v3658_v6 }
 0x745   : > { %v3547_v30 = vadd.f32 1.0, %v4560_v26  ;;  %v4162_v43 = vpop.f32.mrf.mxu1  ;;  %v4107_v60 = vmul.f32 -1.442695, %v7194_v27  ;;  %3847 = vst [vmem:[%s7188_s21] sm:$0xff] %v3831_v51  ;;  %v3647_v16 = vand.u32 2147483647, %v7194_v27 }
 0x746   : > { %v4562_v23 = vpop.eup %4561  ;;  %v3834_v7 = vmax.f32 %v3818_v25, %v7137_v57  ;;  %v3832_v59 = vmax.f32 %v3816_v49, %v7137_v57  ;;  %v4105_v4 = vmul.f32 -1.442695, %v7197_v17  ;;  %v3645_v33 = vand.u32 2147483647, %v7197_v17 }
 0x747   : > { %4573 = vrcp.f32 %v3547_v30  ;;  %v3460_v11 = vpop.f32.mrf.mxu1  ;;  %v3545_v52 = vadd.f32 1.0, %v4562_v23  ;;  %v3663_v35 = vsub.f32 0.0, %v3647_v16  ;;  %v7214_v8 = vadd.f32 %v4162_v43, %v7107_v36 }
 0x748   : > { %v4564_v40 = vpop.eup %4563  ;;  %4575 = vpow2.f32 %v3679_v32  ;;  %3850 = vst [vmem:[%s7188_s21 + $0x18] sm:$0xff] %v3834_v7  ;;  %3848 = vst [vmem:[%s7188_s21 + $0x8] sm:$0xff] %v3832_v59  ;;  %v7217_v21 = vadd.f32 %v3460_v11, %v7107_v36  ;;  %v3661_v58 = vsub.f32 0.0, %v3645_v33  ;;  %v3627_v43 = vmax.f32 %v7132_v61, 0.0 }
 0x749   : > { %v4566_v31 = vpop.eup %4565  ;;  %v3548_v39 = vadd.f32 1.0, %v4564_v40  ;;  %4577 = vpow2.f32 %v4107_v60  ;;  %v3689_v29 = vmul.f32 1.442695, %v3663_v35  ;;  %v3648_v15 = vand.u32 2147483647, %v7214_v8 }
 0x74a   : > { %v3707_v54 = vadd.f32 1.0, %v4566_v31  ;;  %4579 = vrcp.f32 %v3545_v52  ;;  %v3685_v13 = vmul.f32 1.442695, %v3661_v58  ;;  %v4108_v2 = vmul.f32 -1.442695, %v7214_v8 }
 0x74b   : > { %4581 = vrcp.f32 %v3548_v39  ;;  %v4568_v1 = vpop.eup %4567  ;;  %v3664_v42 = vsub.f32 0.0, %v3648_v15  ;;  %v3646_v46 = vand.u32 2147483647, %v7217_v21  ;;  %v4106_v38 = vmul.f32 -1.442695, %v7217_v21 }
 0x74c   : > { %4583 = vlog2.f32 %v3707_v54  ;;  %v3705_v56 = vadd.f32 1.0, %v4568_v1  ;;  %v3625_v60 = vmax.f32 %v7143_v3, 0.0  ;;  %v3628_v40 = vmax.f32 %v7149_v48, 0.0 }
 0x74d   : > { %4585 = vpow2.f32 %v3689_v29  ;;  %v4570_v9 = vpop.eup %4569  ;;  %v3691_v12 = vmul.f32 1.442695, %v3664_v42  ;;  %v3662_v50 = vsub.f32 0.0, %v3646_v46  ;;  %v3626_v59 = vmax.f32 %v7171_v5, 0.0 }
 0x74e   : > { %4587 = vpow2.f32 %v4105_v4  ;;  %v3546_v20 = vadd.f32 1.0, %v4570_v9  ;;  %v3631_v5 = vmax.f32 %v7194_v27, 0.0 }
 0x74f   : > { %4589 = vlog2.f32 %v3705_v56  ;;  %v4572_v55 = vpop.eup %4571  ;;  %v3687_v10 = vmul.f32 1.442695, %v3662_v50 }
 0x750   : > { %4591 = vpow2.f32 %v3685_v13  ;;  %v3708_v19 = vadd.f32 1.0, %v4572_v55 }
 0x751   : > { %4593 = vpow2.f32 %v4108_v2  ;;  %v4165_v28 = vpop.f32.mrf.mxu1 }
 0x752   : > { %4595 = vrcp.f32 %v3546_v20  ;;  %v7224_v41 = vadd.f32 %v4165_v28, %v7107_v36 }
 0x753   : > { %4597 = vlog2.f32 %v3708_v19  ;;  %v3473_v53 = vpop.f32.mrf.mxu1 }
 0x754   : > { %v4574_v37 = vpop.eup %4573  ;;  %4599 = vpow2.f32 %v3691_v12  ;;  %v4111_v22 = vmul.f32 -1.442695, %v7224_v41  ;;  %v3651_v47 = vand.u32 2147483647, %v7224_v41  ;;  %v7229_v34 = vadd.f32 %v3473_v53, %v7107_v36 }
 0x755   : > { %v4576_v63 = vpop.eup %4575  ;;  %4601 = vpow2.f32 %v4106_v38  ;;  %v4166_v44 = vpop.f32.mrf.mxu1  ;;  %v3595_v61 = vmul.f32 %v4574_v37, %v7129_v24 }
 0x756   : > { %v4578_v6 = vpop.eup %4577  ;;  %v3706_v62 = vadd.f32 1.0, %v4576_v63  ;;  %4603 = vpow2.f32 %v3687_v10  ;;  %v3667_v26 = vsub.f32 0.0, %v3651_v47  ;;  %v7232_v0 = vadd.f32 %v4166_v44, %v7107_v36 }
 0x757   : > { %v4580_v51 = vpop.eup %4579  ;;  %v3551_v25 = vadd.f32 1.0, %v4578_v6  ;;  %4605 = vpow2.f32 %v4111_v22  ;;  %v4109_v14 = vmul.f32 -1.442695, %v7229_v34  ;;  %v3649_v23 = vand.u32 2147483647, %v7229_v34  ;;  %v3476_v1 = vpop.f32.mrf.mxu1 }
 0x758   : > { %v4582_v30 = vpop.eup %4581  ;;  %4607 = vlog2.f32 %v3706_v62  ;;  %v3697_v49 = vmul.f32 1.442695, %v3667_v26  ;;  %v4112_v7 = vmul.f32 -1.442695, %v7232_v0  ;;  %v3652_v33 = vand.u32 2147483647, %v7232_v0 }
 0x759   : > { %v4584_v32 = vpop.eup %4583  ;;  %4609 = vrcp.f32 %v3551_v25  ;;  %v3665_v31 = vsub.f32 0.0, %v3649_v23  ;;  %v3593_v29 = vmul.f32 %v4580_v51, %v7129_v24  ;;  %v3611_v46 = vadd.f32 %v3595_v61, %v7137_v57 }
 0x75a   : > { %v4586_v16 = vpop.eup %4585  ;;  %v3730_v11 = vmul.f32 0.6931472, %v4584_v32  ;;  %4611 = vpow2.f32 %v3697_v49  ;;  %v3668_v2 = vsub.f32 0.0, %v3652_v33  ;;  %v7248_v19 = vadd.f32 %v3476_v1, %v7107_v36 }
 0x75b   : > { %v4588_v52 = vpop.eup %4587  ;;  %v3711_v4 = vadd.f32 1.0, %v4586_v16  ;;  %4613 = vpow2.f32 %v4109_v14  ;;  %v3693_v48 = vmul.f32 1.442695, %v3665_v31  ;;  %v3596_v10 = vmul.f32 %v4582_v30, %v7129_v24 }
 0x75c   : > { %v4590_v39 = vpop.eup %4589  ;;  %v3755_v3 = vadd.f32 %v3730_v11, %v3627_v43  ;;  %v3549_v35 = vadd.f32 1.0, %v4588_v52  ;;  %4615 = vpow2.f32 %v4112_v7  ;;  %v3699_v50 = vmul.f32 1.442695, %v3668_v2 }
 0x75d   : > { %v4592_v54 = vpop.eup %4591  ;;  %v3726_v58 = vmul.f32 0.6931472, %v4590_v39  ;;  %4617 = vlog2.f32 %v3711_v4  ;;  %v3609_v47 = vadd.f32 %v3593_v29, %v7137_v57  ;;  %v4110_v14 = vmul.f32 -1.442695, %v7248_v19 }
 0x75e   : > { %v4594_v15 = vpop.eup %4593  ;;  %v3771_v56 = vmul.f32 %v3755_v3, %v7145_v18  ;;  %4619 = vrcp.f32 %v3549_v35  ;;  %v3709_v13 = vadd.f32 1.0, %v4592_v54  ;;  %v3650_v30 = vand.u32 2147483647, %v7248_v19 }
 0x75f   : > { %v4596_v42 = vpop.eup %4595  ;;  %v3753_v9 = vadd.f32 %v3726_v58, %v3625_v60  ;;  %v3552_v55 = vadd.f32 1.0, %v4594_v15  ;;  %4621 = vpow2.f32 %v3693_v48  ;;  %v3612_v52 = vadd.f32 %v3596_v10, %v7137_v57 }
 0x760   : > { %v4598_v20 = vpop.eup %4597  ;;  %v3787_v12 = vadd.f32 %v3771_v56, %v7137_v57  ;;  %4623 = vlog2.f32 %v3709_v13  ;;  %v3594_v4 = vmul.f32 %v4596_v42, %v7129_v24  ;;  %v3666_v31 = vsub.f32 0.0, %v3650_v30 }
 0x761   : > { %v4600_v38 = vpop.eup %4599  ;;  %v3769_v28 = vmul.f32 %v3753_v9, %v7145_v18  ;;  %v3732_v53 = vmul.f32 0.6931472, %v4598_v20  ;;  %4625 = vrcp.f32 %v3552_v55  ;;  %v3629_v10 = vmax.f32 %v7197_v17, 0.0 }
 0x762   : > { %v4602_v37 = vpop.eup %4601  ;;  %v3805_v22 = vsel %vm3492_vm1, %v3787_v12, %v3611_v46  ;;  %v3712_v63 = vadd.f32 1.0, %v4600_v38  ;;  %4627 = vpow2.f32 %v3699_v50  ;;  %v3695_v58 = vmul.f32 1.442695, %v3666_v31 }
 0x763   : > { %v4604_v44 = vpop.eup %4603  ;;  %v3821_v6 = vmin.f32 %v3805_v22, %v7161_v45  ;;  %v3785_v36 = vadd.f32 %v3769_v28, %v7137_v57  ;;  %v3756_v62 = vadd.f32 %v3732_v53, %v3628_v40  ;;  %v3550_v26 = vadd.f32 1.0, %v4602_v37 }
 0x764   : > { %v4606_v51 = vpop.eup %4605  ;;  %4629 = vlog2.f32 %v3712_v63  ;;  %v3710_v25 = vadd.f32 1.0, %v4604_v44  ;;  %v3610_v46 = vadd.f32 %v3594_v4, %v7137_v57 }
 0x765   : > { %v4608_v43 = vpop.eup %4607  ;;  %v3837_v49 = vmax.f32 %v3821_v6, %v7137_v57  ;;  %v3803_v32 = vsel %vm3492_vm1, %v3785_v36, %v3609_v47  ;;  %v3772_v60 = vmul.f32 %v3756_v62, %v7145_v18  ;;  %4631 = vrcp.f32 %v3550_v26 }
 0x766   : > { %v4610_v23 = vpop.eup %4609  ;;  %v3819_v7 = vmin.f32 %v3803_v32, %v7161_v45  ;;  %v3728_v16 = vmul.f32 0.6931472, %v4608_v43  ;;  %4633 = vlog2.f32 %v3710_v25  ;;  %v3555_v11 = vadd.f32 1.0, %v4606_v51 }
 0x767   : > { %v4612_v40 = vpop.eup %4611  ;;  %3853 = vst [vmem:[%s7188_s21 + $0x30] sm:$0xff] %v3837_v49  ;;  %v3788_v61 = vadd.f32 %v3772_v60, %v7137_v57  ;;  %4635 = vpow2.f32 %v4110_v14  ;;  %v3599_v55 = vmul.f32 %v4610_v23, %v7129_v24  ;;  %v3632_v14 = vmax.f32 %v7214_v8, 0.0 }
 0x768   : > { %v4614_v39 = vpop.eup %4613  ;;  %v3835_v3 = vmax.f32 %v3819_v7, %v7137_v57  ;;  %v3754_v35 = vadd.f32 %v3728_v16, %v3626_v59  ;;  %v3715_v33 = vadd.f32 1.0, %v4612_v40  ;;  %4637 = vrcp.f32 %v3555_v11 }
 0x769   : > { %v4616_v54 = vpop.eup %4615  ;;  %v3806_v29 = vsel %vm3492_vm1, %v3788_v61, %v3612_v52  ;;  %v3553_v56 = vadd.f32 1.0, %v4614_v39  ;;  %v3615_v26 = vadd.f32 %v3599_v55, %v7137_v57  ;;  %v3630_v23 = vmax.f32 %v7217_v21, 0.0 }
 0x76a   : > { %v4618_v48 = vpop.eup %4617  ;;  %3851 = vst [vmem:[%s7188_s21 + $0x20] sm:$0xff] %v3835_v3  ;;  %v3822_v1 = vmin.f32 %v3806_v29, %v7161_v45  ;;  %v3770_v15 = vmul.f32 %v3754_v35, %v7145_v18  ;;  %4639 = vlog2.f32 %v3715_v33  ;;  %v3556_v38 = vadd.f32 1.0, %v4616_v54 }
 0x76b   : > { %v4620_v13 = vpop.eup %4619  ;;  %v3738_v59 = vmul.f32 0.6931472, %v4618_v48  ;;  %4641 = vpow2.f32 %v3695_v58  ;;  %v3635_v54 = vmax.f32 %v7224_v41, 0.0 }
 0x76c   : > { %v4622_v2 = vpop.eup %4621  ;;  %v3838_v42 = vmax.f32 %v3822_v1, %v7137_v57  ;;  %v3786_v9 = vadd.f32 %v3770_v15, %v7137_v57  ;;  %4643 = vrcp.f32 %v3553_v56  ;;  %v3597_v63 = vmul.f32 %v4620_v13, %v7129_v24 }
 0x76d   : > { %v4624_v20 = vpop.eup %4623  ;;  %v3759_v12 = vadd.f32 %v3738_v59, %v3631_v5  ;;  %v3713_v50 = vadd.f32 1.0, %v4622_v2 }
 0x76e   : > { %v4626_v28 = vpop.eup %4625  ;;  %3854 = vst [vmem:[%s7188_s21 + $0x38] sm:$0xff] %v3838_v42  ;;  %v3804_v27 = vsel %vm3492_vm1, %v3786_v9, %v3610_v46  ;;  %v3734_v53 = vmul.f32 0.6931472, %v4624_v20  ;;  %v3613_v32 = vadd.f32 %v3597_v63, %v7137_v57 }
 0x76f   : > { %v4628_v37 = vpop.eup %4627  ;;  %v3820_v22 = vmin.f32 %v3804_v27, %v7161_v45  ;;  %v3775_v47 = vmul.f32 %v3759_v12, %v7145_v18  ;;  %4645 = vlog2.f32 %v3713_v50  ;;  %v3600_v60 = vmul.f32 %v4626_v28, %v7129_v24 }
 0x770   : > { %v3757_v44 = vadd.f32 %v3734_v53, %v3629_v10  ;;  %v3716_v6 = vadd.f32 1.0, %v4628_v37  ;;  %4647 = vrcp.f32 %v3556_v38  ;;  %v3633_v50 = vmax.f32 %v7229_v34, 0.0 }
 0x771   : > { %v4630_v36 = vpop.eup %4629  ;;  %v3836_v62 = vmax.f32 %v3820_v22, %v7137_v57  ;;  %v3791_v17 = vadd.f32 %v3775_v47, %v7137_v57  ;;  %v3616_v33 = vadd.f32 %v3600_v60, %v7137_v57 }
 0x772   : > { %v4632_v51 = vpop.eup %4631  ;;  %v3773_v25 = vmul.f32 %v3757_v44, %v7145_v18  ;;  %v3740_v30 = vmul.f32 0.6931472, %v4630_v36  ;;  %4649 = vlog2.f32 %v3716_v6  ;;  %v3636_v6 = vmax.f32 %v7232_v0, 0.0 }
 0x773   : > { %v4634_v43 = vpop.eup %4633  ;;  %3852 = vst [vmem:[%s7188_s21 + $0x28] sm:$0xff] %v3836_v62  ;;  %v3809_v49 = vsel %vm3492_vm1, %v3791_v17, %v3615_v26  ;;  %v3598_v52 = vmul.f32 %v4632_v51, %v7129_v24 }
 0x774   : > { %v3825_v7 = vmin.f32 %v3809_v49, %v7161_v45  ;;  %v3789_v16 = vadd.f32 %v3773_v25, %v7137_v57  ;;  %v3760_v11 = vadd.f32 %v3740_v30, %v3632_v14  ;;  %v3736_v8 = vmul.f32 0.6931472, %v4634_v43  ;;  %v4636_v40 = vpop.eup %4635 }
 0x775   : > { %v4638_v61 = vpop.eup %4637  ;;  %v3554_v1 = vadd.f32 1.0, %v4636_v40  ;;  %v3614_v56 = vadd.f32 %v3598_v52, %v7137_v57  ;;  %v3634_v52 = vmax.f32 %v7248_v19, 0.0 }
 0x776   : > { %v3841_v4 = vmax.f32 %v3825_v7, %v7137_v57  ;;  %v3807_v31 = vsel %vm3492_vm1, %v3789_v16, %v3613_v32  ;;  %v3776_v39 = vmul.f32 %v3760_v11, %v7145_v18  ;;  %v3758_v3 = vadd.f32 %v3736_v8, %v3630_v23 }
 0x777   : > { %v4640_v21 = vpop.eup %4639  ;;  %v3823_v35 = vmin.f32 %v3807_v31, %v7161_v45  ;;  %v3603_v2 = vmul.f32 %v4638_v61, %v7129_v24  ;;  %4651 = vrcp.f32 %v3554_v1 }
 0x778   : > { %3857 = vst [vmem:[%s7188_s21 + $0x50] sm:$0xff] %v3841_v4  ;;  %v3792_v29 = vadd.f32 %v3776_v39, %v7137_v57  ;;  %v3774_v58 = vmul.f32 %v3758_v3, %v7145_v18  ;;  %v3746_v48 = vmul.f32 0.6931472, %v4640_v21  ;;  %v4642_v13 = vpop.eup %4641 }
 0x779   : > { %v3839_v15 = vmax.f32 %v3823_v35, %v7137_v57  ;;  %v4644_v42 = vpop.eup %4643  ;;  %v3714_v9 = vadd.f32 1.0, %v4642_v13  ;;  %v3619_v53 = vadd.f32 %v3603_v2, %v7137_v57 }
 0x77a   : > { %v3810_v5 = vsel %vm3492_vm1, %v3792_v29, %v3616_v33  ;;  %v3790_v59 = vadd.f32 %v3774_v58, %v7137_v57  ;;  %v3763_v41 = vadd.f32 %v3746_v48, %v3635_v54  ;;  %v3601_v34 = vmul.f32 %v4644_v42, %v7129_v24 }
 0x77b   : > { %3855 = vst [vmem:[%s7188_s21 + $0x40] sm:$0xff] %v3839_v15  ;;  %v3826_v46 = vmin.f32 %v3810_v5, %v7161_v45  ;;  %4653 = vlog2.f32 %v3714_v9 }
 0x77c   : > { %v4646_v55 = vpop.eup %4645  ;;  %v3808_v20 = vsel %vm3492_vm1, %v3790_v59, %v3614_v56  ;;  %v3779_v12 = vmul.f32 %v3763_v41, %v7145_v18  ;;  %v3617_v14 = vadd.f32 %v3601_v34, %v7137_v57 }
 0x77d   : > { %v3842_v38 = vmax.f32 %v3826_v46, %v7137_v57  ;;  %v3824_v28 = vmin.f32 %v3808_v20, %v7161_v45  ;;  %v3742_v27 = vmul.f32 0.6931472, %v4646_v55  ;;  %v4648_v10 = vpop.eup %4647 }
 0x77e   : > { %v3795_v37 = vadd.f32 %v3779_v12, %v7137_v57  ;;  %v3604_v17 = vmul.f32 %v4648_v10, %v7129_v24 }
 0x77f   : > { %v4650_v22 = vpop.eup %4649  ;;  %3858 = vst [vmem:[%s7188_s21 + $0x58] sm:$0xff] %v3842_v38  ;;  %v3840_v47 = vmax.f32 %v3824_v28, %v7137_v57  ;;  %v3761_v63 = vadd.f32 %v3742_v27, %v3633_v50 }
 0x780   : > { %v3813_v44 = vsel %vm3492_vm1, %v3795_v37, %v3619_v53  ;;  %v3748_v36 = vmul.f32 0.6931472, %v4650_v22  ;;  %v3620_v32 = vadd.f32 %v3604_v17, %v7137_v57 }
 0x781   : > { %3856 = vst [vmem:[%s7188_s21 + $0x48] sm:$0xff] %v3840_v47  ;;  %v3829_v62 = vmin.f32 %v3813_v44, %v7161_v45  ;;  %v3777_v26 = vmul.f32 %v3761_v63, %v7145_v18 }
 0x782   : > { %v3764_v51 = vadd.f32 %v3748_v36, %v3636_v6 }
 0x783   : > { %v3845_v25 = vmax.f32 %v3829_v62, %v7137_v57  ;;  %v3793_v30 = vadd.f32 %v3777_v26, %v7137_v57 }
 0x784   : > { %v3780_v43 = vmul.f32 %v3764_v51, %v7145_v18  ;;  %v4652_v16 = vpop.eup %4651 }
 0x785   : > { %3861 = vst [vmem:[%s7188_s21 + $0x70] sm:$0xff] %v3845_v25  ;;  %v3811_v0 = vsel %vm3492_vm1, %v3793_v30, %v3617_v14  ;;  %v3602_v4 = vmul.f32 %v4652_v16, %v7129_v24 }
 0x786   : > { %v3827_v49 = vmin.f32 %v3811_v0, %v7161_v45  ;;  %v3796_v60 = vadd.f32 %v3780_v43, %v7137_v57 }
 0x787   : > { %v3618_v3 = vadd.f32 %v3602_v4, %v7137_v57 }
 0x788   : > { %v3843_v23 = vmax.f32 %v3827_v49, %v7137_v57  ;;  %v3814_v7 = vsel %vm3492_vm1, %v3796_v60, %v3620_v32  ;;  %v4654_v8 = vpop.eup %4653 }
 0x789   : > { %v3830_v11 = vmin.f32 %v3814_v7, %v7161_v45  ;;  %v3744_v61 = vmul.f32 0.6931472, %v4654_v8 }
 0x78a   : > { %3859 = vst [vmem:[%s7188_s21 + $0x60] sm:$0xff] %v3843_v23 }
 0x78b   : > { %v3846_v40 = vmax.f32 %v3830_v11, %v7137_v57  ;;  %v3762_v31 = vadd.f32 %v3744_v61, %v3634_v52 }
 0x78d   : > { %3862 = vst [vmem:[%s7188_s21 + $0x78] sm:$0xff] %v3846_v40  ;;  %v3778_v39 = vmul.f32 %v3762_v31, %v7145_v18 }
 0x78f   : > { %v3794_v21 = vadd.f32 %v3778_v39, %v7137_v57 }
 0x791   : > { %v3812_v35 = vsel %vm3492_vm1, %v3794_v21, %v3618_v3 }
 0x792   : > { %v3828_v19 = vmin.f32 %v3812_v35, %v7161_v45 }
 0x794   : > { %v3844_v18 = vmax.f32 %v3828_v19, %v7137_v57 }
 0x796   : > { %3860 = vst [vmem:[%s7188_s21 + $0x68] sm:$0xff] %v3844_v18 }
 0x797   : > { %4746 = shalt.err (!%p4743_p0)
}
 0x798   : > { %s4747_s14 = scalar_lea.hbm %s7368_s18, 2048  ;;  %s4751_s19 = scalar_lea.hbm %s7423_s7, 8192 }
 0x799   : > { %p4748_p6 = scmp.ne.s32.totalorder %s7368_s18, %s4747_s14  ;;  %p4752_p5 = scmp.lt.s32.totalorder %s7368_s18, %s7423_s7 }
 0x79a   : > { %p4753_p1 = scmp.lt.s32.totalorder %s4751_s19, %s4747_s14 }
 0x79b   : > { %p4749_p9 = pnand %p4748_p6, %p7670_p3 }
 0x79c   : > { %p4754_p12 = por %p4753_p1, %p4752_p5 }
 0x79d   : > { %p4750_p13 = pneg %p4749_p9 }
 0x79f   : > { %p4755_p10 = pnand %p4754_p12, %p4750_p13 }
 0x7a1   : > { %4758 = shalt.err (!%p4755_p10)
}
 0x7a2   : > { %s4812_s16 = smov 128   ;;  %s4813_s13 = smov 8  }
 0x7a3   : > { %4179 = dma.vmem_to_hbm [thread:$0]  (%p7670_p3), %s7370_s8, 2048, %s7368_s18, %s7376_s28, %s4812_s16, %s4812_s16, %s4813_s13  }
 0x7a4 PF: > { %p4201_p2 = scmp.ge.s32.totalorder %s4801_s27, 2  ;;  %s3892_s20 = sand.u32 1, %s4789_s24  }
 0x7a5   : > { %p7671_p4 = scmp.ne.s32.totalorder %s7495_s12, 0  ;;  %s3893_s22 = scalar_lea.sflag [#allocation4], %s3892_s20 }
 0x7a7   : > { %p4192_p7 = pnand %p4201_p2, %p7671_p4 }
 0x7a9   : > { %p4193_p8 = pneg %p4192_p7 }
 0x7ab   : > { %4784 = dma.done.wait (%p4193_p8), %s3893_s22, 2048  }
 0x7ac   : > { %4786 = vsyncadd (%p4193_p8), %s3893_s22, 4294965248  ;;  %p19_p11 = scmp.ge.s32.totalorder %s4879_s30, 6   ;;  %s7672_s24 = smov %s4793_s25 }
 0x7ad   : > { %s7673_s25 = smov %s4797_s26  ;;  %s7674_s26 = smov %s4890_s10 }
 0x7ae   : > { %s7675_s27 = smov %s4879_s30  ;;  %21 = sbr.rel (!%p19_p11) target bundleno = 5 (0x5), region = 103 }
 0x7b3   :  { %3898 = vsyncpa [#allocation3], 1 }
 0x7b4   :  { %3900 = vsyncpa [#allocation3 + $0x1], 1 }
 0x7b5   :  { %3901 = vsyncpa [#allocation6], 1 }
 0x7b6   :  { %3902 = vsyncpa [#allocation4], 1 }
 0x7b7   :  { %3904 = vsyncpa [#allocation4 + $0x1], 1 }

</bundles_post_ra>
